<compile_context>
chip_gen: v5e
topology: v5e:2x2
jax: 0.10.0
libtpu: 0.0.40
codegen_flags: <defaults>
</compile_context>

<pallas_src>
import math
from functools import partial

import jax
import jax.numpy as jnp
from jax.experimental import pallas as pl
from jax.experimental.pallas import tpu as pltpu

LANE = 128          # vreg lane width
TB_CAP = 256        # max batch tile rows (well within VMEM together with weights)


def _round_up(x, m):
    return (x + m - 1) // m * m


# ----------------------------------------------------------------------------
# Kernel: one (TB, 896) batch tile flows through all 6 layers; weights are
# VMEM-resident across all grid steps.
# ----------------------------------------------------------------------------
def ae_kernel(x_ref,
              w1, b1, w2, b2, w3, b3,          # encoder (padded, bf16 W / f32 b)
              w4, b4, w5, b5, w6, b6,          # decoder
              xout_ref, z_ref):
    bf16 = jnp.bfloat16

    def dense(h, w_ref, b_ref):
        return jnp.dot(h.astype(bf16), w_ref[...],
                       preferred_element_type=jnp.float32) + b_ref[...]

    x = x_ref[...]

    # ---- Encoder: 896 -> 384 -> 128 -> 128 (true: 784 -> 300 -> 100 -> z) ----
    h = jnp.maximum(dense(x, w1, b1), 0.0)
    h = jnp.maximum(dense(h, w2, b2), 0.0)
    z = dense(h, w3, b3)
    z_ref[...] = z

    # ---- Decoder: 128 -> 128 -> 384 -> 896, sigmoid output ----
    d = jnp.maximum(dense(z, w4, b4), 0.0)
    d = jnp.maximum(dense(d, w5, b5), 0.0)
    o = dense(d, w6, b6)

    # sigmoid(o) = 1 / (1 + exp(-o)); exp + reciprocal both run on the EUP.
    xout_ref[...] = pl.reciprocal(1.0 + jnp.exp(-o), approx=True)


# ----------------------------------------------------------------------------
# Parameter construction (mimics nn.Linear default init), padding, reference.
# ----------------------------------------------------------------------------
def make_ae_params(z_dim, seed=0):
    """Unpadded f32 params: list of (W_t of shape (in, out), b of shape (out,))."""
    dims = [(28 * 28, 300), (300, 100), (100, z_dim),      # encoder
            (z_dim, 100), (100, 300), (300, 28 * 28)]      # decoder
    keys = jax.random.split(jax.random.PRNGKey(seed), len(dims))
    params = []
    for k, (fi, fo) in zip(keys, dims):
        kw, kb = jax.random.split(k)
        bound = 1.0 / math.sqrt(fi)
        w_t = jax.random.uniform(kw, (fi, fo), jnp.float32, -bound, bound)
        b = jax.random.uniform(kb, (fo,), jnp.float32, -bound, bound)
        params.append((w_t, b))
    return params


def pad_params_for_kernel(params):
    """Zero-pad feature dims to 128 multiples; weights -> bf16, biases -> (1, out) f32."""
    padded = []
    for w_t, b in params:
        fi, fo = w_t.shape
        fi_p, fo_p = _round_up(fi, LANE), _round_up(fo, LANE)
        wp = jnp.zeros((fi_p, fo_p), jnp.float32).at[:fi, :fo].set(w_t)
        bp = jnp.zeros((1, fo_p), jnp.float32).at[0, :fo].set(b)
        padded.extend([wp.astype(jnp.bfloat16), bp])
    return tuple(padded)


def ae_reference_bf16(x, params):
    """Pure-JAX reference mirroring the kernel's bf16-matmul / f32-accumulate numerics."""
    def dense(h, w_t, b):
        return jnp.dot(h.astype(jnp.bfloat16), w_t.astype(jnp.bfloat16),
                       preferred_element_type=jnp.float32) + b

    (w1, b1), (w2, b2), (w3, b3), (w4, b4), (w5, b5), (w6, b6) = params
    h = jnp.maximum(dense(x, w1, b1), 0.0)
    h = jnp.maximum(dense(h, w2, b2), 0.0)
    z = dense(h, w3, b3)
    d = jnp.maximum(dense(z, w4, b4), 0.0)
    d = jnp.maximum(dense(d, w5, b5), 0.0)
    o = dense(d, w6, b6)
    return jax.nn.sigmoid(o), z


# ----------------------------------------------------------------------------
# Forward wrapper.
# ----------------------------------------------------------------------------
@partial(jax.jit, static_argnames=("z_dim",))
def ae_forward(x, kernel_params, z_dim):
    B, F = x.shape                       # F = 784
    F_pad = _round_up(F, LANE)           # 896
    Z_pad = _round_up(z_dim, LANE)       # 128

    # Batch tile: up to TB_CAP rows, at least a sublane-aligned multiple of 8.
    TB = min(TB_CAP, _round_up(B, 8))
    B_pad = _round_up(B, TB)
    grid = (B_pad // TB,)

    # Zero-pad input to lane-dense (B_pad, 896).
    x_p = jnp.zeros((B_pad, F_pad), jnp.float32).at[:B, :F].set(x)

    def act_spec(feat):
        return pl.BlockSpec((TB, feat), lambda i: (i, 0))

    def const_spec(arr):
        # Same block index on every grid step -> stays resident, no re-DMA.
        return pl.BlockSpec(arr.shape, lambda i: (0, 0))

    in_specs = [act_spec(F_pad)] + [const_spec(p) for p in kernel_params]
    out_specs = (act_spec(F_pad), act_spec(Z_pad))

    # Advisory cost estimate (padded MXU work).
    flops_per_row = 2 * (896 * 384 + 384 * 128 + 128 * 128
                         + 128 * 128 + 128 * 384 + 384 * 896)
    param_bytes = sum(math.prod(p.shape) * p.dtype.itemsize for p in kernel_params)
    bytes_acc = (B_pad * F_pad * 4            # x in
                 + param_bytes                # weights + biases
                 + B_pad * F_pad * 4          # x_out
                 + B_pad * Z_pad * 4)         # z
    cost = pl.CostEstimate(flops=B_pad * flops_per_row,
                           transcendentals=2 * B_pad * F_pad,
                           bytes_accessed=bytes_acc)

    x_out_p, z_p = pl.pallas_call(
        ae_kernel,
        out_shape=(
            jax.ShapeDtypeStruct((B_pad, F_pad), jnp.float32),   # x_out (lane-dense)
            jax.ShapeDtypeStruct((B_pad, Z_pad), jnp.float32),   # z     (lane-dense)
        ),
        grid=grid,
        in_specs=in_specs,
        out_specs=out_specs,
        compiler_params=pltpu.CompilerParams(
            dimension_semantics=("parallel",)),                  # megacore on v7x
        cost_estimate=cost,
    )(x_p, *kernel_params)

    # Slice the true rows/columns back out (padded latent columns are exactly zero).
    return x_out_p[:B, :F], z_p[:B, :z_dim]


# ----------------------------------------------------------------------------
if __name__ == "__main__":
    B = 2
    Z_DIM = 32

    key = jax.random.PRNGKey(0)
    x_in = jax.random.uniform(key, (B, 28 * 28), jnp.float32)   # flattened image batch

    params = make_ae_params(Z_DIM, seed=0)
    kernel_params = pad_params_for_kernel(params)

    x_out, z = ae_forward(x_in, kernel_params, Z_DIM)
    jax.block_until_ready((x_out, z))

    # Shape / range checks (tiny slack for the approx EUP reciprocal in sigmoid).
    assert x_out.shape == (B, 28 * 28)
    assert z.shape == (B, Z_DIM)
    assert bool(jnp.all((x_out >= -1e-3) & (x_out <= 1.0 + 1e-3)))

    # Numerical check against a pure-JAX reference with matching bf16 matmuls.
    x_ref, z_ref = ae_reference_bf16(x_in, params)
    assert float(jnp.max(jnp.abs(z - z_ref))) < 5e-3
    assert float(jnp.max(jnp.abs(x_out - x_ref))) < 1e-2

    print("KERNEL_OK")
</pallas_src>

<mosaic_0001>
module attributes {stable_mosaic.version = 11 : i64} {
  func.func @ae_kernel(%arg0: i32, %arg1: memref<8x896xf32, #tpu.memory_space<vmem>>, %arg2: memref<896x384xbf16, #tpu.memory_space<vmem>>, %arg3: memref<1x384xf32, #tpu.memory_space<vmem>>, %arg4: memref<384x128xbf16, #tpu.memory_space<vmem>>, %arg5: memref<1x128xf32, #tpu.memory_space<vmem>>, %arg6: memref<128x128xbf16, #tpu.memory_space<vmem>>, %arg7: memref<1x128xf32, #tpu.memory_space<vmem>>, %arg8: memref<128x128xbf16, #tpu.memory_space<vmem>>, %arg9: memref<1x128xf32, #tpu.memory_space<vmem>>, %arg10: memref<128x384xbf16, #tpu.memory_space<vmem>>, %arg11: memref<1x384xf32, #tpu.memory_space<vmem>>, %arg12: memref<384x896xbf16, #tpu.memory_space<vmem>>, %arg13: memref<1x896xf32, #tpu.memory_space<vmem>>, %arg14: memref<8x896xf32, #tpu.memory_space<vmem>>, %arg15: memref<8x128xf32, #tpu.memory_space<vmem>>) attributes {dimension_semantics = [#tpu.dimension_semantics<parallel>], iteration_bounds = array<i64: 1>, scalar_prefetch = 0 : i64, scratch_operands = 0 : i64, tpu.core_type = #tpu.core_type<tc>, window_params = [{transform_indices = @transform_0, window_bounds = array<i64: 8, 896>}, {pipeline_mode = #tpu.pipeline_mode<synchronous>, transform_indices = @transform_1, window_bounds = array<i64: 896, 384>}, {pipeline_mode = #tpu.pipeline_mode<synchronous>, transform_indices = @transform_2, window_bounds = array<i64: 1, 384>}, {pipeline_mode = #tpu.pipeline_mode<synchronous>, transform_indices = @transform_3, window_bounds = array<i64: 384, 128>}, {pipeline_mode = #tpu.pipeline_mode<synchronous>, transform_indices = @transform_4, window_bounds = array<i64: 1, 128>}, {pipeline_mode = #tpu.pipeline_mode<synchronous>, transform_indices = @transform_5, window_bounds = array<i64: 128, 128>}, {pipeline_mode = #tpu.pipeline_mode<synchronous>, transform_indices = @transform_6, window_bounds = array<i64: 1, 128>}, {pipeline_mode = #tpu.pipeline_mode<synchronous>, transform_indices = @transform_7, window_bounds = array<i64: 128, 128>}, {pipeline_mode = #tpu.pipeline_mode<synchronous>, transform_indices = @transform_8, window_bounds = array<i64: 1, 128>}, {pipeline_mode = #tpu.pipeline_mode<synchronous>, transform_indices = @transform_9, window_bounds = array<i64: 128, 384>}, {pipeline_mode = #tpu.pipeline_mode<synchronous>, transform_indices = @transform_10, window_bounds = array<i64: 1, 384>}, {pipeline_mode = #tpu.pipeline_mode<synchronous>, transform_indices = @transform_11, window_bounds = array<i64: 384, 896>}, {pipeline_mode = #tpu.pipeline_mode<synchronous>, transform_indices = @transform_12, window_bounds = array<i64: 1, 896>}, {transform_indices = @transform_13, window_bounds = array<i64: 8, 896>}, {transform_indices = @transform_14, window_bounds = array<i64: 8, 128>}]} {
    %c0 = arith.constant 0 : index
    %c0_0 = arith.constant 0 : index
    %0 = vector.load %arg1[%c0, %c0_0] : memref<8x896xf32, #tpu.memory_space<vmem>>, vector<8x896xf32>
    %1 = arith.truncf %0 : vector<8x896xf32> to vector<8x896xbf16>
    %c0_1 = arith.constant 0 : index
    %c0_2 = arith.constant 0 : index
    %2 = vector.load %arg2[%c0_1, %c0_2] : memref<896x384xbf16, #tpu.memory_space<vmem>>, vector<896x384xbf16>
    %cst = arith.constant dense<0.000000e+00> : vector<8x384xf32>
    %3 = tpu.matmul %1, %2, %cst {dimension_numbers = #tpu.dot_dimension_numbers<[1], [0], [0], [1], [0, 0, 1, 1], [], []>} : vector<8x896xbf16>, vector<896x384xbf16>, vector<8x384xf32> -> vector<8x384xf32>
    %c0_3 = arith.constant 0 : index
    %c0_4 = arith.constant 0 : index
    %4 = vector.load %arg3[%c0_3, %c0_4] : memref<1x384xf32, #tpu.memory_space<vmem>>, vector<1x384xf32>
    %5 = vector.broadcast %4 : vector<1x384xf32> to vector<8x384xf32>
    %6 = arith.addf %3, %5 : vector<8x384xf32>
    %cst_5 = arith.constant 0.000000e+00 : f32
    %7 = vector.broadcast %cst_5 : f32 to vector<8x384xf32>
    %8 = arith.maximumf %6, %7 : vector<8x384xf32>
    %9 = arith.truncf %8 : vector<8x384xf32> to vector<8x384xbf16>
    %c0_6 = arith.constant 0 : index
    %c0_7 = arith.constant 0 : index
    %10 = vector.load %arg4[%c0_6, %c0_7] : memref<384x128xbf16, #tpu.memory_space<vmem>>, vector<384x128xbf16>
    %cst_8 = arith.constant dense<0.000000e+00> : vector<8x128xf32>
    %11 = tpu.matmul %9, %10, %cst_8 {dimension_numbers = #tpu.dot_dimension_numbers<[1], [0], [0], [1], [0, 0, 1, 1], [], []>} : vector<8x384xbf16>, vector<384x128xbf16>, vector<8x128xf32> -> vector<8x128xf32>
    %c0_9 = arith.constant 0 : index
    %c0_10 = arith.constant 0 : index
    %12 = vector.load %arg5[%c0_9, %c0_10] : memref<1x128xf32, #tpu.memory_space<vmem>>, vector<1x128xf32>
    %13 = vector.broadcast %12 : vector<1x128xf32> to vector<8x128xf32>
    %14 = arith.addf %11, %13 : vector<8x128xf32>
    %cst_11 = arith.constant 0.000000e+00 : f32
    %15 = vector.broadcast %cst_11 : f32 to vector<8x128xf32>
    %16 = arith.maximumf %14, %15 : vector<8x128xf32>
    %17 = arith.truncf %16 : vector<8x128xf32> to vector<8x128xbf16>
    %c0_12 = arith.constant 0 : index
    %c0_13 = arith.constant 0 : index
    %18 = vector.load %arg6[%c0_12, %c0_13] : memref<128x128xbf16, #tpu.memory_space<vmem>>, vector<128x128xbf16>
    %cst_14 = arith.constant dense<0.000000e+00> : vector<8x128xf32>
    %19 = tpu.matmul %17, %18, %cst_14 {dimension_numbers = #tpu.dot_dimension_numbers<[1], [0], [0], [1], [0, 0, 1, 1], [], []>} : vector<8x128xbf16>, vector<128x128xbf16>, vector<8x128xf32> -> vector<8x128xf32>
    %c0_15 = arith.constant 0 : index
    %c0_16 = arith.constant 0 : index
    %20 = vector.load %arg7[%c0_15, %c0_16] : memref<1x128xf32, #tpu.memory_space<vmem>>, vector<1x128xf32>
    %21 = vector.broadcast %20 : vector<1x128xf32> to vector<8x128xf32>
    %22 = arith.addf %19, %21 : vector<8x128xf32>
    %c0_17 = arith.constant 0 : index
    %c0_18 = arith.constant 0 : index
    %23 = vector.load %arg15[%c0_17, %c0_18] : memref<8x128xf32, #tpu.memory_space<vmem>>, vector<8x128xf32>
    tpu.vector_store %arg15[%c0_17, %c0_18], %22 {strides = array<i32>} : memref<8x128xf32, #tpu.memory_space<vmem>>, vector<8x128xf32>,
    %24 = arith.truncf %22 : vector<8x128xf32> to vector<8x128xbf16>
    %c0_19 = arith.constant 0 : index
    %c0_20 = arith.constant 0 : index
    %25 = vector.load %arg8[%c0_19, %c0_20] : memref<128x128xbf16, #tpu.memory_space<vmem>>, vector<128x128xbf16>
    %cst_21 = arith.constant dense<0.000000e+00> : vector<8x128xf32>
    %26 = tpu.matmul %24, %25, %cst_21 {dimension_numbers = #tpu.dot_dimension_numbers<[1], [0], [0], [1], [0, 0, 1, 1], [], []>} : vector<8x128xbf16>, vector<128x128xbf16>, vector<8x128xf32> -> vector<8x128xf32>
    %c0_22 = arith.constant 0 : index
    %c0_23 = arith.constant 0 : index
    %27 = vector.load %arg9[%c0_22, %c0_23] : memref<1x128xf32, #tpu.memory_space<vmem>>, vector<1x128xf32>
    %28 = vector.broadcast %27 : vector<1x128xf32> to vector<8x128xf32>
    %29 = arith.addf %26, %28 : vector<8x128xf32>
    %cst_24 = arith.constant 0.000000e+00 : f32
    %30 = vector.broadcast %cst_24 : f32 to vector<8x128xf32>
    %31 = arith.maximumf %29, %30 : vector<8x128xf32>
    %32 = arith.truncf %31 : vector<8x128xf32> to vector<8x128xbf16>
    %c0_25 = arith.constant 0 : index
    %c0_26 = arith.constant 0 : index
    %33 = vector.load %arg10[%c0_25, %c0_26] : memref<128x384xbf16, #tpu.memory_space<vmem>>, vector<128x384xbf16>
    %cst_27 = arith.constant dense<0.000000e+00> : vector<8x384xf32>
    %34 = tpu.matmul %32, %33, %cst_27 {dimension_numbers = #tpu.dot_dimension_numbers<[1], [0], [0], [1], [0, 0, 1, 1], [], []>} : vector<8x128xbf16>, vector<128x384xbf16>, vector<8x384xf32> -> vector<8x384xf32>
    %c0_28 = arith.constant 0 : index
    %c0_29 = arith.constant 0 : index
    %35 = vector.load %arg11[%c0_28, %c0_29] : memref<1x384xf32, #tpu.memory_space<vmem>>, vector<1x384xf32>
    %36 = vector.broadcast %35 : vector<1x384xf32> to vector<8x384xf32>
    %37 = arith.addf %34, %36 : vector<8x384xf32>
    %cst_30 = arith.constant 0.000000e+00 : f32
    %38 = vector.broadcast %cst_30 : f32 to vector<8x384xf32>
    %39 = arith.maximumf %37, %38 : vector<8x384xf32>
    %40 = arith.truncf %39 : vector<8x384xf32> to vector<8x384xbf16>
    %c0_31 = arith.constant 0 : index
    %c0_32 = arith.constant 0 : index
    %41 = vector.load %arg12[%c0_31, %c0_32] : memref<384x896xbf16, #tpu.memory_space<vmem>>, vector<384x896xbf16>
    %cst_33 = arith.constant dense<0.000000e+00> : vector<8x896xf32>
    %42 = tpu.matmul %40, %41, %cst_33 {dimension_numbers = #tpu.dot_dimension_numbers<[1], [0], [0], [1], [0, 0, 1, 1], [], []>} : vector<8x384xbf16>, vector<384x896xbf16>, vector<8x896xf32> -> vector<8x896xf32>
    %c0_34 = arith.constant 0 : index
    %c0_35 = arith.constant 0 : index
    %43 = vector.load %arg13[%c0_34, %c0_35] : memref<1x896xf32, #tpu.memory_space<vmem>>, vector<1x896xf32>
    %44 = vector.broadcast %43 : vector<1x896xf32> to vector<8x896xf32>
    %45 = arith.addf %42, %44 : vector<8x896xf32>
    %cst_36 = arith.constant 0.000000e+00 : f32
    %46 = vector.broadcast %cst_36 : f32 to vector<8x896xf32>
    %47 = arith.subf %46, %45 : vector<8x896xf32>
    %48 = math.exp %47 : vector<8x896xf32>
    %cst_37 = arith.constant 1.000000e+00 : f32
    %49 = vector.broadcast %cst_37 : f32 to vector<8x896xf32>
    %50 = arith.addf %49, %48 : vector<8x896xf32>
    %51 = tpu.reciprocal %50 {approx = true} : vector<8x896xf32> -> vector<8x896xf32>
    %c0_38 = arith.constant 0 : index
    %c0_39 = arith.constant 0 : index
    %52 = vector.load %arg14[%c0_38, %c0_39] : memref<8x896xf32, #tpu.memory_space<vmem>>, vector<8x896xf32>
    tpu.vector_store %arg14[%c0_38, %c0_39], %51 {strides = array<i32>} : memref<8x896xf32, #tpu.memory_space<vmem>>, vector<8x896xf32>,
    return
  }
  func.func @transform_0(%arg0: i32) -> (i32, i32) {
    %c0_i32 = arith.constant 0 : i32
    %c0_i32_0 = arith.constant 0 : i32
    return %arg0, %c0_i32 : i32, i32
  }
  func.func @transform_1(%arg0: i32) -> (i32, i32) {
    %c0_i32 = arith.constant 0 : i32
    %c0_i32_0 = arith.constant 0 : i32
    %c0_i32_1 = arith.constant 0 : i32
    return %c0_i32, %c0_i32_0 : i32, i32
  }
  func.func @transform_2(%arg0: i32) -> (i32, i32) {
    %c0_i32 = arith.constant 0 : i32
    %c0_i32_0 = arith.constant 0 : i32
    %c0_i32_1 = arith.constant 0 : i32
    return %c0_i32, %c0_i32_0 : i32, i32
  }
  func.func @transform_3(%arg0: i32) -> (i32, i32) {
    %c0_i32 = arith.constant 0 : i32
    %c0_i32_0 = arith.constant 0 : i32
    %c0_i32_1 = arith.constant 0 : i32
    return %c0_i32, %c0_i32_0 : i32, i32
  }
  func.func @transform_4(%arg0: i32) -> (i32, i32) {
    %c0_i32 = arith.constant 0 : i32
    %c0_i32_0 = arith.constant 0 : i32
    %c0_i32_1 = arith.constant 0 : i32
    return %c0_i32, %c0_i32_0 : i32, i32
  }
  func.func @transform_5(%arg0: i32) -> (i32, i32) {
    %c0_i32 = arith.constant 0 : i32
    %c0_i32_0 = arith.constant 0 : i32
    %c0_i32_1 = arith.constant 0 : i32
    return %c0_i32, %c0_i32_0 : i32, i32
  }
  func.func @transform_6(%arg0: i32) -> (i32, i32) {
    %c0_i32 = arith.constant 0 : i32
    %c0_i32_0 = arith.constant 0 : i32
    %c0_i32_1 = arith.constant 0 : i32
    return %c0_i32, %c0_i32_0 : i32, i32
  }
  func.func @transform_7(%arg0: i32) -> (i32, i32) {
    %c0_i32 = arith.constant 0 : i32
    %c0_i32_0 = arith.constant 0 : i32
    %c0_i32_1 = arith.constant 0 : i32
    return %c0_i32, %c0_i32_0 : i32, i32
  }
  func.func @transform_8(%arg0: i32) -> (i32, i32) {
    %c0_i32 = arith.constant 0 : i32
    %c0_i32_0 = arith.constant 0 : i32
    %c0_i32_1 = arith.constant 0 : i32
    return %c0_i32, %c0_i32_0 : i32, i32
  }
  func.func @transform_9(%arg0: i32) -> (i32, i32) {
    %c0_i32 = arith.constant 0 : i32
    %c0_i32_0 = arith.constant 0 : i32
    %c0_i32_1 = arith.constant 0 : i32
    return %c0_i32, %c0_i32_0 : i32, i32
  }
  func.func @transform_10(%arg0: i32) -> (i32, i32) {
    %c0_i32 = arith.constant 0 : i32
    %c0_i32_0 = arith.constant 0 : i32
    %c0_i32_1 = arith.constant 0 : i32
    return %c0_i32, %c0_i32_0 : i32, i32
  }
  func.func @transform_11(%arg0: i32) -> (i32, i32) {
    %c0_i32 = arith.constant 0 : i32
    %c0_i32_0 = arith.constant 0 : i32
    %c0_i32_1 = arith.constant 0 : i32
    return %c0_i32, %c0_i32_0 : i32, i32
  }
  func.func @transform_12(%arg0: i32) -> (i32, i32) {
    %c0_i32 = arith.constant 0 : i32
    %c0_i32_0 = arith.constant 0 : i32
    %c0_i32_1 = arith.constant 0 : i32
    return %c0_i32, %c0_i32_0 : i32, i32
  }
  func.func @transform_13(%arg0: i32) -> (i32, i32) {
    %c0_i32 = arith.constant 0 : i32
    %c0_i32_0 = arith.constant 0 : i32
    return %arg0, %c0_i32 : i32, i32
  }
  func.func @transform_14(%arg0: i32) -> (i32, i32) {
    %c0_i32 = arith.constant 0 : i32
    %c0_i32_0 = arith.constant 0 : i32
    return %arg0, %c0_i32 : i32, i32
  }
}

</mosaic_0001>

<bundles_post_ra>
// kernel: ae_forward.1
= control target key start
LH: loop header
LB: loop body
LE: loop exit
PB: predicated region body
PF: predicated region fallthrough
CT: control target
= control target key end

     0   :  { %20 = vsyncpa [#allocation3], 0  ;;  %s6079_s0 = inlined_call_operand.vmem [shape: f32[8,896], index: 0, kind: input, shape index: {}]   ;;  %s6080_s1 = inlined_call_operand.hbm [shape: bf16[896,384], index: 1, kind: input, shape index: {}]   ;;  %s6081_s2 = inlined_call_operand.vmem [shape: f32[1,384], index: 2, kind: input, shape index: {}]   ;;  %s6082_s3 = inlined_call_operand.hbm [shape: bf16[384,128], index: 3, kind: input, shape index: {}]   ;;  %s6083_s4 = inlined_call_operand.hbm [shape: f32[1,128], index: 4, kind: input, shape index: {}]   ;;  %s6084_s5 = inlined_call_operand.vmem [shape: bf16[128,128], index: 5, kind: input, shape index: {}]   ;;  %s6085_s6 = inlined_call_operand.hbm [shape: f32[1,128], index: 6, kind: input, shape index: {}]   ;;  %s6086_s7 = inlined_call_operand.hbm [shape: bf16[128,128], index: 7, kind: input, shape index: {}]   ;;  %s6087_s8 = inlined_call_operand.vmem [shape: f32[1,128], index: 8, kind: input, shape index: {}]   ;;  %s6088_s9 = inlined_call_operand.hbm [shape: bf16[128,384], index: 9, kind: input, shape index: {}]   ;;  %s6089_s10 = inlined_call_operand.vmem [shape: f32[1,384], index: 10, kind: input, shape index: {}]   ;;  %s6090_s11 = inlined_call_operand.hbm [shape: bf16[384,896], index: 11, kind: input, shape index: {}]   ;;  %s6091_s12 = inlined_call_operand.vmem [shape: f32[1,896], index: 12, kind: input, shape index: {}]   ;;  %s6092_s13 = inlined_call_operand.vmem [shape: f32[8,896], index: 13, kind: output, shape index: {0}]   ;;  %s6093_s14 = inlined_call_operand.vmem [shape: f32[8,128], index: 14, kind: output, shape index: {1}]  }
   0x1   :  { %21 = vsyncpa [#allocation5], 0 }
   0x2   :  { %22 = vsyncpa [#allocation8], 0  ;;  %s45_s15 = sshll.u32 %s6082_s3, 4  ;;  %s46_s15 = int_to_ptr.hbm [resolvable:$true] %s45_s15 }
   0x3   :  { %23 = vsyncpa [#allocation11], 0  ;;  %s5807_s16 = smov [#allocation4]   ;;  %s72_s20 = sshll.u32 %s6085_s6, 4  ;;  %s73_s20 = int_to_ptr.hbm [resolvable:$true] %s72_s20 }
   0x4   :  { %s47_s17 = sshll.u32 %s5807_s16, 4  ;;  %s5808_s21 = smov 64   ;;  %s48_s17 = int_to_ptr.vmem [resolvable:$true] %s47_s17 }
   0x5   :  { %s5809_s22 = smov 4   ;;  %s5810_s23 = smov [#allocation7]  }
   0x6   :  { %53 = dma.hbm_to_vmem [thread:$0]  %s46_s15, 3072, %s48_s17, [#allocation5], %s5808_s21, %s5808_s21, %s5809_s22  }
   0x7   :  { %s74_s24 = sshll.u32 %s5810_s23, 4  ;;  %s97_s26 = sshll.u32 %s6088_s9, 4  ;;  %s75_s24 = int_to_ptr.vmem [resolvable:$true] %s74_s24  ;;  %s98_s26 = int_to_ptr.hbm [resolvable:$true] %s97_s26 }
   0x8   :  { %77 = dma.hbm_to_vmem [thread:$0]  %s73_s20, 16, %s75_s24, [#allocation8]  }
   0x9   :  { %s5811_s27 = smov [#allocation10]   ;;  %s30_s30 = sshll.u32 %s6080_s1, 4  ;;  %s31_s30 = int_to_ptr.hbm [resolvable:$true] %s30_s30 }
   0xa   :  { %s99_s28 = sshll.u32 %s5811_s27, 4  ;;  %s5812_s16 = smov 192   ;;  %s100_s28 = int_to_ptr.vmem [resolvable:$true] %s99_s28 }
   0xb   :  { %s5813_s18 = smov 12   ;;  %s5814_s15 = smov [#allocation2]  }
   0xc   :  { %105 = dma.hbm_to_vmem [thread:$0]  %s98_s26, 3072, %s100_s28, [#allocation11], %s5812_s16, %s5812_s16, %s5813_s18  }
   0xd   :  { %s32_s17 = sshll.u32 %s5814_s15, 4  ;;  %s59_s23 = sshll.u32 %s6083_s4, 4  ;;  %s33_s17 = int_to_ptr.vmem [resolvable:$true] %s32_s17  ;;  %s60_s23 = int_to_ptr.hbm [resolvable:$true] %s59_s23 }
   0xe   :  { %38 = dma.hbm_to_vmem [thread:$0]  %s31_s30, 21504, %s33_s17, [#allocation3], %s5812_s16, %s5812_s16, %s5813_s18  }
   0xf   :  { %s82_s3 = sshll.u32 %s6086_s7, 4  ;;  %s5815_s25 = smov [#allocation6]   ;;  %s83_s3 = int_to_ptr.hbm [resolvable:$true] %s82_s3 }
  0x10   :  { %s61_s27 = sshll.u32 %s5815_s25, 4  ;;  %s5816_s1 = smov [#allocation9]   ;;  %s62_s27 = int_to_ptr.vmem [resolvable:$true] %s61_s27 }
  0x11   :  { %64 = dma.hbm_to_vmem [thread:$0]  %s60_s23, 16, %s62_s27, [#allocation5]  }
  0x12   :  { %s84_s26 = sshll.u32 %s5816_s1, 4  ;;  %s112_s29 = sshll.u32 %s6090_s11, 4  ;;  %s85_s26 = int_to_ptr.vmem [resolvable:$true] %s84_s26  ;;  %s113_s29 = int_to_ptr.hbm [resolvable:$true] %s112_s29 }
  0x13   :  { %90 = dma.hbm_to_vmem [thread:$0]  %s83_s3, 1024, %s85_s26, [#allocation8], %s5808_s21, %s5808_s21, %s5809_s22  }
  0x14   :  { %s5817_s4 = smov [#allocation12]   ;;  %s5818_s7 = smov 448  }
  0x15   :  { %s114_s30 = sshll.u32 %s5817_s4, 4  ;;  %s5819_s16 = smov 28   ;;  %s115_s30 = int_to_ptr.vmem [resolvable:$true] %s114_s30 }
  0x16   :  { %120 = dma.hbm_to_vmem [thread:$0]  %s113_s29, 21504, %s115_s30, [#allocation11], %s5818_s7, %s5818_s7, %s5819_s16  }
  0x17   :  { %5799 = dma.done.wait [#allocation3], 21504  }
  0x18   :  { %5800 = vsyncadd [#allocation3], 4294945792 }
  0x19   :  { %5801 = dma.done.wait [#allocation5], 3088  }
  0x1a   :  { %5802 = vsyncadd [#allocation5], 4294964208 }
  0x1b   :  { %5803 = dma.done.wait [#allocation8], 1040  }
  0x1c   :  { %5804 = vsyncadd [#allocation8], 4294966256 }
  0x1d   :  { %5805 = dma.done.wait [#allocation11], 24576  }
  0x1e   :  { %5806 = vsyncadd [#allocation11], 4294942720  ;;  %v3673_v0 = vld [vmem:[#allocation2 + $0xa8] sm:$0xf]  ;;  %v5209_v1 = vld [vmem:[#allocation2 + $0xb0] sm:$0xf0] }
  0x1f   :  { %v3865_v2 = vld [vmem:[#allocation2 + $0x228] sm:$0xf]  ;;  %v3674_v3 = vor.u32 %v5209_v1, %v3673_v0  ;;  %v5257_v4 = vld [vmem:[#allocation2 + $0x230] sm:$0xf0]  ;;  %v3661_v9 = vld [vmem:[#allocation2 + $0x90] sm:$0xf] }
  0x20   :  { %v3769_v5 = vld [vmem:[#allocation2 + $0x168] sm:$0xf]  ;;  %v5233_v6 = vld [vmem:[#allocation2 + $0x170] sm:$0xf0]  ;;  %v3866_v7 = vor.u32 %v5257_v4, %v3865_v2  ;;  %v5206_v10 = vld [vmem:[#allocation2 + $0x98] sm:$0xf0] }
  0x21   :  { %v3770_v8 = vor.u32 %v5233_v6, %v3769_v5  ;;  %v3853_v11 = vld [vmem:[#allocation2 + $0x210] sm:$0xf]  ;;  %1293 = vmatpush.bf16.msra.mxu0 %v3674_v3  ;;  %v3662_v12 = vor.u32 %v5206_v10, %v3661_v9  ;;  %v5254_v13 = vld [vmem:[#allocation2 + $0x218] sm:$0xf0]  ;;  %v3649_v18 = vld [vmem:[#allocation2 + $0x78] sm:$0xf] }
  0x22   :  { %v3757_v14 = vld [vmem:[#allocation2 + $0x150] sm:$0xf]  ;;  %v5230_v15 = vld [vmem:[#allocation2 + $0x158] sm:$0xf0]  ;;  %1319 = vmatpush.bf16.msra.mxu2 %v3866_v7  ;;  %v3854_v16 = vor.u32 %v5254_v13, %v3853_v11  ;;  %v5203_v19 = vld [vmem:[#allocation2 + $0x80] sm:$0xf0] }
  0x23   :  { %1306 = vmatpush.bf16.msra.mxu1 %v3770_v8  ;;  %v3758_v17 = vor.u32 %v5230_v15, %v3757_v14  ;;  %v3841_v20 = vld [vmem:[#allocation2 + $0x1f8] sm:$0xf]  ;;  %v5251_v21 = vld [vmem:[#allocation2 + $0x200] sm:$0xf0]  ;;  %v3650_v24 = vor.u32 %v5203_v19, %v3649_v18  ;;  %v3961_v25 = vld [vmem:[#allocation2 + $0x2e8] sm:$0xf] }
  0x24   :  { %v3745_v22 = vld [vmem:[#allocation2 + $0x138] sm:$0xf]  ;;  %v5227_v23 = vld [vmem:[#allocation2 + $0x140] sm:$0xf0]  ;;  %v5281_v26 = vld [vmem:[#allocation2 + $0x2f0] sm:$0xf0]  ;;  %v3842_v27 = vor.u32 %v5251_v21, %v3841_v20 }
  0x25   :  { %1294 = vmatpush.bf16.msra.mxu0 %v3662_v12  ;;  %v3746_v28 = vor.u32 %v5227_v23, %v3745_v22  ;;  %v3637_v29 = vld [vmem:[#allocation2 + $0x60] sm:$0xf]  ;;  %v5200_v30 = vld [vmem:[#allocation2 + $0x68] sm:$0xf0]  ;;  %v3962_v32 = vor.u32 %v5281_v26, %v3961_v25  ;;  %v3949_v36 = vld [vmem:[#allocation2 + $0x2d0] sm:$0xf] }
  0x26   :  { %1320 = vmatpush.bf16.msra.mxu2 %v3854_v16  ;;  %v3829_v31 = vld [vmem:[#allocation2 + $0x1e0] sm:$0xf]  ;;  %v5248_v33 = vld [vmem:[#allocation2 + $0x1e8] sm:$0xf0]  ;;  %v5278_v37 = vld [vmem:[#allocation2 + $0x2d8] sm:$0xf0]  ;;  %v3638_v38 = vor.u32 %v5200_v30, %v3637_v29 }
  0x27   :  { %1307 = vmatpush.bf16.msra.mxu1 %v3758_v17  ;;  %v3733_v34 = vld [vmem:[#allocation2 + $0x120] sm:$0xf]  ;;  %v5224_v35 = vld [vmem:[#allocation2 + $0x128] sm:$0xf0]  ;;  %1332 = vmatpush.bf16.msra.mxu3 %v3962_v32  ;;  %v3625_v39 = vld [vmem:[#allocation2 + $0x48] sm:$0xf]  ;;  %v3950_v41 = vor.u32 %v5278_v37, %v3949_v36  ;;  %v3830_v42 = vor.u32 %v5248_v33, %v3829_v31 }
  0x28   :  { %v5197_v40 = vld [vmem:[#allocation2 + $0x50] sm:$0xf0]  ;;  %v3734_v43 = vor.u32 %v5224_v35, %v3733_v34  ;;  %v3817_v44 = vld [vmem:[#allocation2 + $0x1c8] sm:$0xf]  ;;  %v3937_v46 = vld [vmem:[#allocation2 + $0x2b8] sm:$0xf] }
  0x29   :  { %1295 = vmatpush.bf16.msra.mxu0 %v3650_v24  ;;  %v5245_v45 = vld [vmem:[#allocation2 + $0x1d0] sm:$0xf0]  ;;  %v3721_v47 = vld [vmem:[#allocation2 + $0x108] sm:$0xf]  ;;  %v5275_v49 = vld [vmem:[#allocation2 + $0x2c0] sm:$0xf0]  ;;  %v3626_v51 = vor.u32 %v5197_v40, %v3625_v39 }
  0x2a   :  { %1321 = vmatpush.bf16.msra.mxu2 %v3842_v27  ;;  %v5221_v48 = vld [vmem:[#allocation2 + $0x110] sm:$0xf0]  ;;  %v3938_v50 = vor.u32 %v5275_v49, %v3937_v46  ;;  %v3925_v52 = vld [vmem:[#allocation2 + $0x2a0] sm:$0xf]  ;;  %v5272_v53 = vld [vmem:[#allocation2 + $0x2a8] sm:$0xf0]  ;;  %v3818_v54 = vor.u32 %v5245_v45, %v3817_v44 }
  0x2b   :  { %1308 = vmatpush.bf16.msra.mxu1 %v3746_v28  ;;  %1333 = vmatpush.bf16.msra.mxu3 %v3950_v41  ;;  %v3722_v55 = vor.u32 %v5221_v48, %v3721_v47  ;;  %v3613_v56 = vld [vmem:[#allocation2 + $0x30] sm:$0xf]  ;;  %v5194_v57 = vld [vmem:[#allocation2 + $0x38] sm:$0xf0]  ;;  %v3926_v62 = vor.u32 %v5272_v53, %v3925_v52  ;;  %v3913_v0 = vld [vmem:[#allocation2 + $0x288] sm:$0xf] }
  0x2c   :  { %v3805_v58 = vld [vmem:[#allocation2 + $0x1b0] sm:$0xf]  ;;  %v5242_v59 = vld [vmem:[#allocation2 + $0x1b8] sm:$0xf0]  ;;  %v3614_v63 = vor.u32 %v5194_v57, %v3613_v56  ;;  %v5269_v1 = vld [vmem:[#allocation2 + $0x290] sm:$0xf0] }
  0x2d   :  { %1296 = vmatpush.bf16.msra.mxu0 %v3638_v38  ;;  %v3709_v60 = vld [vmem:[#allocation2 + $0xf0] sm:$0xf]  ;;  %v5218_v61 = vld [vmem:[#allocation2 + $0xf8] sm:$0xf0]  ;;  %v3806_v2 = vor.u32 %v5242_v59, %v3805_v58  ;;  %v3601_v4 = vld [vmem:[#allocation2 + $0x18] sm:$0xf]  ;;  %v3914_v11 = vor.u32 %v5269_v1, %v3913_v0 }
  0x2e   :  { %1322 = vmatpush.bf16.msra.mxu2 %v3830_v42  ;;  %v3710_v3 = vor.u32 %v5218_v61, %v3709_v60  ;;  %v5191_v5 = vld [vmem:[#allocation2 + $0x20] sm:$0xf0]  ;;  %v3793_v6 = vld [vmem:[#allocation2 + $0x198] sm:$0xf]  ;;  %v3589_v10 = vld [vmem:[#allocation2] sm:$0xf] }
  0x2f   :  { %1309 = vmatpush.bf16.msra.mxu1 %v3734_v43  ;;  %1334 = vmatpush.bf16.msra.mxu3 %v3938_v50  ;;  %v5239_v7 = vld [vmem:[#allocation2 + $0x1a0] sm:$0xf0]  ;;  %v3697_v8 = vld [vmem:[#allocation2 + $0xd8] sm:$0xf]  ;;  %v3602_v12 = vor.u32 %v5191_v5, %v3601_v4  ;;  %v5188_v13 = vld [vmem:[#allocation2 + $0x8] sm:$0xf0] }
  0x30   :  { %v5215_v9 = vld [vmem:[#allocation2 + $0xe0] sm:$0xf0]  ;;  %v3901_v14 = vld [vmem:[#allocation2 + $0x270] sm:$0xf]  ;;  %v5266_v15 = vld [vmem:[#allocation2 + $0x278] sm:$0xf0]  ;;  %v3794_v16 = vor.u32 %v5239_v7, %v3793_v6  ;;  %v3590_v28 = vor.u32 %v5188_v13, %v3589_v10 }
  0x31   :  { %1297 = vmatpush.bf16.msra.mxu0 %v3626_v51  ;;  %v3698_v17 = vor.u32 %v5215_v9, %v3697_v8  ;;  %v3781_v18 = vld [vmem:[#allocation2 + $0x180] sm:$0xf]  ;;  %v5236_v19 = vld [vmem:[#allocation2 + $0x188] sm:$0xf0]  ;;  %v4057_v20 = vld [vmem:[#allocation2 + $0x3a8] sm:$0xf]  ;;  %v3902_v27 = vor.u32 %v5266_v15, %v3901_v14 }
  0x32   :  { %1323 = vmatpush.bf16.msra.mxu2 %v3818_v54  ;;  %v5305_v21 = vld [vmem:[#allocation2 + $0x3b0] sm:$0xf0]  ;;  %v4249_v22 = vld [vmem:[#allocation2 + $0x528] sm:$0xf]  ;;  %v3685_v24 = vld [vmem:[#allocation2 + $0xc0] sm:$0xf]  ;;  %v3782_v32 = vor.u32 %v5236_v19, %v3781_v18 }
  0x33   :  { %1310 = vmatpush.bf16.msra.mxu1 %v3722_v55  ;;  %1335 = vmatpush.bf16.msra.mxu3 %v3926_v62  ;;  %v5353_v23 = vld [vmem:[#allocation2 + $0x530] sm:$0xf0]  ;;  %v5212_v25 = vld [vmem:[#allocation2 + $0xc8] sm:$0xf0]  ;;  %v4153_v26 = vld [vmem:[#allocation2 + $0x468] sm:$0xf]  ;;  %v4058_v33 = vor.u32 %v5305_v21, %v4057_v20 }
  0x34   :  { %v5329_v29 = vld [vmem:[#allocation2 + $0x470] sm:$0xf0]  ;;  %v3889_v30 = vld [vmem:[#allocation2 + $0x258] sm:$0xf]  ;;  %v5263_v31 = vld [vmem:[#allocation2 + $0x260] sm:$0xf0]  ;;  %v4250_v35 = vor.u32 %v5353_v23, %v4249_v22  ;;  %v3686_v36 = vor.u32 %v5212_v25, %v3685_v24 }
  0x35   :  { %1298 = vmatpush.bf16.msra.mxu0 %v3614_v63  ;;  %v4045_v34 = vld [vmem:[#allocation2 + $0x390] sm:$0xf]  ;;  %v5302_v37 = vld [vmem:[#allocation2 + $0x398] sm:$0xf0]  ;;  %v4154_v40 = vor.u32 %v5329_v29, %v4153_v26  ;;  %v3890_v43 = vor.u32 %v5263_v31, %v3889_v30  ;;  %v3877_v45 = vld [vmem:[#allocation2 + $0x240] sm:$0xf] }
  0x36   :  { %1324 = vmatpush.bf16.msra.mxu2 %v3806_v2  ;;  %v4237_v38 = vld [vmem:[#allocation2 + $0x510] sm:$0xf]  ;;  %v5350_v39 = vld [vmem:[#allocation2 + $0x518] sm:$0xf0]  ;;  %v5260_v46 = vld [vmem:[#allocation2 + $0x248] sm:$0xf0]  ;;  %v4046_v49 = vor.u32 %v5302_v37, %v4045_v34 }
  0x37   :  { %1311 = vmatpush.bf16.msra.mxu1 %v3710_v3  ;;  %1336 = vmatpush.bf16.msra.mxu3 %v3914_v11  ;;  %v4141_v41 = vld [vmem:[#allocation2 + $0x450] sm:$0xf]  ;;  %v5326_v42 = vld [vmem:[#allocation2 + $0x458] sm:$0xf0]  ;;  %v151_v48 = vld [vmem:[%s6079_s0] sm:$0xff]  ;;  %v4238_v53 = vor.u32 %v5350_v39, %v4237_v38  ;;  %v3878_v60 = vor.u32 %v5260_v46, %v3877_v45 }
  0x38   :  { %v153_v44 = vld [vmem:[%s6079_s0 + $0x10] sm:$0xff]  ;;  %v5208_v50 = vld [vmem:[#allocation2 + $0xac] sm:$0xf]  ;;  %v3675_v51 = vld [vmem:[#allocation2 + $0xb4] sm:$0xf0]  ;;  %v5930_v52 = vpack.c.bf16 %v151_v48, %v151_v48  ;;  %v4142_v57 = vor.u32 %v5326_v42, %v4141_v41 }
  0x39   :  { %1299 = vmatpush.bf16.msra.mxu0 %v3602_v12  ;;  %v5925_v47 = vpack.c.bf16 %v153_v44, %v153_v44  ;;  %v4033_v54 = vld [vmem:[#allocation2 + $0x378] sm:$0xf]  ;;  %v5299_v55 = vld [vmem:[#allocation2 + $0x380] sm:$0xf0]  ;;  %v152_v56 = vld [vmem:[%s6079_s0 + $0x8] sm:$0xff]  ;;  %v3678_v0 = vor.u32 %v5208_v50, %v3675_v51 }
  0x3a   :  { %1325 = vmatpush.bf16.msra.mxu2 %v3794_v16  ;;  %v4225_v58 = vld [vmem:[#allocation2 + $0x4f8] sm:$0xf]  ;;  %v5347_v59 = vld [vmem:[#allocation2 + $0x500] sm:$0xf0]  ;;  %v5935_v61 = vpack.c.bf16 %v152_v56, %v152_v56  ;;  %v4034_v1 = vor.u32 %v5299_v55, %v4033_v54  ;;  %v5205_v2 = vld [vmem:[#allocation2 + $0x94] sm:$0xf] }
  0x3b   :  { %1312 = vmatpush.bf16.msra.mxu1 %v3698_v17  ;;  %1337 = vmatpush.bf16.msra.mxu3 %v3902_v27  ;;  %v4129_v62 = vld [vmem:[#allocation2 + $0x438] sm:$0xf]  ;;  %v5323_v63 = vld [vmem:[#allocation2 + $0x440] sm:$0xf0]  ;;  %v3663_v3 = vld [vmem:[#allocation2 + $0x9c] sm:$0xf0]  ;;  %v4226_v4 = vor.u32 %v5347_v59, %v4225_v58 }
  0x3c   :  { %v4021_v5 = vld [vmem:[#allocation2 + $0x360] sm:$0xf]  ;;  %v5296_v6 = vld [vmem:[#allocation2 + $0x368] sm:$0xf0]  ;;  %v154_v7 = vld [vmem:[%s6079_s0 + $0x18] sm:$0xff]  ;;  %v4130_v8 = vor.u32 %v5323_v63, %v4129_v62  ;;  %v3666_v14 = vor.u32 %v5205_v2, %v3663_v3 }
  0x3d   :  { %1300 = vmatpush.bf16.msra.mxu0 %v3590_v28  ;;  %v4213_v9 = vld [vmem:[#allocation2 + $0x4e0] sm:$0xf]  ;;  %v5344_v10 = vld [vmem:[#allocation2 + $0x4e8] sm:$0xf0]  ;;  %v5943_v11 = vpack.c.bf16 %v154_v7, %v154_v7  ;;  %v4022_v15 = vor.u32 %v5296_v6, %v4021_v5  ;;  %v5202_v16 = vld [vmem:[#allocation2 + $0x7c] sm:$0xf] }
  0x3e   :  { %1326 = vmatpush.bf16.msra.mxu2 %v3782_v32  ;;  %v4117_v12 = vld [vmem:[#allocation2 + $0x420] sm:$0xf]  ;;  %v5320_v13 = vld [vmem:[#allocation2 + $0x428] sm:$0xf0]  ;;  %v3651_v17 = vld [vmem:[#allocation2 + $0x84] sm:$0xf0]  ;;  %v4214_v18 = vor.u32 %v5344_v10, %v4213_v9 }
  0x3f   :  { %1313 = vmatpush.bf16.msra.mxu1 %v3686_v36  ;;  %1338 = vmatpush.bf16.msra.mxu3 %v3890_v43  ;;  %v4009_v19 = vld [vmem:[#allocation2 + $0x348] sm:$0xf]  ;;  %v5293_v20 = vld [vmem:[#allocation2 + $0x350] sm:$0xf0]  ;;  %v4118_v21 = vor.u32 %v5320_v13, %v4117_v12  ;;  %v3654_v26 = vor.u32 %v5202_v16, %v3651_v17  ;;  %v5199_v28 = vld [vmem:[#allocation2 + $0x64] sm:$0xf] }
  0x40   :  { %1301 = vmatmul.bf16.vlgmr.msra.gmra.mxu0 %v5930_v52  ;;  %v4201_v22 = vld [vmem:[#allocation2 + $0x4c8] sm:$0xf]  ;;  %v5341_v23 = vld [vmem:[#allocation2 + $0x4d0] sm:$0xf0]  ;;  %v4010_v27 = vor.u32 %v5293_v20, %v4009_v19  ;;  %v3639_v29 = vld [vmem:[#allocation2 + $0x6c] sm:$0xf0] }
  0x41   :  { %1345 = vmatpush.bf16.msrb.mxu0 %v4058_v33  ;;  %1327 = vmatmul.bf16.vlgmr.msra.gmra.mxu2 %v5925_v47  ;;  %v4105_v24 = vld [vmem:[#allocation2 + $0x408] sm:$0xf]  ;;  %v5317_v25 = vld [vmem:[#allocation2 + $0x410] sm:$0xf0]  ;;  %v4202_v30 = vor.u32 %v5341_v23, %v4201_v22  ;;  %v3997_v31 = vld [vmem:[#allocation2 + $0x330] sm:$0xf]  ;;  %v3642_v38 = vor.u32 %v5199_v28, %v3639_v29 }
  0x42   :  { %1371 = vmatpush.bf16.msrb.mxu2 %v4250_v35  ;;  %1314 = vmatmul.bf16.vlgmr.msra.gmra.mxu1 %v5935_v61  ;;  %v5290_v32 = vld [vmem:[#allocation2 + $0x338] sm:$0xf0]  ;;  %v4106_v33 = vor.u32 %v5317_v25, %v4105_v24  ;;  %v4189_v34 = vld [vmem:[#allocation2 + $0x4b0] sm:$0xf]  ;;  %v3627_v41 = vld [vmem:[#allocation2 + $0x54] sm:$0xf0] }
  0x43   :  { %1358 = vmatpush.bf16.msrb.mxu1 %v4154_v40  ;;  %1339 = vmatpush.bf16.msra.mxu3 %v3878_v60  ;;  %v5338_v35 = vld [vmem:[#allocation2 + $0x4b8] sm:$0xf0]  ;;  %v4093_v36 = vld [vmem:[#allocation2 + $0x3f0] sm:$0xf]  ;;  %v3998_v39 = vor.u32 %v5290_v32, %v3997_v31  ;;  %v5196_v40 = vld [vmem:[#allocation2 + $0x4c] sm:$0xf] }
  0x44   :  { %v5314_v37 = vld [vmem:[#allocation2 + $0x3f8] sm:$0xf0]  ;;  %v4190_v42 = vor.u32 %v5338_v35, %v4189_v34  ;;  %v3985_v43 = vld [vmem:[#allocation2 + $0x318] sm:$0xf]  ;;  %v5287_v44 = vld [vmem:[#allocation2 + $0x320] sm:$0xf0]  ;;  %v3630_v51 = vor.u32 %v5196_v40, %v3627_v41 }
  0x45   :  { %1346 = vmatpush.bf16.msrb.mxu0 %v4046_v49  ;;  %v4094_v45 = vor.u32 %v5314_v37, %v4093_v36  ;;  %v4177_v46 = vld [vmem:[#allocation2 + $0x498] sm:$0xf]  ;;  %v5335_v48 = vld [vmem:[#allocation2 + $0x4a0] sm:$0xf0]  ;;  %v3973_v54 = vld [vmem:[#allocation2 + $0x300] sm:$0xf] }
  0x46   :  { %1372 = vmatpush.bf16.msrb.mxu2 %v4238_v53  ;;  %1340 = vmatmul.bf16.vlgmr.msra.gmra.mxu3 %v5943_v11  ;;  %v4081_v49 = vld [vmem:[#allocation2 + $0x3d8] sm:$0xf]  ;;  %v5311_v50 = vld [vmem:[#allocation2 + $0x3e0] sm:$0xf0]  ;;  %v3986_v53 = vor.u32 %v5287_v44, %v3985_v43  ;;  %v5193_v55 = vld [vmem:[#allocation2 + $0x34] sm:$0xf] }
  0x47   :  { %1359 = vmatpush.bf16.msrb.mxu1 %v4142_v57  ;;  %1384 = vmatpush.bf16.msrb.mxu3 %v3678_v0  ;;  %v3615_v56 = vld [vmem:[#allocation2 + $0x3c] sm:$0xf0]  ;;  %v4178_v57 = vor.u32 %v5335_v48, %v4177_v46  ;;  %v5284_v58 = vld [vmem:[#allocation2 + $0x308] sm:$0xf0]  ;;  %v4082_v62 = vor.u32 %v5311_v50, %v4081_v49  ;;  %v3771_v0 = vld [vmem:[#allocation2 + $0x174] sm:$0xf0] }
  0x48   :  { %v4165_v59 = vld [vmem:[#allocation2 + $0x480] sm:$0xf]  ;;  %v5332_v60 = vld [vmem:[#allocation2 + $0x488] sm:$0xf0]  ;;  %v3618_v3 = vor.u32 %v5193_v55, %v3615_v56  ;;  %v3963_v5 = vld [vmem:[#allocation2 + $0x2f4] sm:$0xf0]  ;;  %v3974_v6 = vor.u32 %v5284_v58, %v3973_v54 }
  0x49   :  { %1347 = vmatpush.bf16.msrb.mxu0 %v4034_v1  ;;  %v5232_v63 = vld [vmem:[#allocation2 + $0x16c] sm:$0xf]  ;;  %v4069_v1 = vld [vmem:[#allocation2 + $0x3c0] sm:$0xf]  ;;  %v4166_v10 = vor.u32 %v5332_v60, %v4165_v59  ;;  %v157_v13 = vld [vmem:[%s6079_s0 + $0x30] sm:$0xff] }
  0x4a   :  { %1373 = vmatpush.bf16.msrb.mxu2 %v4226_v4  ;;  %v5308_v2 = vld [vmem:[#allocation2 + $0x3c8] sm:$0xf0]  ;;  %v155_v9 = vld [vmem:[%s6079_s0 + $0x20] sm:$0xff]  ;;  %v3774_v12 = vor.u32 %v5232_v63, %v3771_v0  ;;  %v5229_v17 = vld [vmem:[#allocation2 + $0x154] sm:$0xf]  ;;  %v5957_v25 = vpack.c.bf16 %v157_v13, %v157_v13 }
  0x4b   :  { %1360 = vmatpush.bf16.msrb.mxu1 %v4130_v8  ;;  %1385 = vmatpush.bf16.msrb.mxu3 %v3666_v14  ;;  %v5280_v4 = vld [vmem:[#allocation2 + $0x2ec] sm:$0xf]  ;;  %v3867_v8 = vld [vmem:[#allocation2 + $0x234] sm:$0xf0]  ;;  %v5190_v14 = vld [vmem:[#allocation2 + $0x1c] sm:$0xf]  ;;  %v4070_v16 = vor.u32 %v5308_v2, %v4069_v1  ;;  %v5955_v22 = vpack.c.bf16 %v155_v9, %v155_v9 }
  0x4c   :  { %v5256_v7 = vld [vmem:[#allocation2 + $0x22c] sm:$0xf]  ;;  %v3966_v20 = vor.u32 %v5280_v4, %v3963_v5  ;;  %v5277_v23 = vld [vmem:[#allocation2 + $0x2d4] sm:$0xf]  ;;  %v3951_v24 = vld [vmem:[#allocation2 + $0x2dc] sm:$0xf0] }
  0x4d   :  { %1348 = vmatpush.bf16.msrb.mxu0 %v4022_v15  ;;  %v3603_v15 = vld [vmem:[#allocation2 + $0x24] sm:$0xf0]  ;;  %v5226_v31 = vld [vmem:[#allocation2 + $0x13c] sm:$0xf]  ;;  %v5187_v32 = vld [vmem:[#allocation2 + $0x4] sm:$0xf]  ;;  %v3954_v37 = vor.u32 %v5277_v23, %v3951_v24 }
  0x4e   :  { %1374 = vmatpush.bf16.msrb.mxu2 %v4214_v18  ;;  %v3759_v18 = vld [vmem:[#allocation2 + $0x15c] sm:$0xf0]  ;;  %v156_v19 = vld [vmem:[%s6079_s0 + $0x28] sm:$0xff]  ;;  %v3606_v28 = vor.u32 %v5190_v14, %v3603_v15  ;;  %v4059_v36 = vld [vmem:[#allocation2 + $0x3b4] sm:$0xf0] }
  0x4f   :  { %1361 = vmatpush.bf16.msrb.mxu1 %v4118_v21  ;;  %1386 = vmatpush.bf16.msrb.mxu3 %v3654_v26  ;;  %v3870_v21 = vor.u32 %v5256_v7, %v3867_v8  ;;  %v5253_v26 = vld [vmem:[#allocation2 + $0x214] sm:$0xf]  ;;  %v3762_v29 = vor.u32 %v5229_v17, %v3759_v18  ;;  %v3747_v34 = vld [vmem:[#allocation2 + $0x144] sm:$0xf0]  ;;  %v5304_v35 = vld [vmem:[#allocation2 + $0x3ac] sm:$0xf] }
  0x50   :  { %v3939_v40 = vld [vmem:[#allocation2 + $0x2c4] sm:$0xf0]  ;;  %v5250_v41 = vld [vmem:[#allocation2 + $0x1fc] sm:$0xf]  ;;  %v3750_v44 = vor.u32 %v5226_v31, %v3747_v34  ;;  %v4062_v46 = vor.u32 %v5304_v35, %v4059_v36  ;;  %v3735_v48 = vld [vmem:[#allocation2 + $0x12c] sm:$0xf0] }
  0x51   :  { %1349 = vmatpush.bf16.msrb.mxu0 %v4010_v27  ;;  %v3855_v27 = vld [vmem:[#allocation2 + $0x21c] sm:$0xf0]  ;;  %v5301_v49 = vld [vmem:[#allocation2 + $0x394] sm:$0xf]  ;;  %v5271_v54 = vld [vmem:[#allocation2 + $0x2a4] sm:$0xf] }
  0x52   :  { %1375 = vmatpush.bf16.msrb.mxu2 %v4202_v30  ;;  %v5959_v30 = vpack.c.bf16 %v156_v19, %v156_v19  ;;  %v4047_v50 = vld [vmem:[#allocation2 + $0x39c] sm:$0xf0]  ;;  %v3927_v55 = vld [vmem:[#allocation2 + $0x2ac] sm:$0xf0]  ;;  %v5247_v56 = vld [vmem:[#allocation2 + $0x1e4] sm:$0xf] }
  0x53   :  { %1362 = vmatpush.bf16.msrb.mxu1 %v4106_v33  ;;  %1387 = vmatpush.bf16.msrb.mxu3 %v3642_v38  ;;  %v3591_v33 = vld [vmem:[#allocation2 + $0xc] sm:$0xf0]  ;;  %v3858_v38 = vor.u32 %v5253_v26, %v3855_v27  ;;  %v5220_v59 = vld [vmem:[#allocation2 + $0x10c] sm:$0xf]  ;;  %v4050_v60 = vor.u32 %v5301_v49, %v4047_v50  ;;  %v5298_v63 = vld [vmem:[#allocation2 + $0x37c] sm:$0xf]  ;;  %v3930_v1 = vor.u32 %v5271_v54, %v3927_v55 }
  0x54   :  { %v3594_v43 = vor.u32 %v5187_v32, %v3591_v33  ;;  %v4035_v0 = vld [vmem:[#allocation2 + $0x384] sm:$0xf0]  ;;  %v3915_v4 = vld [vmem:[#allocation2 + $0x294] sm:$0xf0]  ;;  %v5244_v5 = vld [vmem:[#allocation2 + $0x1cc] sm:$0xf] }
  0x55   :  { %1350 = vmatpush.bf16.msrb.mxu0 %v3998_v39  ;;  %v5274_v39 = vld [vmem:[#allocation2 + $0x2bc] sm:$0xf]  ;;  %v5217_v8 = vld [vmem:[#allocation2 + $0xf4] sm:$0xf]  ;;  %v4038_v9 = vor.u32 %v5298_v63, %v4035_v0  ;;  %v4023_v13 = vld [vmem:[#allocation2 + $0x36c] sm:$0xf0] }
  0x56   :  { %1376 = vmatpush.bf16.msrb.mxu2 %v4190_v42  ;;  %v3843_v42 = vld [vmem:[#allocation2 + $0x204] sm:$0xf0]  ;;  %v3903_v17 = vld [vmem:[#allocation2 + $0x27c] sm:$0xf0]  ;;  %v5241_v18 = vld [vmem:[#allocation2 + $0x1b4] sm:$0xf] }
  0x57   :  { %1363 = vmatpush.bf16.msrb.mxu1 %v4094_v45  ;;  %1388 = vmatpush.bf16.msrb.mxu3 %v3630_v51  ;;  %v5223_v45 = vld [vmem:[#allocation2 + $0x124] sm:$0xf]  ;;  %v3942_v51 = vor.u32 %v5274_v39, %v3939_v40  ;;  %v3807_v19 = vld [vmem:[#allocation2 + $0x1bc] sm:$0xf0]  ;;  %v3699_v23 = vld [vmem:[#allocation2 + $0xe4] sm:$0xf0] }
  0x58   :  { %v3738_v58 = vor.u32 %v5223_v45, %v3735_v48  ;;  %v5292_v26 = vld [vmem:[#allocation2 + $0x34c] sm:$0xf]  ;;  %v4011_v27 = vld [vmem:[#allocation2 + $0x354] sm:$0xf0]  ;;  %v5262_v31 = vld [vmem:[#allocation2 + $0x25c] sm:$0xf] }
  0x59   :  { %1351 = vmatpush.bf16.msrb.mxu0 %v3986_v53  ;;  %v3846_v53 = vor.u32 %v5250_v41, %v3843_v42  ;;  %v3891_v32 = vld [vmem:[#allocation2 + $0x264] sm:$0xf0]  ;;  %v5238_v33 = vld [vmem:[#allocation2 + $0x19c] sm:$0xf]  ;;  %v5211_v36 = vld [vmem:[#allocation2 + $0xc4] sm:$0xf] }
  0x5a   :  { %1377 = vmatpush.bf16.msrb.mxu2 %v4178_v57  ;;  %v3831_v57 = vld [vmem:[#allocation2 + $0x1ec] sm:$0xf0]  ;;  %v3795_v34 = vld [vmem:[#allocation2 + $0x1a4] sm:$0xf0]  ;;  %v5328_v39 = vld [vmem:[#allocation2 + $0x46c] sm:$0xf] }
  0x5b   :  { %1364 = vmatpush.bf16.msrb.mxu1 %v4082_v62  ;;  %1389 = vmatpush.bf16.msrb.mxu3 %v3618_v3  ;;  %v3723_v62 = vld [vmem:[#allocation2 + $0x114] sm:$0xf0]  ;;  %v3834_v2 = vor.u32 %v5247_v56, %v3831_v57  ;;  %v5268_v3 = vld [vmem:[#allocation2 + $0x28c] sm:$0xf]  ;;  %v5289_v41 = vld [vmem:[#allocation2 + $0x334] sm:$0xf] }
  0x5c   :  { %v3726_v7 = vor.u32 %v5220_v59, %v3723_v62  ;;  %v3918_v14 = vor.u32 %v5268_v3, %v3915_v4  ;;  %v4155_v40 = vld [vmem:[#allocation2 + $0x474] sm:$0xf0]  ;;  %v3999_v42 = vld [vmem:[#allocation2 + $0x33c] sm:$0xf0]  ;;  %v5235_v45 = vld [vmem:[#allocation2 + $0x184] sm:$0xf] }
  0x5d   :  { %1352 = vmatpush.bf16.msrb.mxu0 %v3974_v6  ;;  %v3819_v6 = vld [vmem:[#allocation2 + $0x1d4] sm:$0xf0]  ;;  %v3879_v48 = vld [vmem:[#allocation2 + $0x24c] sm:$0xf0]  ;;  %v5352_v54 = vld [vmem:[#allocation2 + $0x52c] sm:$0xf]  ;;  %v4002_v56 = vor.u32 %v5289_v41, %v3999_v42  ;;  %v4158_v57 = vor.u32 %v5328_v39, %v4155_v40 }
  0x5e   :  { %1378 = vmatpush.bf16.msrb.mxu2 %v4166_v10  ;;  %v3711_v10 = vld [vmem:[#allocation2 + $0xfc] sm:$0xf0]  ;;  %v3822_v15 = vor.u32 %v5244_v5, %v3819_v6  ;;  %v3783_v49 = vld [vmem:[#allocation2 + $0x18c] sm:$0xf0]  ;;  %v4251_v55 = vld [vmem:[#allocation2 + $0x534] sm:$0xf0] }
  0x5f   :  { %1365 = vmatpush.bf16.msrb.mxu1 %v4070_v16  ;;  %1390 = vmatpush.bf16.msrb.mxu3 %v3606_v28  ;;  %v5265_v16 = vld [vmem:[#allocation2 + $0x274] sm:$0xf]  ;;  %v3681_v50 = vld [vmem:[#allocation2 + $0xb0] sm:$0xf]  ;;  %v3987_v59 = vld [vmem:[#allocation2 + $0x324] sm:$0xf0]  ;;  %v3786_v62 = vor.u32 %v5235_v45, %v3783_v49 }
  0x60   :  { %1353 = vmatmul.bf16.vlgmr.msrb.gmra.mxu0 %v5955_v22  ;;  %v3906_v28 = vor.u32 %v5265_v16, %v3903_v17  ;;  %v5325_v63 = vld [vmem:[#allocation2 + $0x454] sm:$0xf]  ;;  %v4143_v0 = vld [vmem:[#allocation2 + $0x45c] sm:$0xf0]  ;;  %v3669_v3 = vld [vmem:[#allocation2 + $0x98] sm:$0xf] }
  0x61   :  { %1397 = vmatpush.bf16.msra.mxu0 %v3774_v12  ;;  %1379 = vmatmul.bf16.vlgmr.msrb.gmra.mxu2 %v5957_v25  ;;  %v5295_v12 = vld [vmem:[#allocation2 + $0x364] sm:$0xf]  ;;  %v5349_v5 = vld [vmem:[#allocation2 + $0x514] sm:$0xf]  ;;  %v4239_v6 = vld [vmem:[#allocation2 + $0x51c] sm:$0xf0] }
  0x62   :  { %1423 = vmatpush.bf16.msra.mxu2 %v3966_v20  ;;  %1366 = vmatmul.bf16.vlgmr.msrb.gmra.mxu1 %v5959_v30  ;;  %v3714_v20 = vor.u32 %v5217_v8, %v3711_v10  ;;  %v4026_v24 = vor.u32 %v5295_v12, %v4023_v13  ;;  %v5207_v4 = vld [vmem:[#allocation2 + $0xa0] sm:$0xf0]  ;;  %v4146_v8 = vor.u32 %v5325_v63, %v4143_v0  ;;  %v3975_v12 = vld [vmem:[#allocation2 + $0x30c] sm:$0xf0]  ;;  %v4131_v13 = vld [vmem:[#allocation2 + $0x444] sm:$0xf0] }
  0x63   :  { %1410 = vmatpush.bf16.msra.mxu1 %v3870_v21  ;;  %1391 = vmatpush.bf16.msrb.mxu3 %v3594_v43  ;;  %v5214_v21 = vld [vmem:[#allocation2 + $0xdc] sm:$0xf]  ;;  %v3894_v43 = vor.u32 %v5262_v31, %v3891_v32  ;;  %v5283_v10 = vld [vmem:[#allocation2 + $0x304] sm:$0xf]  ;;  %v3670_v16 = vor.u32 %v5207_v4, %v3669_v3  ;;  %v4242_v17 = vor.u32 %v5349_v5, %v4239_v6  ;;  %v5316_v39 = vld [vmem:[#allocation2 + $0x40c] sm:$0xf] }
  0x64   :  { %v3702_v35 = vor.u32 %v5214_v21, %v3699_v23  ;;  %v4227_v21 = vld [vmem:[#allocation2 + $0x504] sm:$0xf0]  ;;  %v3978_v23 = vor.u32 %v5283_v10, %v3975_v12  ;;  %v5231_v31 = vld [vmem:[#allocation2 + $0x160] sm:$0xf0]  ;;  %v4107_v41 = vld [vmem:[#allocation2 + $0x414] sm:$0xf0] }
  0x65   :  { %1398 = vmatpush.bf16.msra.mxu0 %v3762_v29  ;;  %v3810_v29 = vor.u32 %v5241_v18, %v3807_v19  ;;  %v3657_v18 = vld [vmem:[#allocation2 + $0x80] sm:$0xf]  ;;  %v5204_v19 = vld [vmem:[#allocation2 + $0x88] sm:$0xf0]  ;;  %v5337_v63 = vld [vmem:[#allocation2 + $0x4b4] sm:$0xf] }
  0x66   :  { %1424 = vmatpush.bf16.msra.mxu2 %v3954_v37  ;;  %1392 = vmatmul.bf16.vlgmr.msrb.gmra.mxu3 %v5930_v52  ;;  %v3687_v37 = vld [vmem:[#allocation2 + $0xcc] sm:$0xf0]  ;;  %v3658_v32 = vor.u32 %v5204_v19, %v3657_v18  ;;  %v3753_v42 = vld [vmem:[#allocation2 + $0x140] sm:$0xf]  ;;  %v5340_v49 = vld [vmem:[#allocation2 + $0x4cc] sm:$0xf] }
  0x67   :  { %1411 = vmatpush.bf16.msra.mxu1 %v3858_v38  ;;  %1436 = vmatpush.bf16.msra.mxu3 %v4062_v46  ;;  %v4014_v38 = vor.u32 %v5292_v26, %v4011_v27  ;;  %v5259_v46 = vld [vmem:[#allocation2 + $0x244] sm:$0xf]  ;;  %v4191_v0 = vld [vmem:[#allocation2 + $0x4bc] sm:$0xf0]  ;;  %v4083_v4 = vld [vmem:[#allocation2 + $0x3e4] sm:$0xf0] }
  0x68   :  { %v5319_v26 = vld [vmem:[#allocation2 + $0x424] sm:$0xf]  ;;  %v3729_v5 = vld [vmem:[#allocation2 + $0x110] sm:$0xf]  ;;  %v5222_v6 = vld [vmem:[#allocation2 + $0x118] sm:$0xf0] }
  0x69   :  { %1399 = vmatpush.bf16.msra.mxu0 %v3750_v44  ;;  %v3798_v44 = vor.u32 %v5238_v33, %v3795_v34  ;;  %v3645_v34 = vld [vmem:[#allocation2 + $0x68] sm:$0xf]  ;;  %v5192_v10 = vld [vmem:[#allocation2 + $0x28] sm:$0xf0]  ;;  %v5334_v12 = vld [vmem:[#allocation2 + $0x49c] sm:$0xf] }
  0x6a   :  { %1425 = vmatpush.bf16.msra.mxu2 %v3942_v51  ;;  %v5210_v51 = vld [vmem:[#allocation2 + $0xb8] sm:$0xf0]  ;;  %v3873_v18 = vld [vmem:[#allocation2 + $0x230] sm:$0xf] }
  0x6b   :  { %1412 = vmatpush.bf16.msra.mxu1 %v3846_v53  ;;  %1437 = vmatpush.bf16.msra.mxu3 %v4050_v60  ;;  %v3690_v53 = vor.u32 %v5211_v36, %v3687_v37  ;;  %v3882_v60 = vor.u32 %v5259_v46, %v3879_v48  ;;  %v5343_v36 = vld [vmem:[#allocation2 + $0x4e4] sm:$0xf]  ;;  %v4215_v37 = vld [vmem:[#allocation2 + $0x4ec] sm:$0xf0]  ;;  %v5198_v48 = vld [vmem:[#allocation2 + $0x58] sm:$0xf0] }
  0x6c   :  { %v4218_v45 = vor.u32 %v5343_v36, %v4215_v37  ;;  %v3633_v46 = vld [vmem:[#allocation2 + $0x50] sm:$0xf]  ;;  %v5258_v19 = vld [vmem:[#allocation2 + $0x238] sm:$0xf0] }
  0x6d   :  { %1400 = vmatpush.bf16.msra.mxu0 %v3738_v58  ;;  %v5286_v58 = vld [vmem:[#allocation2 + $0x31c] sm:$0xf]  ;;  %v3874_v37 = vor.u32 %v5258_v19, %v3873_v18 }
  0x6e   :  { %1426 = vmatpush.bf16.msra.mxu2 %v3930_v1  ;;  %v3682_v1 = vor.u32 %v5210_v51, %v3681_v50  ;;  %v4203_v50 = vld [vmem:[#allocation2 + $0x4d4] sm:$0xf0]  ;;  %v4110_v51 = vor.u32 %v5316_v39, %v4107_v41  ;;  %v5282_v36 = vld [vmem:[#allocation2 + $0x2f8] sm:$0xf0]  ;;  %v5216_v39 = vld [vmem:[#allocation2 + $0xe8] sm:$0xf0] }
  0x6f   :  { %1413 = vmatpush.bf16.msra.mxu1 %v3834_v2  ;;  %1438 = vmatpush.bf16.msra.mxu3 %v4038_v9  ;;  %v4254_v2 = vor.u32 %v5352_v54, %v4251_v55  ;;  %v5322_v9 = vld [vmem:[#allocation2 + $0x43c] sm:$0xf]  ;;  %v4095_v55 = vld [vmem:[#allocation2 + $0x3fc] sm:$0xf0] }
  0x70   :  { %v5246_v19 = vld [vmem:[#allocation2 + $0x1d8] sm:$0xf0] }
  0x71   :  { %1401 = vmatpush.bf16.msra.mxu0 %v3726_v7  ;;  %v3990_v7 = vor.u32 %v5286_v58, %v3987_v59  ;;  %v3634_v58 = vor.u32 %v5198_v48, %v3633_v46  ;;  %v4206_v59 = vor.u32 %v5340_v49, %v4203_v50  ;;  %v4053_v46 = vld [vmem:[#allocation2 + $0x398] sm:$0xf]  ;;  %v5303_v48 = vld [vmem:[#allocation2 + $0x3a0] sm:$0xf0] }
  0x72   :  { %1427 = vmatpush.bf16.msra.mxu2 %v3918_v14  ;;  %v3777_v14 = vld [vmem:[#allocation2 + $0x170] sm:$0xf]  ;;  %v3957_v50 = vld [vmem:[#allocation2 + $0x2d8] sm:$0xf] }
  0x73   :  { %1414 = vmatpush.bf16.msra.mxu1 %v3822_v15  ;;  %1439 = vmatpush.bf16.msra.mxu3 %v4026_v24  ;;  %v5234_v15 = vld [vmem:[#allocation2 + $0x178] sm:$0xf0]  ;;  %v4134_v24 = vor.u32 %v5322_v9, %v4131_v13  ;;  %v3609_v9 = vld [vmem:[#allocation2 + $0x20] sm:$0xf]  ;;  %v4179_v13 = vld [vmem:[#allocation2 + $0x4a4] sm:$0xf0] }
  0x74   :  { %v3778_v27 = vor.u32 %v5234_v15, %v3777_v14  ;;  %v5307_v15 = vld [vmem:[#allocation2 + $0x3c4] sm:$0xf] }
  0x75   :  { %1402 = vmatpush.bf16.msra.mxu0 %v3714_v20  ;;  %v5346_v20 = vld [vmem:[#allocation2 + $0x4fc] sm:$0xf] }
  0x76   :  { %1428 = vmatpush.bf16.msra.mxu2 %v3906_v28  ;;  %v4119_v28 = vld [vmem:[#allocation2 + $0x42c] sm:$0xf0]  ;;  %v4230_v33 = vor.u32 %v5346_v20, %v4227_v21  ;;  %v3717_v20 = vld [vmem:[#allocation2 + $0xf8] sm:$0xf]  ;;  %v5219_v21 = vld [vmem:[#allocation2 + $0x100] sm:$0xf0] }
  0x77   :  { %1415 = vmatpush.bf16.msra.mxu1 %v3810_v29  ;;  %1440 = vmatpush.bf16.msra.mxu3 %v4014_v38  ;;  %v3765_v29 = vld [vmem:[#allocation2 + $0x158] sm:$0xf]  ;;  %v4122_v38 = vor.u32 %v5319_v26, %v4119_v28  ;;  %v5331_v26 = vld [vmem:[#allocation2 + $0x484] sm:$0xf]  ;;  %v5189_v28 = vld [vmem:[#allocation2 + $0x10] sm:$0xf0] }
  0x78   :  { %v3766_v40 = vor.u32 %v5231_v31, %v3765_v29  ;;  %v4167_v29 = vld [vmem:[#allocation2 + $0x48c] sm:$0xf0] }
  0x79   :  { %1403 = vmatpush.bf16.msra.mxu0 %v3702_v35  ;;  %v5201_v35 = vld [vmem:[#allocation2 + $0x70] sm:$0xf0]  ;;  %v4065_v31 = vld [vmem:[#allocation2 + $0x3b0] sm:$0xf]  ;;  %v4170_v41 = vor.u32 %v5331_v26, %v4167_v29  ;;  %v5270_v29 = vld [vmem:[#allocation2 + $0x298] sm:$0xf0] }
  0x7a   :  { %1429 = vmatpush.bf16.msra.mxu2 %v3894_v43  ;;  %v5228_v43 = vld [vmem:[#allocation2 + $0x148] sm:$0xf0]  ;;  %v4017_v26 = vld [vmem:[#allocation2 + $0x350] sm:$0xf] }
  0x7b   :  { %1416 = vmatpush.bf16.msra.mxu1 %v3798_v44  ;;  %1441 = vmatpush.bf16.msra.mxu3 %v4002_v56  ;;  %v3646_v44 = vor.u32 %v5201_v35, %v3645_v34  ;;  %v3754_v54 = vor.u32 %v5228_v43, %v3753_v42  ;;  %v3741_v56 = vld [vmem:[#allocation2 + $0x128] sm:$0xf]  ;;  %v3718_v34 = vor.u32 %v5219_v21, %v3717_v20  ;;  %v3969_v35 = vld [vmem:[#allocation2 + $0x2f0] sm:$0xf]  ;;  %v3861_v42 = vld [vmem:[#allocation2 + $0x218] sm:$0xf] }
  0x7c   :  { %v5255_v43 = vld [vmem:[#allocation2 + $0x220] sm:$0xf0]  ;;  %v4137_v20 = vld [vmem:[#allocation2 + $0x440] sm:$0xf]  ;;  %v5324_v21 = vld [vmem:[#allocation2 + $0x448] sm:$0xf0] }
  0x7d   :  { %1404 = vmatpush.bf16.msra.mxu0 %v3690_v53  ;;  %v5313_v53 = vld [vmem:[#allocation2 + $0x3f4] sm:$0xf] }
  0x7e   :  { %1430 = vmatpush.bf16.msra.mxu2 %v3882_v60  ;;  %v3621_v60 = vld [vmem:[#allocation2 + $0x38] sm:$0xf] }
  0x7f   :  { %1417 = vmatpush.bf16.msra.mxu1 %v3786_v62  ;;  %1442 = vmatpush.bf16.msra.mxu3 %v3990_v7  ;;  %v5195_v62 = vld [vmem:[#allocation2 + $0x40] sm:$0xf0] }
  0x80   :  { %1405 = vmatmul.bf16.vlgmr.msra.gmra.mxu0 %v5935_v61  ;;  %v3622_v7 = vor.u32 %v5195_v62, %v3621_v60  ;;  %v4054_v60 = vor.u32 %v5303_v48, %v4053_v46  ;;  %v4113_v46 = vld [vmem:[#allocation2 + $0x410] sm:$0xf]  ;;  %v5318_v48 = vld [vmem:[#allocation2 + $0x418] sm:$0xf0] }
  0x81   :  { %1449 = vmatpush.bf16.msrb.mxu0 %v4158_v57  ;;  %1431 = vmatmul.bf16.vlgmr.msra.gmra.mxu2 %v5943_v11  ;;  %v5225_v57 = vld [vmem:[#allocation2 + $0x130] sm:$0xf0] }
  0x82   :  { %1475 = vmatpush.bf16.msrb.mxu2 %v3682_v1  ;;  %1418 = vmatmul.bf16.vlgmr.msra.gmra.mxu1 %v5925_v47  ;;  %v4098_v1 = vor.u32 %v5313_v53, %v4095_v55  ;;  %v3742_v3 = vor.u32 %v5225_v57, %v3741_v56  ;;  %v3862_v53 = vor.u32 %v5255_v43, %v3861_v42  ;;  %v3693_v55 = vld [vmem:[#allocation2 + $0xc8] sm:$0xf]  ;;  %v5213_v56 = vld [vmem:[#allocation2 + $0xd0] sm:$0xf0]  ;;  %v5252_v57 = vld [vmem:[#allocation2 + $0x208] sm:$0xf0] }
  0x83   :  { %1462 = vmatpush.bf16.msrb.mxu1 %v4254_v2  ;;  %1443 = vmatpush.bf16.msra.mxu3 %v3978_v23  ;;  %v5310_v2 = vld [vmem:[#allocation2 + $0x3dc] sm:$0xf]  ;;  %v3610_v23 = vor.u32 %v5192_v10, %v3609_v9  ;;  %v5327_v9 = vld [vmem:[#allocation2 + $0x460] sm:$0xf0]  ;;  %v3801_v43 = vld [vmem:[#allocation2 + $0x1a0] sm:$0xf] }
  0x84   :  { %v4086_v14 = vor.u32 %v5310_v2, %v4083_v4  ;;  %v3945_v2 = vld [vmem:[#allocation2 + $0x2c0] sm:$0xf]  ;;  %v5267_v42 = vld [vmem:[#allocation2 + $0x280] sm:$0xf0] }
  0x85   :  { %1450 = vmatpush.bf16.msrb.mxu0 %v4146_v8  ;;  %v4194_v8 = vor.u32 %v5337_v63, %v4191_v0  ;;  %v4041_v63 = vld [vmem:[#allocation2 + $0x380] sm:$0xf]  ;;  %v5300_v0 = vld [vmem:[#allocation2 + $0x388] sm:$0xf0] }
  0x86   :  { %1476 = vmatpush.bf16.msrb.mxu2 %v3670_v16  ;;  %1444 = vmatmul.bf16.vlgmr.msra.gmra.mxu3 %v5955_v22  ;;  %v4071_v16 = vld [vmem:[#allocation2 + $0x3cc] sm:$0xf0]  ;;  %v4042_v10 = vor.u32 %v5300_v0, %v4041_v63  ;;  %v5315_v63 = vld [vmem:[#allocation2 + $0x400] sm:$0xf0] }
  0x87   :  { %1463 = vmatpush.bf16.msrb.mxu1 %v4242_v17  ;;  %1488 = vmatpush.bf16.msrb.mxu3 %v3778_v27  ;;  %v3730_v17 = vor.u32 %v5222_v6, %v3729_v5  ;;  %v3597_v27 = vld [vmem:[#allocation2 + $0x8] sm:$0xf] }
  0x88   :  { %v3837_v5 = vld [vmem:[#allocation2 + $0x1e8] sm:$0xf] }
  0x89   :  { %1451 = vmatpush.bf16.msrb.mxu0 %v4134_v24  ;;  %v4182_v24 = vor.u32 %v5334_v12, %v4179_v13  ;;  %v4029_v13 = vld [vmem:[#allocation2 + $0x368] sm:$0xf] }
  0x8a   :  { %1477 = vmatpush.bf16.msrb.mxu2 %v3658_v32  ;;  %v5306_v32 = vld [vmem:[#allocation2 + $0x3b8] sm:$0xf0] }
  0x8b   :  { %1464 = vmatpush.bf16.msrb.mxu1 %v4230_v33  ;;  %1489 = vmatpush.bf16.msrb.mxu3 %v3766_v40  ;;  %v4074_v33 = vor.u32 %v5307_v15, %v4071_v16  ;;  %v3598_v40 = vor.u32 %v5189_v28, %v3597_v27  ;;  %v3933_v15 = vld [vmem:[#allocation2 + $0x2a8] sm:$0xf]  ;;  %v5273_v16 = vld [vmem:[#allocation2 + $0x2b0] sm:$0xf0]  ;;  %v5294_v27 = vld [vmem:[#allocation2 + $0x358] sm:$0xf0] }
  0x8c   :  { %v3921_v28 = vld [vmem:[#allocation2 + $0x290] sm:$0xf] }
  0x8d   :  { %1452 = vmatpush.bf16.msrb.mxu0 %v4122_v38  ;;  %v3705_v38 = vld [vmem:[#allocation2 + $0xe0] sm:$0xf] }
  0x8e   :  { %1478 = vmatpush.bf16.msrb.mxu2 %v3646_v44  ;;  %v4066_v44 = vor.u32 %v5306_v32, %v4065_v31  ;;  %v3706_v49 = vor.u32 %v5216_v39, %v3705_v38  ;;  %v3813_v32 = vld [vmem:[#allocation2 + $0x1b8] sm:$0xf]  ;;  %v3922_v38 = vor.u32 %v5270_v29, %v3921_v28  ;;  %v4221_v28 = vld [vmem:[#allocation2 + $0x4e8] sm:$0xf]  ;;  %v5345_v29 = vld [vmem:[#allocation2 + $0x4f0] sm:$0xf0] }
  0x8f   :  { %1465 = vmatpush.bf16.msrb.mxu1 %v4218_v45  ;;  %1490 = vmatpush.bf16.msrb.mxu3 %v3754_v54  ;;  %v3970_v45 = vor.u32 %v5282_v36, %v3969_v35  ;;  %v3849_v54 = vld [vmem:[#allocation2 + $0x200] sm:$0xf]  ;;  %v4125_v35 = vld [vmem:[#allocation2 + $0x428] sm:$0xf]  ;;  %v5321_v36 = vld [vmem:[#allocation2 + $0x430] sm:$0xf0] }
  0x90   :  { %v3850_v4 = vor.u32 %v5252_v57, %v3849_v54  ;;  %v4005_v39 = vld [vmem:[#allocation2 + $0x338] sm:$0xf]  ;;  %v3897_v54 = vld [vmem:[#allocation2 + $0x260] sm:$0xf]  ;;  %v3789_v57 = vld [vmem:[#allocation2 + $0x188] sm:$0xf] }
  0x91   :  { %1453 = vmatpush.bf16.msrb.mxu0 %v4110_v51  ;;  %v5279_v51 = vld [vmem:[#allocation2 + $0x2e0] sm:$0xf0] }
  0x92   :  { %1479 = vmatpush.bf16.msrb.mxu2 %v3634_v58  ;;  %v4161_v58 = vld [vmem:[#allocation2 + $0x470] sm:$0xf]  ;;  %v3958_v62 = vor.u32 %v5279_v51, %v3957_v50  ;;  %v3993_v51 = vld [vmem:[#allocation2 + $0x320] sm:$0xf] }
  0x93   :  { %1466 = vmatpush.bf16.msrb.mxu1 %v4206_v59  ;;  %1491 = vmatpush.bf16.msrb.mxu3 %v3742_v3  ;;  %v5330_v59 = vld [vmem:[#allocation2 + $0x478] sm:$0xf0]  ;;  %v5276_v3 = vld [vmem:[#allocation2 + $0x2c8] sm:$0xf0] }
  0x94   :  { %v4162_v6 = vor.u32 %v5330_v59, %v4161_v58  ;;  %v3946_v12 = vor.u32 %v5276_v3, %v3945_v2  ;;  %v5237_v58 = vld [vmem:[#allocation2 + $0x190] sm:$0xf0]  ;;  %v4114_v59 = vor.u32 %v5318_v48, %v4113_v46  ;;  %v3981_v3 = vld [vmem:[#allocation2 + $0x308] sm:$0xf] }
  0x95   :  { %1454 = vmatpush.bf16.msrb.mxu0 %v4098_v1  ;;  %v3694_v1 = vor.u32 %v5213_v56, %v3693_v55  ;;  %v5264_v55 = vld [vmem:[#allocation2 + $0x268] sm:$0xf0]  ;;  %v4173_v46 = vld [vmem:[#allocation2 + $0x488] sm:$0xf]  ;;  %v5333_v48 = vld [vmem:[#allocation2 + $0x490] sm:$0xf0] }
  0x96   :  { %1480 = vmatpush.bf16.msrb.mxu2 %v3622_v7  ;;  %v5249_v7 = vld [vmem:[#allocation2 + $0x1f0] sm:$0xf0]  ;;  %v3898_v2 = vor.u32 %v5264_v55, %v3897_v54 }
  0x97   :  { %1467 = vmatpush.bf16.msrb.mxu1 %v4194_v8  ;;  %1492 = vmatpush.bf16.msrb.mxu3 %v3730_v17  ;;  %v4149_v8 = vld [vmem:[#allocation2 + $0x458] sm:$0xf]  ;;  %v3825_v17 = vld [vmem:[#allocation2 + $0x1d0] sm:$0xf] }
  0x98   :  { %v4150_v18 = vor.u32 %v5327_v9, %v4149_v8  ;;  %v3826_v31 = vor.u32 %v5246_v19, %v3825_v17  ;;  %v4077_v19 = vld [vmem:[#allocation2 + $0x3c8] sm:$0xf]  ;;  %v5369_v55 = vld [vmem:[#allocation4 + $0x70] sm:$0xff] }
  0x99   :  { %1455 = vmatpush.bf16.msrb.mxu0 %v4086_v14  ;;  %v5297_v14 = vld [vmem:[#allocation2 + $0x370] sm:$0xf0] }
  0x9a   :  { %1481 = vmatpush.bf16.msrb.mxu2 %v3610_v23  ;;  %v4030_v23 = vor.u32 %v5297_v14, %v4029_v13  ;;  %v4245_v14 = vld [vmem:[#allocation2 + $0x518] sm:$0xf] }
  0x9b   :  { %1468 = vmatpush.bf16.msrb.mxu1 %v4182_v24  ;;  %1493 = vmatpush.bf16.msrb.mxu3 %v3718_v34  ;;  %v3934_v24 = vor.u32 %v5273_v16, %v3933_v15  ;;  %v5243_v34 = vld [vmem:[#allocation2 + $0x1c0] sm:$0xf0] }
  0x9c   :  { %v5351_v15 = vld [vmem:[#allocation2 + $0x520] sm:$0xf0] }
  0x9d   :  { %1456 = vmatpush.bf16.msrb.mxu0 %v4074_v33  ;;  %v4138_v33 = vor.u32 %v5324_v21, %v4137_v20  ;;  %v5309_v20 = vld [vmem:[#allocation2 + $0x3d0] sm:$0xf0]  ;;  %v4233_v21 = vld [vmem:[#allocation2 + $0x500] sm:$0xf] }
  0x9e   :  { %1482 = vmatpush.bf16.msrb.mxu2 %v3598_v40  ;;  %v5291_v40 = vld [vmem:[#allocation2 + $0x340] sm:$0xf0] }
  0x9f   :  { %1469 = vmatpush.bf16.msrb.mxu1 %v4170_v41  ;;  %1494 = vmatpush.bf16.msrb.mxu3 %v3706_v49  ;;  %v3909_v41 = vld [vmem:[#allocation2 + $0x278] sm:$0xf]  ;;  %v4006_v49 = vor.u32 %v5291_v40, %v4005_v39  ;;  %v4185_v40 = vld [vmem:[#allocation2 + $0x4a0] sm:$0xf] }
  0xa0   :  { %1457 = vmatmul.bf16.vlgmr.msrb.gmra.mxu0 %v5959_v30  ;;  %v3910_v50 = vor.u32 %v5267_v42, %v3909_v41  ;;  %v5336_v41 = vld [vmem:[#allocation2 + $0x4a8] sm:$0xf0]  ;;  %v5980_v42 = vld [vmem:[%s6081_s2] sm:$0x7] }
  0xa1   :  { %1501 = vmatpush.bf16.msra.mxu0 %v3874_v37  ;;  %1483 = vmatmul.bf16.vlgmr.msrb.gmra.mxu2 %v5930_v52  ;;  %v3838_v52 = vor.u32 %v5249_v7, %v3837_v5  ;;  %v4018_v37 = vor.u32 %v5294_v27, %v4017_v26  ;;  %v3885_v5 = vld [vmem:[#allocation2 + $0x248] sm:$0xf]  ;;  %v3790_v7 = vor.u32 %v5237_v58, %v3789_v57  ;;  %v5355_v58 = vld [vmem:[#allocation4] sm:$0xff] }
  0xa2   :  { %1527 = vmatpush.bf16.msra.mxu2 %v4066_v44  ;;  %1470 = vmatmul.bf16.vlgmr.msrb.gmra.mxu1 %v5957_v25  ;;  %v4126_v44 = vor.u32 %v5321_v36, %v4125_v35  ;;  %v4078_v26 = vor.u32 %v5309_v20, %v4077_v19  ;;  %v4197_v36 = vld [vmem:[#allocation2 + $0x4b8] sm:$0xf]  ;;  %v5363_v19 = vld [vmem:[#allocation4 + $0x40] sm:$0xff]  ;;  %v392_v20 = vperm.slane %v5980_v42, 1 }
  0xa3   :  { %1514 = vmatpush.bf16.msra.mxu1 %v3970_v45  ;;  %1495 = vmatpush.bf16.msrb.mxu3 %v3694_v1  ;;  %v5240_v45 = vld [vmem:[#allocation2 + $0x1a8] sm:$0xf0]  ;;  %v5354_v1 = vld [vmem:[#allocation2 + $0x538] sm:$0xf0] }
  0xa4   :  { %v3802_v56 = vor.u32 %v5240_v45, %v3801_v43  ;;  %v4186_v43 = vor.u32 %v5336_v41, %v4185_v40  ;;  %v391_v45 = vperm.slane %v5980_v42, 0 }
  0xa5   :  { %1502 = vmatpush.bf16.msra.mxu0 %v3862_v53  ;;  %v5288_v53 = vld [vmem:[#allocation2 + $0x328] sm:$0xf0] }
  0xa6   :  { %1528 = vmatpush.bf16.msra.mxu2 %v4054_v60  ;;  %1496 = vmatmul.bf16.vlgmr.msrb.gmra.mxu3 %v5935_v61  ;;  %v3814_v61 = vor.u32 %v5243_v34, %v3813_v32  ;;  %v4257_v60 = vld [vmem:[#allocation2 + $0x530] sm:$0xf]  ;;  %v3994_v0 = vor.u32 %v5288_v53, %v3993_v51  ;;  %v4222_v32 = vor.u32 %v5345_v29, %v4221_v28  ;;  %v5342_v34 = vld [vmem:[#allocation2 + $0x4d8] sm:$0xf0] }
  0xa7   :  { %1515 = vmatpush.bf16.msra.mxu1 %v3958_v62  ;;  %1540 = vmatpush.bf16.msra.mxu3 %v4162_v6  ;;  %v4101_v62 = vld [vmem:[#allocation2 + $0x3f8] sm:$0xf]  ;;  %v5261_v6 = vld [vmem:[#allocation2 + $0x250] sm:$0xf0]  ;;  %v4258_v9 = vor.u32 %v5354_v1, %v4257_v60  ;;  %v4174_v53 = vor.u32 %v5333_v48, %v4173_v46  ;;  %v5368_v1 = vld [vmem:[#allocation4 + $0x68] sm:$0xff] }
  0xa8   :  { %v4102_v8 = vor.u32 %v5315_v63, %v4101_v62  ;;  %v3886_v16 = vor.u32 %v5261_v6, %v3885_v5  ;;  %v5370_v51 = vld [vmem:[#allocation4 + $0x78] sm:$0xff]  ;;  %v5373_v48 = vld [vmem:[#allocation4 + $0x90] sm:$0xff] }
  0xa9   :  { %1503 = vmatpush.bf16.msra.mxu0 %v3850_v4  ;;  %v5285_v4 = vld [vmem:[#allocation2 + $0x310] sm:$0xf0] }
  0xaa   :  { %1529 = vmatpush.bf16.msra.mxu2 %v4042_v10  ;;  %v4089_v10 = vld [vmem:[#allocation2 + $0x3e0] sm:$0xf]  ;;  %v3982_v13 = vor.u32 %v5285_v4, %v3981_v3 }
  0xab   :  { %1516 = vmatpush.bf16.msra.mxu1 %v3946_v12  ;;  %1541 = vmatpush.bf16.msra.mxu3 %v4150_v18  ;;  %v5312_v12 = vld [vmem:[#allocation2 + $0x3e8] sm:$0xf0]  ;;  %v4246_v18 = vor.u32 %v5351_v15, %v4245_v14  ;;  %v5367_v4 = vld [vmem:[#allocation4 + $0x60] sm:$0xff] }
  0xac   :  { %v4090_v17 = vor.u32 %v5312_v12, %v4089_v10 }
  0xad   :  { %1504 = vmatpush.bf16.msra.mxu0 %v3838_v52  ;;  %v5362_v52 = vld [vmem:[#allocation4 + $0x38] sm:$0xff] }
  0xae   :  { %1530 = vmatpush.bf16.msra.mxu2 %v4030_v23  ;;  %v5348_v23 = vld [vmem:[#allocation2 + $0x508] sm:$0xf0] }
  0xaf   :  { %1517 = vmatpush.bf16.msra.mxu1 %v3934_v24  ;;  %1542 = vmatpush.bf16.msra.mxu3 %v4138_v33  ;;  %v5361_v24 = vld [vmem:[#allocation4 + $0x30] sm:$0xff]  ;;  %v4234_v27 = vor.u32 %v5348_v23, %v4233_v21 }
  0xb0   :  { %v4209_v33 = vld [vmem:[#allocation2 + $0x4d0] sm:$0xf] }
  0xb1   :  { %1505 = vmatpush.bf16.msra.mxu0 %v3826_v31  ;;  %v5360_v31 = vld [vmem:[#allocation4 + $0x28] sm:$0xff]  ;;  %v4210_v35 = vor.u32 %v5342_v34, %v4209_v33 }
  0xb2   :  { %1531 = vmatpush.bf16.msra.mxu2 %v4018_v37  ;;  %v5339_v37 = vld [vmem:[#allocation2 + $0x4c0] sm:$0xf0] }
  0xb3   :  { %1518 = vmatpush.bf16.msra.mxu1 %v3922_v38  ;;  %1543 = vmatpush.bf16.msra.mxu3 %v4126_v44  ;;  %v4198_v39 = vor.u32 %v5339_v37, %v4197_v36 }
  0xb5   :  { %1506 = vmatpush.bf16.msra.mxu0 %v3814_v61  ;;  %v5357_v61 = vld [vmem:[#allocation4 + $0x10] sm:$0xff] }
  0xb6   :  { %1532 = vmatpush.bf16.msra.mxu2 %v4006_v49 }
  0xb7   :  { %1519 = vmatpush.bf16.msra.mxu1 %v3910_v50  ;;  %1544 = vmatpush.bf16.msra.mxu3 %v4114_v59  ;;  %v5356_v50 = vld [vmem:[#allocation4 + $0x8] sm:$0xff] }
  0xb9   :  { %1507 = vmatpush.bf16.msra.mxu0 %v3802_v56 }
  0xba   :  { %1533 = vmatpush.bf16.msra.mxu2 %v3994_v0 }
  0xbb   :  { %1520 = vmatpush.bf16.msra.mxu1 %v3898_v2  ;;  %1545 = vmatpush.bf16.msra.mxu3 %v4102_v8 }
  0xbd   :  { %1508 = vmatpush.bf16.msra.mxu0 %v3790_v7  ;;  %v5366_v7 = vld [vmem:[#allocation4 + $0x58] sm:$0xff] }
  0xbe   :  { %1534 = vmatpush.bf16.msra.mxu2 %v3982_v13 }
  0xbf   :  { %1521 = vmatpush.bf16.msra.mxu1 %v3886_v16  ;;  %1546 = vmatpush.bf16.msra.mxu3 %v4090_v17  ;;  %v1315_v38 = vpop.f32.mrf.mxu1 }
  0xc0   :  { %1509 = vmatmul.bf16.vlgmr.msra.gmra.mxu0 %v5925_v47  ;;  %v5359_v47 = vld [vmem:[#allocation4 + $0x20] sm:$0xff] }
  0xc1   :  { %1553 = vmatpush.bf16.msrb.mxu0 %v4258_v9  ;;  %1535 = vmatmul.bf16.vlgmr.msra.gmra.mxu2 %v5955_v22  ;;  %v1302_v22 = vpop.f32.mrf.mxu0 }
  0xc2   :  { %1522 = vmatmul.bf16.vlgmr.msra.gmra.mxu1 %v5943_v11  ;;  %v5358_v11 = vld [vmem:[#allocation4 + $0x18] sm:$0xff]  ;;  %1781 = vmatpush.bf16.msrb.mxu2 %v5370_v51  ;;  %v1303_v56 = vadd.f32 %v1302_v22, %v391_v45  ;;  %v5377_v22 = vld [vmem:[#allocation4 + $0xb0] sm:$0xff] }
  0xc3   :  { %1768 = vmatpush.bf16.msrb.mxu1 %v5362_v52  ;;  %1547 = vmatpush.bf16.msra.mxu3 %v4078_v26  ;;  %v5364_v52 = vld [vmem:[#allocation4 + $0x48] sm:$0xff] }
  0xc4   :  { %v1316_v59 = vadd.f32 %v1315_v38, %v1303_v56 }
  0xc5   :  { %1554 = vmatpush.bf16.msrb.mxu0 %v4246_v18 }
  0xc6   :  { %1548 = vmatmul.bf16.vlgmr.msra.gmra.mxu3 %v5959_v30  ;;  %v1328_v30 = vpop.f32.mrf.mxu2  ;;  %1782 = vmatpush.bf16.msrb.mxu2 %v5369_v55  ;;  %v393_v55 = vperm.slane %v5980_v42, 2 }
  0xc7   :  { %1769 = vmatpush.bf16.msrb.mxu1 %v5361_v24  ;;  %v1317_v49 = vpop.f32.mrf.mxu1  ;;  %v1329_v62 = vadd.f32 %v1328_v30, %v1316_v59 }
  0xc9   :  { %1555 = vmatpush.bf16.msrb.mxu0 %v4234_v27  ;;  %v1304_v44 = vpop.f32.mrf.mxu0  ;;  %v1341_v54 = vpop.f32.mrf.mxu3 }
  0xca   :  { %v1342_v63 = vadd.f32 %v1341_v54, %v1329_v62  ;;  %1783 = vmatpush.bf16.msrb.mxu2 %v5368_v1  ;;  %v5374_v44 = vld [vmem:[#allocation4 + $0x98] sm:$0xff] }
  0xcb   :  { %1770 = vmatpush.bf16.msrb.mxu1 %v5360_v31 }
  0xcd   :  { %1556 = vmatpush.bf16.msrb.mxu0 %v4222_v32 }
  0xce   :  { %v1330_v57 = vpop.f32.mrf.mxu2  ;;  %1784 = vmatpush.bf16.msrb.mxu2 %v5367_v4 }
  0xcf   :  { %1771 = vmatpush.bf16.msrb.mxu1 %v5359_v47  ;;  %v5378_v47 = vld [vmem:[#allocation4 + $0xb8] sm:$0xff] }
  0xd0   :  { %1794 = vmatpush.bf16.msrb.mxu3 %v5378_v47 }
  0xd1   :  { %1557 = vmatpush.bf16.msrb.mxu0 %v4210_v35  ;;  %v1343_v60 = vpop.f32.mrf.mxu3 }
  0xd2   :  { %1785 = vmatpush.bf16.msrb.mxu2 %v5366_v7 }
  0xd3   :  { %1772 = vmatpush.bf16.msrb.mxu1 %v5358_v11 }
  0xd4   :  { %1795 = vmatpush.bf16.msrb.mxu3 %v5377_v22 }
  0xd5   :  { %1558 = vmatpush.bf16.msrb.mxu0 %v4198_v39  ;;  %v5376_v39 = vld [vmem:[#allocation4 + $0xa8] sm:$0xff] }
  0xd7   :  { %1773 = vmatpush.bf16.msrb.mxu1 %v5357_v61  ;;  %v5375_v61 = vld [vmem:[#allocation4 + $0xa0] sm:$0xff] }
  0xd8   :  { %1796 = vmatpush.bf16.msrb.mxu3 %v5376_v39 }
  0xd9   :  { %1559 = vmatpush.bf16.msrb.mxu0 %v4186_v43 }
  0xdb   :  { %1774 = vmatpush.bf16.msrb.mxu1 %v5356_v50  ;;  %v5372_v50 = vld [vmem:[#allocation4 + $0x88] sm:$0xff] }
  0xdc   :  { %1797 = vmatpush.bf16.msrb.mxu3 %v5375_v61 }
  0xdd   :  { %1560 = vmatpush.bf16.msrb.mxu0 %v4174_v53  ;;  %v1354_v0 = vpop.f32.mrf.mxu0  ;;  %v5371_v53 = vld [vmem:[#allocation4 + $0x80] sm:$0xff] }
  0xde   :  { %v1355_v2 = vadd.f32 %v1354_v0, %v1342_v63 }
  0xdf   :  { %1775 = vmatpush.bf16.msrb.mxu1 %v5355_v58  ;;  %v1367_v3 = vpop.f32.mrf.mxu1 }
  0xe0   :  { %1561 = vmatmul.bf16.vlgmr.msrb.gmra.mxu0 %v5957_v25  ;;  %v1368_v5 = vadd.f32 %v1367_v3, %v1355_v2  ;;  %v5365_v25 = vld [vmem:[#allocation4 + $0x50] sm:$0xff]  ;;  %1798 = vmatpush.bf16.msrb.mxu3 %v5374_v44 }
  0xe1   :  { %1786 = vmatpush.bf16.msrb.mxu2 %v5365_v25  ;;  %v5384_v25 = vld [vmem:[%s6084_s5 + $0x28] sm:$0xff]  ;;  %v4493_v44 = vld [vmem:[#allocation10 + $0x90] sm:$0xf] }
  0xe4   :  { %v1380_v6 = vpop.f32.mrf.mxu2  ;;  %1799 = vmatpush.bf16.msrb.mxu3 %v5373_v48 }
  0xe5   :  { %v1381_v8 = vadd.f32 %v1380_v6, %v1368_v5  ;;  %v1356_v9 = vpop.f32.mrf.mxu0  ;;  %1787 = vmatpush.bf16.msrb.mxu2 %v5364_v52 }
  0xe7   :  { %v1566_v10 = vmax.f32 %v1381_v8, 0.0  ;;  %v1369_v12 = vpop.f32.mrf.mxu1 }
  0xe8   :  { %1800 = vmatpush.bf16.msrb.mxu3 %v5372_v50  ;;  %v5386_v12 = vld [vmem:[%s6084_s5 + $0x38] sm:$0xff] }
  0xe9   :  { %v1569_v13 = vpack.c.bf16 %v1566_v10, %v1566_v10  ;;  %v1393_v14 = vpop.f32.mrf.mxu3  ;;  %1788 = vmatpush.bf16.msrb.mxu2 %v5363_v19  ;;  %1877 = vmatpush.bf16.msra.mxu0 %v5386_v12  ;;  %v5379_v19 = vld [vmem:[%s6084_s5] sm:$0xff]  ;;  %v4501_v50 = vld [vmem:[#allocation10 + $0x98] sm:$0xf]  ;;  %v5404_v12 = vld [vmem:[#allocation10 + $0x4c] sm:$0xf] }
  0xea   :  { %v1394_v24 = vadd.f32 %v1393_v14, %v392_v20  ;;  %v5383_v14 = vld [vmem:[%s6084_s5 + $0x20] sm:$0xff] }
  0xeb   :  { %1776 = vmatmul.bf16.vlgmr.msrb.gmra.mxu1 %v1569_v13  ;;  %v5385_v13 = vld [vmem:[%s6084_s5 + $0x30] sm:$0xff]  ;;  %v5394_v20 = vld [vmem:[#allocation9 + $0x38] sm:$0xff] }
  0xec   :  { %v1382_v15 = vpop.f32.mrf.mxu2  ;;  %1801 = vmatpush.bf16.msrb.mxu3 %v5371_v53  ;;  %1960 = vmatpush.bf16.msra.mxu1 %v5394_v20  ;;  %v4447_v20 = vld [vmem:[#allocation10 + $0x3c] sm:$0xf0] }
  0xed   :  { %1878 = vmatpush.bf16.msra.mxu0 %v5385_v13  ;;  %v5382_v15 = vld [vmem:[%s6084_s5 + $0x18] sm:$0xff] }
  0xee   :  { %v4459_v13 = vld [vmem:[#allocation10 + $0x54] sm:$0xf0] }
  0xf1   :  { %v1395_v16 = vpop.f32.mrf.mxu3  ;;  %1879 = vmatpush.bf16.msra.mxu0 %v5384_v25  ;;  %v4465_v25 = vld [vmem:[#allocation10 + $0x50] sm:$0xf] }
  0xf2   :  { %v5381_v16 = vld [vmem:[%s6084_s5 + $0x10] sm:$0xff] }
  0xf5   :  { %1880 = vmatpush.bf16.msra.mxu0 %v5383_v14  ;;  %v5406_v14 = vld [vmem:[#allocation10 + $0x58] sm:$0xf0] }
  0xf9   :  { %1881 = vmatpush.bf16.msra.mxu0 %v5382_v15 }
  0xfd   :  { %v1406_v17 = vpop.f32.mrf.mxu0  ;;  %1882 = vmatpush.bf16.msra.mxu0 %v5381_v16  ;;  %v4462_v16 = vor.u32 %v5404_v12, %v4459_v13  ;;  %v5077_v13 = vld [vmem:[#allocation12 + $0x460] sm:$0xf] }
  0xfe   :  { %v1407_v27 = vadd.f32 %v1406_v17, %v1394_v24  ;;  %v5391_v24 = vld [vmem:[#allocation9 + $0x20] sm:$0xff] }
  0xff   :  { %v1419_v18 = vpop.f32.mrf.mxu1 }
 0x100   :  { %v1420_v31 = vadd.f32 %v1419_v18, %v1407_v27  ;;  %v5380_v18 = vld [vmem:[%s6084_s5 + $0x8] sm:$0xff]  ;;  %v5600_v27 = vld [vmem:[#allocation6] ss:$0 sm:$0xff] }
 0x101   :  { %1883 = vmatpush.bf16.msra.mxu0 %v5380_v18  ;;  %v5402_v18 = vld [vmem:[#allocation10 + $0x38] sm:$0xf0] }
 0x104   :  { %v1432_v21 = vpop.f32.mrf.mxu2 }
 0x105   :  { %v1408_v23 = vpop.f32.mrf.mxu0  ;;  %v1433_v32 = vadd.f32 %v1432_v21, %v1420_v31  ;;  %1884 = vmatpush.bf16.msra.mxu0 %v5379_v19  ;;  %v5393_v21 = vld [vmem:[#allocation9 + $0x30] sm:$0xff]  ;;  %v5388_v31 = vld [vmem:[#allocation9 + $0x8] sm:$0xff] }
 0x106   :  { %1961 = vmatpush.bf16.msra.mxu1 %v5393_v21  ;;  %v5392_v23 = vld [vmem:[#allocation9 + $0x28] sm:$0xff]  ;;  %v5401_v19 = vld [vmem:[#allocation10 + $0x34] sm:$0xf]  ;;  %v4453_v21 = vld [vmem:[#allocation10 + $0x38] sm:$0xf] }
 0x107   :  { %v1421_v26 = vpop.f32.mrf.mxu1 }
 0x108   :  { %v5390_v26 = vld [vmem:[#allocation9 + $0x18] sm:$0xff] }
 0x109   :  { %v1445_v28 = vpop.f32.mrf.mxu3 }
 0x10a   :  { %v1446_v34 = vadd.f32 %v1445_v28, %v1433_v32  ;;  %1962 = vmatpush.bf16.msra.mxu1 %v5392_v23  ;;  %v5389_v28 = vld [vmem:[#allocation9 + $0x10] sm:$0xff]  ;;  %v5403_v23 = vld [vmem:[#allocation10 + $0x40] sm:$0xf0] }
 0x10c   :  { %v1434_v29 = vpop.f32.mrf.mxu2 }
 0x10e   :  { %1963 = vmatpush.bf16.msra.mxu1 %v5391_v24 }
 0x111   :  { %v1447_v33 = vpop.f32.mrf.mxu3 }
 0x112   :  { %1964 = vmatpush.bf16.msra.mxu1 %v5390_v26  ;;  %v4450_v26 = vor.u32 %v5401_v19, %v4447_v20  ;;  %v5454_v19 = vld [vmem:[#allocation12 + $0x11c] sm:$0xf]  ;;  %v4659_v20 = vld [vmem:[#allocation12 + $0x134] sm:$0xf0] }
 0x116   :  { %1965 = vmatpush.bf16.msra.mxu1 %v5389_v28  ;;  %v5601_v28 = vld [vmem:[#allocation7] ss:$0 sm:$0xff] }
 0x11a   :  { %1966 = vmatpush.bf16.msra.mxu1 %v5388_v31 }
 0x11d   :  { %v1458_v35 = vpop.f32.mrf.mxu0 }
 0x11e   :  { %v1459_v36 = vadd.f32 %v1458_v35, %v1446_v34 }
 0x11f   :  { %v1471_v37 = vpop.f32.mrf.mxu1 }
 0x120   :  { %v1472_v38 = vadd.f32 %v1471_v37, %v1459_v36  ;;  %v5387_v36 = vld [vmem:[#allocation9] sm:$0xff]  ;;  %v4505_v37 = vld [vmem:[#allocation10 + $0xa8] sm:$0xf] }
 0x121   :  { %1967 = vmatpush.bf16.msra.mxu1 %v5387_v36  ;;  %v4435_v36 = vld [vmem:[#allocation10 + $0x24] sm:$0xf0] }
 0x122   :  { %v1567_v11 = vmax.f32 %v1472_v38, 0.0  ;;  %v5417_v38 = vld [vmem:[#allocation10 + $0xb0] sm:$0xf0] }
 0x123   :  { %v4506_v39 = vor.u32 %v5417_v38, %v4505_v37  ;;  %v4441_v37 = vld [vmem:[#allocation10 + $0x20] sm:$0xf]  ;;  %v5400_v38 = vld [vmem:[#allocation10 + $0x28] sm:$0xf0] }
 0x124   :  { %v1570_v40 = vpack.c.bf16 %v1567_v11, %v1567_v11  ;;  %v1484_v41 = vpop.f32.mrf.mxu2  ;;  %v5416_v11 = vld [vmem:[#allocation10 + $0xac] sm:$0xf] }
 0x125   :  { %v1460_v30 = vpop.f32.mrf.mxu0  ;;  %v1485_v57 = vadd.f32 %v1484_v41, %v393_v55  ;;  %v4513_v41 = vld [vmem:[#allocation10 + $0xb0] sm:$0xf]  ;;  %2143 = vmatpush.bf16.msra.mxu2 %v4506_v39  ;;  %v4481_v55 = vld [vmem:[#allocation10 + $0x78] sm:$0xf]  ;;  %v4442_v39 = vor.u32 %v5400_v38, %v4441_v37  ;;  %v4825_v38 = vld [vmem:[#allocation12 + $0x268] sm:$0xf] }
 0x126   :  { %1789 = vmatmul.bf16.vlgmr.msrb.gmra.mxu2 %v1570_v40  ;;  %v4507_v40 = vld [vmem:[#allocation10 + $0xb4] sm:$0xf0]  ;;  %v5418_v30 = vld [vmem:[#allocation10 + $0xb8] sm:$0xf0] }
 0x127   :  { %v1473_v43 = vpop.f32.mrf.mxu1  ;;  %v4510_v61 = vor.u32 %v5416_v11, %v4507_v40  ;;  %v4421_v40 = vld [vmem:[#allocation10] sm:$0xf] }
 0x128   :  { %v4514_v43 = vor.u32 %v5418_v30, %v4513_v41  ;;  %v5396_v41 = vld [vmem:[#allocation10 + $0x8] sm:$0xf0]  ;;  %v5395_v30 = vld [vmem:[#allocation10 + $0x4] sm:$0xf] }
 0x129   :  { %v1497_v45 = vpop.f32.mrf.mxu3  ;;  %2156 = vmatpush.bf16.msra.mxu3 %v4510_v61  ;;  %v4422_v61 = vor.u32 %v5396_v41, %v4421_v40  ;;  %v5440_v40 = vld [vmem:[#allocation12 + $0xac] sm:$0xf]  ;;  %v4603_v41 = vld [vmem:[#allocation12 + $0xc4] sm:$0xf0] }
 0x12a   :  { %v1498_v60 = vadd.f32 %v1497_v45, %v1485_v57  ;;  %v5414_v45 = vld [vmem:[#allocation10 + $0x98] sm:$0xf0]  ;;  %2169 = vmatpush.bf16.msrb.mxu0 %v4514_v43  ;;  %v4423_v43 = vld [vmem:[#allocation10 + $0xc] sm:$0xf0] }
 0x12b   :  { %v4494_v48 = vor.u32 %v5414_v45, %v4493_v44  ;;  %v5410_v57 = vld [vmem:[#allocation10 + $0x7c] sm:$0xf]  ;;  %v4429_v44 = vld [vmem:[#allocation10 + $0x8] sm:$0xf]  ;;  %v5397_v45 = vld [vmem:[#allocation10 + $0x10] sm:$0xf0] }
 0x12c   :  { %v1486_v46 = vpop.f32.mrf.mxu2 }
 0x12d   :  { %v5413_v46 = vld [vmem:[#allocation10 + $0x94] sm:$0xf]  ;;  %2144 = vmatpush.bf16.msra.mxu2 %v4494_v48  ;;  %v4430_v48 = vor.u32 %v5397_v45, %v4429_v44  ;;  %v4573_v45 = vld [vmem:[#allocation12 + $0x70] sm:$0xf] }
 0x131   :  { %v1499_v49 = vpop.f32.mrf.mxu3 }
 0x132   :  { %v4495_v49 = vld [vmem:[#allocation10 + $0x9c] sm:$0xf0] }
 0x133   :  { %v4498_v53 = vor.u32 %v5413_v46, %v4495_v49  ;;  %v4426_v46 = vor.u32 %v5395_v30, %v4423_v43  ;;  %v5161_v49 = vld [vmem:[#allocation12 + $0x508] sm:$0xf]  ;;  %v5021_v30 = vld [vmem:[#allocation12 + $0x3f0] sm:$0xf] }
 0x135   :  { %2157 = vmatpush.bf16.msra.mxu3 %v4498_v53 }
 0x13d   :  { %v1510_v51 = vpop.f32.mrf.mxu0 }
 0x13e   :  { %v1511_v0 = vadd.f32 %v1510_v51, %v1498_v60  ;;  %v5415_v51 = vld [vmem:[#allocation10 + $0xa0] sm:$0xf0]  ;;  %v5412_v60 = vld [vmem:[#allocation10 + $0x88] sm:$0xf0] }
 0x13f   :  { %v1523_v54 = vpop.f32.mrf.mxu1 }
 0x140   :  { %v1524_v1 = vadd.f32 %v1523_v54, %v1511_v0  ;;  %v4502_v54 = vor.u32 %v5415_v51, %v4501_v50  ;;  %v5583_v50 = vld [vmem:[#allocation12 + $0x520] sm:$0xf0]  ;;  %v5133_v51 = vld [vmem:[#allocation12 + $0x4d0] sm:$0xf] }
 0x141   :  { %v5162_v53 = vor.u32 %v5583_v50, %v5161_v49  ;;  %v4797_v49 = vld [vmem:[#allocation12 + $0x230] sm:$0xf]  ;;  %v5492_v50 = vld [vmem:[#allocation12 + $0x248] sm:$0xf0] }
 0x142   :  { %2170 = vmatpush.bf16.msrb.mxu0 %v4502_v54  ;;  %v5576_v54 = vld [vmem:[#allocation12 + $0x4e8] sm:$0xf0] }
 0x144   :  { %v1536_v56 = vpop.f32.mrf.mxu2 }
 0x145   :  { %v1512_v58 = vpop.f32.mrf.mxu0  ;;  %v1537_v3 = vadd.f32 %v1536_v56, %v1524_v1  ;;  %v5411_v56 = vld [vmem:[#allocation10 + $0x80] sm:$0xf0]  ;;  %v4469_v1 = vld [vmem:[#allocation10 + $0x60] sm:$0xf] }
 0x146   :  { %v4483_v58 = vld [vmem:[#allocation10 + $0x84] sm:$0xf0] }
 0x147   :  { %v1525_v59 = vpop.f32.mrf.mxu1 }
 0x148   :  { %v4489_v59 = vld [vmem:[#allocation10 + $0x80] sm:$0xf] }
 0x149   :  { %v1549_v62 = vpop.f32.mrf.mxu3  ;;  %v4490_v0 = vor.u32 %v5412_v60, %v4489_v59  ;;  %v5527_v59 = vld [vmem:[#allocation12 + $0x360] sm:$0xf0]  ;;  %v5468_v60 = vld [vmem:[#allocation12 + $0x18c] sm:$0xf] }
 0x14a   :  { %v1550_v4 = vadd.f32 %v1549_v62, %v1537_v3  ;;  %v4482_v62 = vor.u32 %v5411_v56, %v4481_v55  ;;  %v5407_v3 = vld [vmem:[#allocation10 + $0x64] sm:$0xf]  ;;  %v4713_v55 = vld [vmem:[#allocation12 + $0x188] sm:$0xf] }
 0x14b   :  { %2171 = vmatpush.bf16.msrb.mxu0 %v4490_v0  ;;  %v5471_v56 = vld [vmem:[#allocation12 + $0x1a0] sm:$0xf0]  ;;  %v4715_v0 = vld [vmem:[#allocation12 + $0x1a4] sm:$0xf0] }
 0x14c   :  { %v1538_v63 = vpop.f32.mrf.mxu2  ;;  %2145 = vmatpush.bf16.msra.mxu2 %v4482_v62  ;;  %v5134_v62 = vor.u32 %v5576_v54, %v5133_v51  ;;  %v4575_v54 = vld [vmem:[#allocation12 + $0x8c] sm:$0xf0] }
 0x14d   :  { %v4486_v63 = vor.u32 %v5410_v57, %v4483_v58  ;;  %v4714_v57 = vor.u32 %v5471_v56, %v4713_v55  ;;  %v4937_v58 = vld [vmem:[#allocation12 + $0x348] sm:$0xf]  ;;  %v4993_v55 = vld [vmem:[#allocation12 + $0x3b8] sm:$0xf]  ;;  %v5541_v56 = vld [vmem:[#allocation12 + $0x3d0] sm:$0xf0] }
 0x14f   :  { %2158 = vmatpush.bf16.msra.mxu3 %v4486_v63  ;;  %v4938_v63 = vor.u32 %v5527_v59, %v4937_v58  ;;  %3260 = vmatpush.bf16.msrb.mxu1 %v4714_v57  ;;  %v5602_v58 = vld [vmem:[%s6087_s8] ss:$0 sm:$0xff]  ;;  %v4798_v59 = vor.u32 %v5492_v50, %v4797_v49  ;;  %v4883_v50 = vld [vmem:[#allocation12 + $0x2f4] sm:$0xf0] }
 0x151   :  { %v1551_v2 = vpop.f32.mrf.mxu3 }
 0x152   :  { %v5408_v2 = vld [vmem:[#allocation10 + $0x68] sm:$0xf0] }
 0x15d   :  { %v1562_v5 = vpop.f32.mrf.mxu0 }
 0x15e   :  { %v1563_v6 = vadd.f32 %v1562_v5, %v1550_v4  ;;  %v4471_v4 = vld [vmem:[#allocation10 + $0x6c] sm:$0xf0]  ;;  %v4477_v5 = vld [vmem:[#allocation10 + $0x68] sm:$0xf] }
 0x160   :  { %v1568_v7 = vmax.f32 %v1563_v6, 0.0  ;;  %v5409_v6 = vld [vmem:[#allocation10 + $0x70] sm:$0xf0] }
 0x162   :  { %v1571_v8 = vpack.c.bf16 %v1568_v7, %v1568_v7  ;;  %v4470_v7 = vor.u32 %v5408_v2, %v4469_v1  ;;  %v5105_v1 = vld [vmem:[#allocation12 + $0x498] sm:$0xf]  ;;  %v5569_v2 = vld [vmem:[#allocation12 + $0x4b0] sm:$0xf0] }
 0x164   :  { %1802 = vmatmul.bf16.vlgmr.msrb.gmra.mxu3 %v1571_v8  ;;  %v4474_v8 = vor.u32 %v5407_v3, %v4471_v4  ;;  %2146 = vmatpush.bf16.msra.mxu2 %v4470_v7  ;;  %v4718_v3 = vor.u32 %v5468_v60, %v4715_v0  ;;  %v4685_v4 = vld [vmem:[#allocation12 + $0x150] sm:$0xf]  ;;  %v4545_v60 = vld [vmem:[#allocation12 + $0x38] sm:$0xf] }
 0x165   :  { %v1564_v9 = vpop.f32.mrf.mxu0  ;;  %v4769_v0 = vld [vmem:[#allocation12 + $0x1f8] sm:$0xf] }
 0x166   :  { %v4478_v9 = vor.u32 %v5409_v6, %v4477_v5  ;;  %2159 = vmatpush.bf16.msra.mxu3 %v4474_v8  ;;  %v5464_v5 = vld [vmem:[#allocation12 + $0x168] sm:$0xf0]  ;;  %v4909_v6 = vld [vmem:[#allocation12 + $0x310] sm:$0xf] }
 0x167   :  { %v4686_v7 = vor.u32 %v5464_v5, %v4685_v4  ;;  %v5520_v8 = vld [vmem:[#allocation12 + $0x328] sm:$0xf0]  ;;  %v4547_v4 = vld [vmem:[#allocation12 + $0x54] sm:$0xf0] }
 0x168   :  { %v1777_v10 = vpop.f32.mrf.mxu1  ;;  %2172 = vmatpush.bf16.msrb.mxu0 %v4478_v9  ;;  %v5461_v9 = vld [vmem:[#allocation12 + $0x154] sm:$0xf] }
 0x169   :  { %v1778_v29 = vadd.f32 %v5600_v27, %v1777_v10  ;;  %v4457_v10 = vld [vmem:[#allocation10 + $0x48] sm:$0xf]  ;;  %v4454_v27 = vor.u32 %v5403_v23, %v4453_v21  ;;  %3261 = vmatpush.bf16.msrb.mxu1 %v4686_v7  ;;  %v4629_v23 = vld [vmem:[#allocation12 + $0xe0] sm:$0xf]  ;;  %v5534_v7 = vld [vmem:[#allocation12 + $0x398] sm:$0xf0] }
 0x16a   :  { %2160 = vmatpush.bf16.msra.mxu3 %v4462_v16  ;;  %v4881_v16 = vld [vmem:[#allocation12 + $0x2d8] sm:$0xf] }
 0x16e   :  { %2161 = vmatpush.bf16.msra.mxu3 %v4450_v26  ;;  %v4662_v26 = vor.u32 %v5454_v19, %v4659_v20  ;;  %v5524_v19 = vld [vmem:[#allocation12 + $0x34c] sm:$0xf] }
 0x170   :  { %v1779_v42 = vpop.f32.mrf.mxu1 }
 0x171   :  { %v5405_v42 = vld [vmem:[#allocation10 + $0x50] sm:$0xf0] }
 0x172   :  { %v4458_v15 = vor.u32 %v5405_v42, %v4457_v10  ;;  %v4687_v10 = vld [vmem:[#allocation12 + $0x16c] sm:$0xf0]  ;;  %v4910_v42 = vor.u32 %v5520_v8, %v4909_v6  ;;  %v4965_v6 = vld [vmem:[#allocation12 + $0x380] sm:$0xf] }
 0x173   :  { %v4690_v12 = vor.u32 %v5461_v9, %v4687_v10  ;;  %v4721_v8 = vld [vmem:[#allocation12 + $0x190] sm:$0xf]  ;;  %v4966_v20 = vor.u32 %v5534_v7, %v4965_v6  ;;  %v5444_v7 = vld [vmem:[#allocation12 + $0xc8] sm:$0xf0] }
 0x174   :  { %2147 = vmatpush.bf16.msra.mxu2 %v4458_v15  ;;  %v5457_v15 = vld [vmem:[#allocation12 + $0x130] sm:$0xf0]  ;;  %v4609_v6 = vld [vmem:[#allocation12 + $0xb0] sm:$0xf] }
 0x1a9   :  { %v1790_v52 = vpop.f32.mrf.mxu2 }
 0x1aa   :  { %v1791_v32 = vadd.f32 %v1790_v52, %v1778_v29  ;;  %v4466_v52 = vor.u32 %v5406_v14, %v4465_v25  ;;  %v4657_v25 = vld [vmem:[#allocation12 + $0x118] sm:$0xf]  ;;  %v5106_v14 = vor.u32 %v5569_v2, %v5105_v1  ;;  %v5485_v1 = vld [vmem:[#allocation12 + $0x210] sm:$0xf0]  ;;  %v4994_v2 = vor.u32 %v5541_v56, %v4993_v55  ;;  %v4889_v55 = vld [vmem:[#allocation12 + $0x2e0] sm:$0xf] }
 0x1ab   :  { %v5514_v56 = vld [vmem:[#allocation12 + $0x2f8] sm:$0xf0] }
 0x1ac   :  { %2173 = vmatpush.bf16.msrb.mxu0 %v4466_v52  ;;  %v5513_v52 = vld [vmem:[#allocation12 + $0x2f0] sm:$0xf0] }
 0x1ad   :  { %v4882_v21 = vor.u32 %v5513_v52, %v4881_v16  ;;  %v5478_v16 = vld [vmem:[#allocation12 + $0x1d8] sm:$0xf0]  ;;  %v5419_v52 = vld [vmem:[#allocation12 + $0x4] sm:$0xf] }
 0x1b0   :  { %2174 = vmatpush.bf16.msrb.mxu0 %v4454_v27  ;;  %v4853_v27 = vld [vmem:[#allocation12 + $0x2a0] sm:$0xf] }
 0x1b1   :  { %v1792_v17 = vpop.f32.mrf.mxu2 }
 0x1b2   :  { %v4445_v17 = vld [vmem:[#allocation10 + $0x30] sm:$0xf] }
 0x1b3   :  { %v4446_v24 = vor.u32 %v5402_v18, %v4445_v17  ;;  %v5562_v17 = vld [vmem:[#allocation12 + $0x478] sm:$0xf0]  ;;  %v4658_v18 = vor.u32 %v5457_v15, %v4657_v25  ;;  %v4741_v15 = vld [vmem:[#allocation12 + $0x1c0] sm:$0xf] }
 0x1b4   :  { %2175 = vmatpush.bf16.msrb.mxu0 %v4442_v39  ;;  %v5422_v25 = vld [vmem:[#allocation12 + $0x18] sm:$0xf0] }
 0x1b5   :  { %2148 = vmatpush.bf16.msra.mxu2 %v4446_v24  ;;  %v5450_v24 = vld [vmem:[#allocation12 + $0xf8] sm:$0xf0]  ;;  %3262 = vmatpush.bf16.msrb.mxu1 %v4658_v18  ;;  %v4519_v18 = vld [vmem:[#allocation12 + $0x1c] sm:$0xf0] }
 0x1b8   :  { %2176 = vmatpush.bf16.msrb.mxu0 %v4430_v48  ;;  %v4606_v48 = vor.u32 %v5440_v40, %v4603_v41  ;;  %v5135_v40 = vld [vmem:[#allocation12 + $0x4ec] sm:$0xf0] }
 0x1e7   :  { %v1803_v33 = vpop.f32.mrf.mxu3 }
 0x1e8   :  { %v1804_v34 = vadd.f32 %v1803_v33, %v1791_v32 }
 0x1ea   :  { %v1807_v47 = vmax.f32 %v1804_v34, 0.0  ;;  %v4433_v34 = vld [vmem:[#allocation10 + $0x18] sm:$0xf] }
 0x1ec   :  { %v1808_v35 = vpack.c.bf16 %v1807_v47, %v1807_v47  ;;  %v5399_v47 = vld [vmem:[#allocation10 + $0x20] sm:$0xf0] }
 0x1ee   :  { %1885 = vmatmul.bf16.vlgmr.msra.gmra.mxu0 %v1808_v35  ;;  %v5398_v35 = vld [vmem:[#allocation10 + $0x1c] sm:$0xf] }
 0x1ef   :  { %v1805_v22 = vpop.f32.mrf.mxu3  ;;  %v4438_v11 = vor.u32 %v5398_v35, %v4435_v36  ;;  %3299 = vmatpush.bf16.msra.mxu0 %v4718_v3  ;;  %v5443_v36 = vld [vmem:[#allocation12 + $0xc0] sm:$0xf0]  ;;  %v5426_v3 = vld [vmem:[#allocation12 + $0x3c] sm:$0xf] }
 0x1f0   :  { %v4434_v22 = vor.u32 %v5399_v47, %v4433_v34  ;;  %v5555_v34 = vld [vmem:[#allocation12 + $0x440] sm:$0xf0]  ;;  %v4630_v47 = vor.u32 %v5450_v24, %v4629_v23  ;;  %v5580_v23 = vld [vmem:[#allocation12 + $0x50c] sm:$0xf]  ;;  %v5163_v24 = vld [vmem:[#allocation12 + $0x524] sm:$0xf0] }
 0x1f1   :  { %2162 = vmatpush.bf16.msra.mxu3 %v4438_v11  ;;  %v5499_v11 = vld [vmem:[#allocation12 + $0x280] sm:$0xf0] }
 0x1f2   :  { %2149 = vmatpush.bf16.msra.mxu2 %v4434_v22  ;;  %v4601_v22 = vld [vmem:[#allocation12 + $0xa8] sm:$0xf]  ;;  %3263 = vmatpush.bf16.msrb.mxu1 %v4630_v47  ;;  %v4826_v44 = vor.u32 %v5499_v11, %v4825_v38  ;;  %v4522_v47 = vor.u32 %v5419_v52, %v4519_v18  ;;  %v4911_v11 = vld [vmem:[#allocation12 + $0x32c] sm:$0xf0] }
 0x1f3   :  { %3300 = vmatpush.bf16.msra.mxu0 %v4690_v12  ;;  %v4602_v43 = vor.u32 %v5443_v36, %v4601_v22  ;;  %v4770_v12 = vor.u32 %v5485_v1, %v4769_v0  ;;  %v5166_v22 = vor.u32 %v5580_v23, %v5163_v24  ;;  %v5517_v36 = vld [vmem:[#allocation12 + $0x314] sm:$0xf]  ;;  %v4855_v0 = vld [vmem:[#allocation12 + $0x2bc] sm:$0xf0]  ;;  %v5559_v1 = vld [vmem:[#allocation12 + $0x464] sm:$0xf] }
 0x1f4   :  { %v4833_v18 = vld [vmem:[#allocation12 + $0x270] sm:$0xf]  ;;  %v4553_v23 = vld [vmem:[#allocation12 + $0x40] sm:$0xf]  ;;  %v5430_v24 = vld [vmem:[#allocation12 + $0x58] sm:$0xf0] }
 0x1f5   :  { %2163 = vmatpush.bf16.msra.mxu3 %v4426_v46  ;;  %v5436_v46 = vld [vmem:[#allocation12 + $0x88] sm:$0xf0] }
 0x1f6   :  { %2150 = vmatpush.bf16.msra.mxu2 %v4422_v61  ;;  %v5548_v61 = vld [vmem:[#allocation12 + $0x408] sm:$0xf0]  ;;  %3264 = vmatpush.bf16.msrb.mxu1 %v4602_v43  ;;  %v4574_v57 = vor.u32 %v5436_v46, %v4573_v45  ;;  %v4665_v43 = vld [vmem:[#allocation12 + $0x120] sm:$0xf]  ;;  %v4914_v45 = vor.u32 %v5517_v36, %v4911_v11  ;;  %v5423_v36 = vld [vmem:[#allocation12 + $0x20] sm:$0xf0] }
 0x1f7   :  { %3301 = vmatpush.bf16.msra.mxu0 %v4662_v26  ;;  %v5022_v51 = vor.u32 %v5548_v61, %v5021_v30  ;;  %v4917_v30 = vld [vmem:[#allocation12 + $0x318] sm:$0xf]  ;;  %v5521_v61 = vld [vmem:[#allocation12 + $0x330] sm:$0xf0] }
 0x1f8   :  { %v4918_v49 = vor.u32 %v5521_v61, %v4917_v30  ;;  %v4771_v11 = vld [vmem:[#allocation12 + $0x214] sm:$0xf0]  ;;  %v4777_v30 = vld [vmem:[#allocation12 + $0x200] sm:$0xf]  ;;  %v5486_v61 = vld [vmem:[#allocation12 + $0x218] sm:$0xf0] }
 0x1f9   :  { %3286 = vmatpush.bf16.msrb.mxu3 %v5162_v53  ;;  %v5433_v53 = vld [vmem:[#allocation12 + $0x74] sm:$0xf] }
 0x1fa   :  { %3273 = vmatpush.bf16.msrb.mxu2 %v4938_v63  ;;  %v4578_v63 = vor.u32 %v5433_v53, %v4575_v54  ;;  %3265 = vmatpush.bf16.msrb.mxu1 %v4574_v57  ;;  %v5107_v53 = vld [vmem:[#allocation12 + $0x4b4] sm:$0xf0]  ;;  %v4637_v57 = vld [vmem:[#allocation12 + $0xe8] sm:$0xf] }
 0x1fd   :  { %3287 = vmatpush.bf16.msrb.mxu3 %v5134_v62  ;;  %v5429_v62 = vld [vmem:[#allocation12 + $0x50] sm:$0xf0] }
 0x1fe   :  { %3274 = vmatpush.bf16.msrb.mxu2 %v4910_v42  ;;  %v4546_v9 = vor.u32 %v5429_v62, %v4545_v60  ;;  %v5472_v42 = vld [vmem:[#allocation12 + $0x1a8] sm:$0xf0]  ;;  %v5503_v62 = vld [vmem:[#allocation12 + $0x2a4] sm:$0xf] }
 0x200   :  { %3266 = vmatpush.bf16.msrb.mxu1 %v4546_v9 }
 0x201   :  { %3288 = vmatpush.bf16.msrb.mxu3 %v5106_v14  ;;  %v4550_v14 = vor.u32 %v5426_v3, %v4547_v4  ;;  %v4861_v4 = vld [vmem:[#allocation12 + $0x2a8] sm:$0xf] }
 0x202   :  { %3275 = vmatpush.bf16.msrb.mxu2 %v4882_v21  ;;  %v4939_v21 = vld [vmem:[#allocation12 + $0x364] sm:$0xf0] }
 0x26b   :  { %v1886_v29 = vpop.f32.mrf.mxu0 }
 0x26c   :  { %v1887_v31 = vadd.f32 %v5601_v28, %v1886_v29  ;;  %v5506_v28 = vld [vmem:[#allocation12 + $0x2b8] sm:$0xf0]  ;;  %v5078_v29 = vor.u32 %v5562_v17, %v5077_v13  ;;  %v4517_v13 = vld [vmem:[#allocation12] sm:$0xf] }
 0x26d   :  { %v4854_v35 = vor.u32 %v5506_v28, %v4853_v27  ;;  %v4722_v27 = vor.u32 %v5472_v42, %v4721_v8  ;;  %v4518_v28 = vor.u32 %v5422_v25, %v4517_v13  ;;  %v4858_v8 = vor.u32 %v5503_v62, %v4855_v0  ;;  %v5437_v13 = vld [vmem:[#allocation12 + $0x90] sm:$0xf0]  ;;  %v4947_v62 = vld [vmem:[#allocation12 + $0x36c] sm:$0xf0] }
 0x26e   :  { %1890 = vst [vmem:[%s6093_s14] sm:$0xff] %v1887_v31  ;;  %v1891_v32 = vpack.c.bf16 %v1887_v31, %v1887_v31  ;;  %v5447_v31 = vld [vmem:[#allocation12 + $0xe4] sm:$0xf]  ;;  %3289 = vmatpush.bf16.msrb.mxu3 %v5078_v29  ;;  %v4945_v29 = vld [vmem:[#allocation12 + $0x350] sm:$0xf]  ;;  %v4610_v42 = vor.u32 %v5444_v7, %v4609_v6  ;;  %v5518_v6 = vld [vmem:[#allocation12 + $0x31c] sm:$0xf] }
 0x26f   :  { %3276 = vmatpush.bf16.msrb.mxu2 %v4854_v35  ;;  %v4942_v35 = vor.u32 %v5524_v19, %v4939_v21  ;;  %3267 = vmatpush.bf16.msrb.mxu1 %v4518_v28  ;;  %v5500_v19 = vld [vmem:[#allocation12 + $0x288] sm:$0xf0]  ;;  %v4799_v28 = vld [vmem:[#allocation12 + $0x24c] sm:$0xf0]  ;;  %v4919_v7 = vld [vmem:[#allocation12 + $0x334] sm:$0xf0] }
 0x270   :  { %1968 = vmatmul.bf16.vlgmr.msra.gmra.mxu1 %v1891_v32  ;;  %v4631_v32 = vld [vmem:[#allocation12 + $0xfc] sm:$0xf0]  ;;  %v4834_v21 = vor.u32 %v5500_v19, %v4833_v18  ;;  %v5511_v18 = vld [vmem:[#allocation12 + $0x2e4] sm:$0xf] }
 0x271   :  { %v4634_v37 = vor.u32 %v5447_v31, %v4631_v32  ;;  %v5528_v31 = vld [vmem:[#allocation12 + $0x368] sm:$0xf0]  ;;  %v4693_v32 = vld [vmem:[#allocation12 + $0x158] sm:$0xf]  ;;  %v4891_v19 = vld [vmem:[#allocation12 + $0x2fc] sm:$0xf0] }
 0x272   :  { %v4946_v38 = vor.u32 %v5528_v31, %v4945_v29  ;;  %v5545_v29 = vld [vmem:[#allocation12 + $0x3f4] sm:$0xf] }
 0x273   :  { %v1888_v33 = vpop.f32.mrf.mxu0  ;;  %3302 = vmatpush.bf16.msra.mxu0 %v4634_v37  ;;  %3277 = vmatpush.bf16.msrb.mxu2 %v4826_v44  ;;  %v5458_v44 = vld [vmem:[#allocation12 + $0x138] sm:$0xf0] }
 0x274   :  { %v5049_v33 = vld [vmem:[#allocation12 + $0x428] sm:$0xf]  ;;  %3312 = vmatpush.bf16.msra.mxu1 %v4942_v35  ;;  %v4666_v54 = vor.u32 %v5458_v44, %v4665_v43  ;;  %v4778_v44 = vor.u32 %v5486_v61, %v4777_v30  ;;  %v4667_v30 = vld [vmem:[#allocation12 + $0x13c] sm:$0xf0] }
 0x275   :  { %v5050_v39 = vor.u32 %v5555_v34, %v5049_v33  ;;  %v5465_v33 = vld [vmem:[#allocation12 + $0x170] sm:$0xf0]  ;;  %v4742_v34 = vor.u32 %v5478_v16, %v4741_v15  ;;  %v4827_v15 = vld [vmem:[#allocation12 + $0x284] sm:$0xf0]  ;;  %v5552_v16 = vld [vmem:[#allocation12 + $0x42c] sm:$0xf] }
 0x276   :  { %v4694_v41 = vor.u32 %v5465_v33, %v4693_v32  ;;  %v5023_v32 = vld [vmem:[#allocation12 + $0x40c] sm:$0xf0]  ;;  %v4805_v33 = vld [vmem:[#allocation12 + $0x238] sm:$0xf] }
 0x277   :  { %3290 = vmatpush.bf16.msrb.mxu3 %v5050_v39  ;;  %3303 = vmatpush.bf16.msra.mxu0 %v4606_v48  ;;  %v5573_v39 = vld [vmem:[#allocation12 + $0x4d4] sm:$0xf]  ;;  %v5510_v48 = vld [vmem:[#allocation12 + $0x2dc] sm:$0xf] }
 0x278   :  { %3278 = vmatpush.bf16.msrb.mxu2 %v4798_v59  ;;  %v5138_v46 = vor.u32 %v5573_v39, %v5135_v40  ;;  %3313 = vmatpush.bf16.msra.mxu1 %v4914_v45  ;;  %v4886_v59 = vor.u32 %v5510_v48, %v4883_v50  ;;  %v5538_v39 = vld [vmem:[#allocation12 + $0x3bc] sm:$0xf]  ;;  %v5475_v45 = vld [vmem:[#allocation12 + $0x1c4] sm:$0xf]  ;;  %v4967_v50 = vld [vmem:[#allocation12 + $0x39c] sm:$0xf0] }
 0x279   :  { %v5531_v48 = vld [vmem:[#allocation12 + $0x384] sm:$0xf] }
 0x27b   :  { %3291 = vmatpush.bf16.msrb.mxu3 %v5022_v51  ;;  %3304 = vmatpush.bf16.msra.mxu0 %v4578_v63  ;;  %v5566_v51 = vld [vmem:[#allocation12 + $0x49c] sm:$0xf]  ;;  %v4890_v63 = vor.u32 %v5514_v56, %v4889_v55 }
 0x27c   :  { %3279 = vmatpush.bf16.msrb.mxu2 %v4770_v12  ;;  %v5110_v60 = vor.u32 %v5566_v51, %v5107_v53  ;;  %3314 = vmatpush.bf16.msra.mxu1 %v4886_v59  ;;  %v4581_v12 = vld [vmem:[#allocation12 + $0x78] sm:$0xf]  ;;  %v4749_v51 = vld [vmem:[#allocation12 + $0x1c8] sm:$0xf]  ;;  %v5479_v53 = vld [vmem:[#allocation12 + $0x1e0] sm:$0xf0] }
 0x27d   :  { %v4582_v25 = vor.u32 %v5437_v13, %v4581_v12  ;;  %v4750_v55 = vor.u32 %v5479_v53, %v4749_v51  ;;  %v2007_v56 = vld [vmem:[%s6089_s10] sm:$0x7]  ;;  %v5469_v12 = vld [vmem:[#allocation12 + $0x194] sm:$0xf]  ;;  %v4723_v13 = vld [vmem:[#allocation12 + $0x1ac] sm:$0xf0] }
 0x27e   :  { %v2010_v0 = vperm.slane %v2007_v56, 1  ;;  %v5563_v53 = vld [vmem:[#allocation12 + $0x480] sm:$0xf0] }
 0x27f   :  { %3292 = vmatpush.bf16.msrb.mxu3 %v4994_v2  ;;  %3305 = vmatpush.bf16.msra.mxu0 %v4550_v14  ;;  %v5079_v2 = vld [vmem:[#allocation12 + $0x47c] sm:$0xf0]  ;;  %v5496_v14 = vld [vmem:[#allocation12 + $0x26c] sm:$0xf] }
 0x280   :  { %3280 = vmatpush.bf16.msrb.mxu2 %v4742_v34  ;;  %v5082_v9 = vor.u32 %v5559_v1, %v5079_v2  ;;  %3315 = vmatpush.bf16.msra.mxu1 %v4858_v8  ;;  %v4830_v52 = vor.u32 %v5496_v14, %v4827_v15  ;;  %v5493_v34 = vld [vmem:[#allocation12 + $0x250] sm:$0xf0] }
 0x281   :  { %v4806_v35 = vor.u32 %v5493_v34, %v4805_v33  ;;  %v5574_v33 = vld [vmem:[#allocation12 + $0x4dc] sm:$0xf]  ;;  %v5143_v34 = vld [vmem:[#allocation12 + $0x4f4] sm:$0xf0] }
 0x283   :  { %3293 = vmatpush.bf16.msrb.mxu3 %v4966_v20  ;;  %3306 = vmatpush.bf16.msra.mxu0 %v4522_v47  ;;  %v5026_v47 = vor.u32 %v5545_v29, %v5023_v32  ;;  %v5462_v29 = vld [vmem:[#allocation12 + $0x15c] sm:$0xf]  ;;  %v4894_v32 = vor.u32 %v5511_v18, %v4891_v19  ;;  %v5031_v18 = vld [vmem:[#allocation12 + $0x414] sm:$0xf0]  ;;  %v5476_v19 = vld [vmem:[#allocation12 + $0x1cc] sm:$0xf] }
 0x284   :  { %3316 = vmatpush.bf16.msra.mxu1 %v4830_v52  ;;  %v5581_v52 = vld [vmem:[#allocation12 + $0x514] sm:$0xf] }
 0x2ed   :  { %v1969_v5 = vpop.f32.mrf.mxu1 }
 0x2ee   :  { %v1970_v10 = vadd.f32 %v5602_v58, %v1969_v5  ;;  %v5451_v58 = vld [vmem:[#allocation12 + $0x100] sm:$0xf0] }
 0x2ef   :  { %v4638_v3 = vor.u32 %v5451_v58, %v4637_v57  ;;  %v5507_v5 = vld [vmem:[#allocation12 + $0x2c0] sm:$0xf0]  ;;  %v2011_v57 = vperm.slane %v2007_v56, 2 }
 0x2f0   :  { %v1973_v17 = vmax.f32 %v1970_v10, 0.0  ;;  %v4862_v10 = vor.u32 %v5507_v5, %v4861_v4 }
 0x2f2   :  { %v1974_v26 = vpack.c.bf16 %v1973_v17, %v1973_v17  ;;  %v5051_v17 = vld [vmem:[#allocation12 + $0x444] sm:$0xf0] }
 0x2f3   :  { %v5054_v20 = vor.u32 %v5552_v16, %v5051_v17  ;;  %v4922_v16 = vor.u32 %v5518_v6, %v4919_v7  ;;  %v5171_v17 = vld [vmem:[#allocation12 + $0x52c] sm:$0xf0]  ;;  %v5553_v7 = vld [vmem:[#allocation12 + $0x434] sm:$0xf] }
 0x2f4   :  { %2151 = vmatmul.bf16.vlgmr.msra.gmra.mxu2 %v1974_v26  ;;  %2164 = vmatmul.bf16.vlgmr.msra.gmra.mxu3 %v1974_v26 }
 0x2f5   :  { %2177 = vmatmul.bf16.vlgmr.msrb.gmra.mxu0 %v1974_v26  ;;  %v1971_v37 = vpop.f32.mrf.mxu1  ;;  %3338 = vmatpush.bf16.msra.mxu3 %v4722_v27  ;;  %v4554_v26 = vor.u32 %v5430_v24, %v4553_v23  ;;  %v5489_v27 = vld [vmem:[#allocation12 + $0x234] sm:$0xf]  ;;  %v4726_v24 = vor.u32 %v5469_v12, %v4723_v13  ;;  %v5029_v13 = vld [vmem:[#allocation12 + $0x3f8] sm:$0xf] }
 0x2f6   :  { %3325 = vmatpush.bf16.msra.mxu2 %v5166_v22  ;;  %3351 = vmatpush.bf16.msrb.mxu0 %v4946_v38  ;;  %v4802_v31 = vor.u32 %v5489_v27, %v4799_v28  ;;  %v4525_v22 = vld [vmem:[#allocation12 + $0x8] sm:$0xf]  ;;  %v5482_v38 = vld [vmem:[#allocation12 + $0x1fc] sm:$0xf]  ;;  %v5174_v27 = vor.u32 %v5581_v52, %v5171_v17  ;;  %v5577_v28 = vld [vmem:[#allocation12 + $0x4f0] sm:$0xf0] }
 0x2f7   :  { %v4526_v37 = vor.u32 %v5423_v36, %v4525_v22  ;;  %v4774_v40 = vor.u32 %v5482_v38, %v4771_v11  ;;  %v5504_v22 = vld [vmem:[#allocation12 + $0x2ac] sm:$0xf]  ;;  %v4863_v36 = vld [vmem:[#allocation12 + $0x2c4] sm:$0xf0]  ;;  %v5113_v11 = vld [vmem:[#allocation12 + $0x4a0] sm:$0xf] }
 0x2f8   :  { %3317 = vmatpush.bf16.msra.mxu1 %v4802_v31  ;;  %v4695_v31 = vld [vmem:[#allocation12 + $0x174] sm:$0xf0]  ;;  %v4866_v61 = vor.u32 %v5504_v22, %v4863_v36  ;;  %v5546_v17 = vld [vmem:[#allocation12 + $0x3fc] sm:$0xf]  ;;  %v5003_v22 = vld [vmem:[#allocation12 + $0x3dc] sm:$0xf0] }
 0x2f9   :  { %3339 = vmatpush.bf16.msra.mxu3 %v4694_v41  ;;  %v4995_v41 = vld [vmem:[#allocation12 + $0x3d4] sm:$0xf0]  ;;  %v4698_v38 = vor.u32 %v5462_v29, %v4695_v31  ;;  %v5001_v29 = vld [vmem:[#allocation12 + $0x3c0] sm:$0xf]  ;;  %v5034_v31 = vor.u32 %v5546_v17, %v5031_v18  ;;  %v4675_v17 = vld [vmem:[#allocation12 + $0x144] sm:$0xf0] }
 0x2fa   :  { %3326 = vmatpush.bf16.msra.mxu2 %v5138_v46  ;;  %3352 = vmatpush.bf16.msrb.mxu0 %v4918_v49  ;;  %v4998_v43 = vor.u32 %v5538_v39, %v4995_v41  ;;  %v4743_v46 = vld [vmem:[#allocation12 + $0x1dc] sm:$0xf0]  ;;  %v5146_v39 = vor.u32 %v5574_v33, %v5143_v34  ;;  %v5455_v41 = vld [vmem:[#allocation12 + $0x124] sm:$0xf]  ;;  %v5065_v18 = vld [vmem:[#allocation12 + $0x438] sm:$0xf] }
 0x2fb   :  { %v4746_v49 = vor.u32 %v5475_v45, %v4743_v46  ;;  %v5497_v45 = vld [vmem:[#allocation12 + $0x274] sm:$0xf]  ;;  %v4835_v46 = vld [vmem:[#allocation12 + $0x28c] sm:$0xf0]  ;;  %v5427_v33 = vld [vmem:[#allocation12 + $0x44] sm:$0xf] }
 0x2fc   :  { %3318 = vmatpush.bf16.msra.mxu1 %v4774_v40  ;;  %v5570_v40 = vld [vmem:[#allocation12 + $0x4b8] sm:$0xf0]  ;;  %v4555_v34 = vld [vmem:[#allocation12 + $0x5c] sm:$0xf0] }
 0x2fd   :  { %3340 = vmatpush.bf16.msra.mxu3 %v4666_v54  ;;  %v4970_v54 = vor.u32 %v5531_v48, %v4967_v50  ;;  %v5114_v48 = vor.u32 %v5570_v40, %v5113_v11  ;;  %v5085_v50 = vld [vmem:[#allocation12 + $0x468] sm:$0xf] }
 0x2fe   :  { %3327 = vmatpush.bf16.msra.mxu2 %v5110_v60  ;;  %3353 = vmatpush.bf16.msrb.mxu0 %v4890_v63  ;;  %v5525_v60 = vld [vmem:[#allocation12 + $0x354] sm:$0xf]  ;;  %v2009_v63 = vperm.slane %v2007_v56, 0  ;;  %v4838_v56 = vor.u32 %v5497_v45, %v4835_v46  ;;  %v4973_v40 = vld [vmem:[#allocation12 + $0x388] sm:$0xf] }
 0x2ff   :  { %v4950_v2 = vor.u32 %v5525_v60, %v4947_v62  ;;  %v4807_v60 = vld [vmem:[#allocation12 + $0x254] sm:$0xf0]  ;;  %v5086_v62 = vor.u32 %v5563_v53, %v5085_v50  ;;  %v4975_v45 = vld [vmem:[#allocation12 + $0x3a4] sm:$0xf0]  ;;  %v5470_v53 = vld [vmem:[#allocation12 + $0x19c] sm:$0xf] }
 0x300   :  { %3319 = vmatpush.bf16.msra.mxu1 %v4746_v49  ;;  %v4670_v49 = vor.u32 %v5455_v41, %v4667_v30  ;;  %v5535_v41 = vld [vmem:[#allocation12 + $0x3a0] sm:$0xf0]  ;;  %v5420_v30 = vld [vmem:[#allocation12 + $0xc] sm:$0xf]  ;;  %v4729_v46 = vld [vmem:[#allocation12 + $0x198] sm:$0xf] }
 0x301   :  { %3341 = vmatpush.bf16.msra.mxu3 %v4638_v3 }
 0x302   :  { %3328 = vmatpush.bf16.msra.mxu2 %v5082_v9  ;;  %3354 = vmatpush.bf16.msrb.mxu0 %v4862_v10  ;;  %v5169_v10 = vld [vmem:[#allocation12 + $0x510] sm:$0xf] }
 0x305   :  { %3342 = vmatpush.bf16.msra.mxu3 %v4610_v42  ;;  %v5584_v42 = vld [vmem:[#allocation12 + $0x528] sm:$0xf0] }
 0x306   :  { %3329 = vmatpush.bf16.msra.mxu2 %v5054_v20  ;;  %3355 = vmatpush.bf16.msrb.mxu0 %v4834_v21  ;;  %v5170_v23 = vor.u32 %v5584_v42, %v5169_v10  ;;  %v4779_v10 = vld [vmem:[#allocation12 + $0x21c] sm:$0xf0] }
 0x309   :  { %3343 = vmatpush.bf16.msra.mxu3 %v4582_v25 }
 0x30a   :  { %3330 = vmatpush.bf16.msra.mxu2 %v5026_v47  ;;  %3356 = vmatpush.bf16.msrb.mxu0 %v4806_v35 }
 0x30d   :  { %3344 = vmatpush.bf16.msra.mxu3 %v4554_v26  ;;  %v5141_v26 = vld [vmem:[#allocation12 + $0x4d8] sm:$0xf] }
 0x30e   :  { %3331 = vmatpush.bf16.msra.mxu2 %v4998_v43  ;;  %3357 = vmatpush.bf16.msrb.mxu0 %v4778_v44  ;;  %v5567_v43 = vld [vmem:[#allocation12 + $0x4a4] sm:$0xf]  ;;  %v5115_v44 = vld [vmem:[#allocation12 + $0x4bc] sm:$0xf0] }
 0x30f   :  { %v5118_v51 = vor.u32 %v5567_v43, %v5115_v44  ;;  %v4527_v43 = vld [vmem:[#allocation12 + $0x24] sm:$0xf0]  ;;  %v5532_v44 = vld [vmem:[#allocation12 + $0x38c] sm:$0xf] }
 0x311   :  { %3345 = vmatpush.bf16.msra.mxu3 %v4526_v37  ;;  %v5142_v37 = vor.u32 %v5577_v28, %v5141_v26  ;;  %v5585_v28 = vld [vmem:[#allocation12 + $0x530] sm:$0xf0] }
 0x312   :  { %3332 = vmatpush.bf16.msra.mxu2 %v4970_v54  ;;  %3358 = vmatpush.bf16.msrb.mxu0 %v4750_v55  ;;  %v5448_v54 = vld [vmem:[#allocation12 + $0xec] sm:$0xf]  ;;  %v4639_v55 = vld [vmem:[#allocation12 + $0x104] sm:$0xf0] }
 0x372   :  { %v2178_v58 = vpop.f32.mrf.mxu0 }
 0x373   :  { %v2179_v59 = vadd.f32 %v2178_v58, %v2011_v57  ;;  %v5560_v57 = vld [vmem:[#allocation12 + $0x46c] sm:$0xf]  ;;  %v5087_v58 = vld [vmem:[#allocation12 + $0x484] sm:$0xf0] }
 0x375   :  { %v2184_v1 = vmax.f32 %v2179_v59, 0.0  ;;  %v5490_v59 = vld [vmem:[#allocation12 + $0x23c] sm:$0xf] }
 0x376   :  { %v4810_v6 = vor.u32 %v5490_v59, %v4807_v60  ;;  %v4978_v59 = vor.u32 %v5532_v44, %v4975_v45  ;;  %v5543_v44 = vld [vmem:[#allocation12 + $0x3e0] sm:$0xf0] }
 0x377   :  { %v6019_v3 = vpack.c.bf16 %v2184_v1, %v2184_v1  ;;  %v2152_v4 = vpop.f32.mrf.mxu2  ;;  %v2165_v5 = vpop.f32.mrf.mxu3  ;;  %v5090_v1 = vor.u32 %v5560_v57, %v5087_v58  ;;  %v5121_v57 = vld [vmem:[#allocation12 + $0x4a8] sm:$0xf]  ;;  %v5571_v58 = vld [vmem:[#allocation12 + $0x4c0] sm:$0xf0] }
 0x378   :  { %v2153_v8 = vadd.f32 %v2152_v4, %v2009_v63  ;;  %v2166_v9 = vadd.f32 %v2165_v5, %v2010_v0  ;;  %v4642_v63 = vor.u32 %v5448_v54, %v4639_v55  ;;  %v5057_v0 = vld [vmem:[#allocation12 + $0x430] sm:$0xf]  ;;  %v5441_v4 = vld [vmem:[#allocation12 + $0xb4] sm:$0xf]  ;;  %v4731_v54 = vld [vmem:[#allocation12 + $0x1b4] sm:$0xf0]  ;;  %v4974_v55 = vor.u32 %v5535_v41, %v4973_v40 }
 0x379   :  { %3294 = vmatmul.bf16.vlgmr.msrb.gmra.mxu3 %v6019_v3  ;;  %v4611_v5 = vld [vmem:[#allocation12 + $0xcc] sm:$0xf0]  ;;  %v5501_v41 = vld [vmem:[#allocation12 + $0x290] sm:$0xf0] }
 0x37a   :  { %v2182_v25 = vmax.f32 %v2153_v8, 0.0  ;;  %v2183_v14 = vmax.f32 %v2166_v9, 0.0  ;;  %3390 = vmatpush.bf16.msrb.mxu3 %v4950_v2  ;;  %v2180_v15 = vpop.f32.mrf.mxu0  ;;  %v5556_v2 = vld [vmem:[#allocation12 + $0x448] sm:$0xf0]  ;;  %v5059_v8 = vld [vmem:[#allocation12 + $0x44c] sm:$0xf0]  ;;  %v4614_v12 = vor.u32 %v5441_v4, %v4611_v5  ;;  %v5122_v4 = vor.u32 %v5571_v58, %v5121_v57 }
 0x37b   :  { %v5483_v9 = vld [vmem:[#allocation12 + $0x204] sm:$0xf]  ;;  %v5058_v42 = vor.u32 %v5556_v2, %v5057_v0  ;;  %v5434_v15 = vld [vmem:[#allocation12 + $0x7c] sm:$0xf]  ;;  %v4701_v0 = vld [vmem:[#allocation12 + $0x160] sm:$0xf] }
 0x37c   :  { %v6022_v20 = vpack.c.bf16 %v2182_v25, %v2182_v25  ;;  %v6024_v21 = vpack.c.bf16 %v2183_v14, %v2183_v14  ;;  %v5062_v25 = vor.u32 %v5553_v7, %v5059_v8  ;;  %v5549_v14 = vld [vmem:[#allocation12 + $0x410] sm:$0xf0]  ;;  %v4782_v52 = vor.u32 %v5483_v9, %v4779_v10  ;;  %v4925_v2 = vld [vmem:[#allocation12 + $0x320] sm:$0xf]  ;;  %v5522_v5 = vld [vmem:[#allocation12 + $0x338] sm:$0xf0] }
 0x37d   :  { %v4703_v7 = vld [vmem:[#allocation12 + $0x17c] sm:$0xf0]  ;;  %v5093_v8 = vld [vmem:[#allocation12 + $0x470] sm:$0xf]  ;;  %v5564_v9 = vld [vmem:[#allocation12 + $0x488] sm:$0xf0] }
 0x37e   :  { %3391 = vmatpush.bf16.msrb.mxu3 %v4922_v16  ;;  %3268 = vmatmul.bf16.vlgmr.msrb.gmra.mxu1 %v6022_v20  ;;  %v4583_v16 = vld [vmem:[#allocation12 + $0x94] sm:$0xf0]  ;;  %v4981_v57 = vld [vmem:[#allocation12 + $0x390] sm:$0xf]  ;;  %v5536_v58 = vld [vmem:[#allocation12 + $0x3a8] sm:$0xf0] }
 0x37f   :  { %3281 = vmatmul.bf16.vlgmr.msrb.gmra.mxu2 %v6024_v21  ;;  %3307 = vmatmul.bf16.vlgmr.msra.gmra.mxu0 %v6022_v20  ;;  %v2154_v47 = vpop.f32.mrf.mxu2  ;;  %v2167_v35 = vpop.f32.mrf.mxu3  ;;  %v4586_v26 = vor.u32 %v5434_v15, %v4583_v16  ;;  %v5094_v15 = vor.u32 %v5564_v9, %v5093_v8  ;;  %v5515_v16 = vld [vmem:[#allocation12 + $0x300] sm:$0xf0]  ;;  %v4563_v8 = vld [vmem:[#allocation12 + $0x64] sm:$0xf0] }
 0x380   :  { %3364 = vmatpush.bf16.msrb.mxu1 %v5170_v23  ;;  %3377 = vmatpush.bf16.msrb.mxu2 %v4726_v24  ;;  %v4751_v23 = vld [vmem:[#allocation12 + $0x1e4] sm:$0xf0]  ;;  %v5030_v24 = vor.u32 %v5549_v14, %v5029_v13  ;;  %v5539_v35 = vld [vmem:[#allocation12 + $0x3c4] sm:$0xf] }
 0x381   :  { %3403 = vmatpush.bf16.msra.mxu0 %v5174_v27  ;;  %v5177_v27 = vld [vmem:[#allocation12 + $0x518] sm:$0xf]  ;;  %v4754_v47 = vor.u32 %v5476_v19, %v4751_v23  ;;  %v4673_v13 = vld [vmem:[#allocation12 + $0x128] sm:$0xf]  ;;  %v5557_v19 = vld [vmem:[#allocation12 + $0x450] sm:$0xf0] }
 0x382   :  { %3392 = vmatpush.bf16.msrb.mxu3 %v4894_v32  ;;  %v5542_v32 = vld [vmem:[#allocation12 + $0x3d8] sm:$0xf0]  ;;  %v5178_v36 = vor.u32 %v5585_v28, %v5177_v27  ;;  %v4897_v14 = vld [vmem:[#allocation12 + $0x2e8] sm:$0xf]  ;;  %v4645_v27 = vld [vmem:[#allocation12 + $0xf0] sm:$0xf] }
 0x383   :  { %v5002_v11 = vor.u32 %v5542_v32, %v5001_v29  ;;  %v5452_v28 = vld [vmem:[#allocation12 + $0x108] sm:$0xf0]  ;;  %v4869_v29 = vld [vmem:[#allocation12 + $0x2b0] sm:$0xf] }
 0x384   :  { %3365 = vmatpush.bf16.msrb.mxu1 %v5142_v37  ;;  %3378 = vmatpush.bf16.msrb.mxu2 %v4698_v38  ;;  %v5149_v37 = vld [vmem:[#allocation12 + $0x4e0] sm:$0xf]  ;;  %v5578_v38 = vld [vmem:[#allocation12 + $0x4f8] sm:$0xf0]  ;;  %v5508_v32 = vld [vmem:[#allocation12 + $0x2c8] sm:$0xf0] }
 0x385   :  { %3404 = vmatpush.bf16.msra.mxu0 %v5146_v39  ;;  %v4558_v39 = vor.u32 %v5427_v33, %v4555_v34  ;;  %v5150_v50 = vor.u32 %v5578_v38, %v5149_v37  ;;  %v5449_v33 = vld [vmem:[#allocation12 + $0xf4] sm:$0xf]  ;;  %v4647_v34 = vld [vmem:[#allocation12 + $0x10c] sm:$0xf0]  ;;  %v4617_v38 = vld [vmem:[#allocation12 + $0xb8] sm:$0xf] }
 0x386   :  { %3393 = vmatpush.bf16.msrb.mxu3 %v4866_v61  ;;  %v5006_v61 = vor.u32 %v5539_v35, %v5003_v22  ;;  %v5550_v35 = vld [vmem:[#allocation12 + $0x418] sm:$0xf0]  ;;  %v4646_v22 = vor.u32 %v5452_v28, %v4645_v27  ;;  %v4650_v37 = vor.u32 %v5449_v33, %v4647_v34  ;;  %v5179_v27 = vld [vmem:[#allocation12 + $0x534] sm:$0xf0] }
 0x388   :  { %3366 = vmatpush.bf16.msrb.mxu1 %v5114_v48  ;;  %3379 = vmatpush.bf16.msrb.mxu2 %v4670_v49  ;;  %v5473_v48 = vld [vmem:[#allocation12 + $0x1b0] sm:$0xf0]  ;;  %v4953_v49 = vld [vmem:[#allocation12 + $0x358] sm:$0xf] }
 0x389   :  { %3405 = vmatpush.bf16.msra.mxu0 %v5118_v51  ;;  %3346 = vmatmul.bf16.vlgmr.msra.gmra.mxu3 %v6022_v20  ;;  %v5529_v51 = vld [vmem:[#allocation12 + $0x370] sm:$0xf0]  ;;  %v4730_v60 = vor.u32 %v5473_v48, %v4729_v46 }
 0x38a   :  { %3394 = vmatpush.bf16.msrb.mxu3 %v4838_v56  ;;  %v4530_v56 = vor.u32 %v5420_v30, %v4527_v43  ;;  %v5442_v30 = vld [vmem:[#allocation12 + $0xbc] sm:$0xf]  ;;  %v5009_v43 = vld [vmem:[#allocation12 + $0x3c8] sm:$0xf] }
 0x38c   :  { %3367 = vmatpush.bf16.msrb.mxu1 %v5086_v62  ;;  %3380 = vmatpush.bf16.msrb.mxu2 %v4642_v63  ;;  %v4954_v62 = vor.u32 %v5529_v51, %v4953_v49  ;;  %v4734_v63 = vor.u32 %v5470_v53, %v4731_v54  ;;  %v4589_v49 = vld [vmem:[#allocation12 + $0x80] sm:$0xf]  ;;  %v5010_v53 = vor.u32 %v5543_v44, %v5009_v43  ;;  %v5494_v54 = vld [vmem:[#allocation12 + $0x258] sm:$0xf0]  ;;  %v4653_v44 = vld [vmem:[#allocation12 + $0xf8] sm:$0xf] }
 0x38d   :  { %3406 = vmatpush.bf16.msra.mxu0 %v5090_v1  ;;  %v5466_v1 = vld [vmem:[#allocation12 + $0x178] sm:$0xf0]  ;;  %v4813_v51 = vld [vmem:[#allocation12 + $0x240] sm:$0xf] }
 0x38e   :  { %3395 = vmatpush.bf16.msrb.mxu3 %v4810_v6  ;;  %3320 = vmatmul.bf16.vlgmr.msra.gmra.mxu1 %v6024_v21  ;;  %v5463_v6 = vld [vmem:[#allocation12 + $0x164] sm:$0xf]  ;;  %v4702_v10 = vor.u32 %v5466_v1, %v4701_v0  ;;  %v4561_v1 = vld [vmem:[#allocation12 + $0x48] sm:$0xf] }
 0x38f   :  { %3333 = vmatmul.bf16.vlgmr.msra.gmra.mxu2 %v6019_v3  ;;  %3359 = vmatmul.bf16.vlgmr.msrb.gmra.mxu0 %v6024_v21 }
 0x390   :  { %3368 = vmatpush.bf16.msrb.mxu1 %v5058_v42  ;;  %3381 = vmatpush.bf16.msrb.mxu2 %v4614_v12  ;;  %v4926_v42 = vor.u32 %v5522_v5, %v4925_v2  ;;  %v4706_v12 = vor.u32 %v5463_v6, %v4703_v7  ;;  %v5431_v2 = vld [vmem:[#allocation12 + $0x60] sm:$0xf0]  ;;  %v4982_v5 = vor.u32 %v5536_v58, %v4981_v57  ;;  %v5428_v7 = vld [vmem:[#allocation12 + $0x4c] sm:$0xf]  ;;  %v4625_v58 = vld [vmem:[#allocation12 + $0xc0] sm:$0xf] }
 0x391   :  { %3407 = vmatpush.bf16.msra.mxu0 %v5062_v25  ;;  %v5459_v25 = vld [vmem:[#allocation12 + $0x140] sm:$0xf0] }
 0x392   :  { %3396 = vmatpush.bf16.msrb.mxu3 %v4782_v52  ;;  %v5456_v52 = vld [vmem:[#allocation12 + $0x12c] sm:$0xf]  ;;  %v4674_v23 = vor.u32 %v5459_v25, %v4673_v13  ;;  %v5487_v6 = vld [vmem:[#allocation12 + $0x220] sm:$0xf0]  ;;  %v4533_v13 = vld [vmem:[#allocation12 + $0x10] sm:$0xf] }
 0x394   :  { %3369 = vmatpush.bf16.msrb.mxu1 %v5030_v24  ;;  %3382 = vmatpush.bf16.msrb.mxu2 %v4586_v26  ;;  %v4898_v24 = vor.u32 %v5515_v16, %v4897_v14  ;;  %v4678_v26 = vor.u32 %v5456_v52, %v4675_v17  ;;  %v4566_v14 = vor.u32 %v5428_v7, %v4563_v8  ;;  %v4757_v16 = vld [vmem:[#allocation12 + $0x1d0] sm:$0xf]  ;;  %v5480_v52 = vld [vmem:[#allocation12 + $0x1e8] sm:$0xf0]  ;;  %v5421_v17 = vld [vmem:[#allocation12 + $0x14] sm:$0xf] }
 0x395   :  { %3408 = vmatpush.bf16.msra.mxu0 %v5034_v31  ;;  %v5066_v31 = vor.u32 %v5557_v19, %v5065_v18  ;;  %v4535_v18 = vld [vmem:[#allocation12 + $0x2c] sm:$0xf0]  ;;  %v5526_v19 = vld [vmem:[#allocation12 + $0x35c] sm:$0xf]  ;;  %v4597_v8 = vld [vmem:[#allocation12 + $0x88] sm:$0xf] }
 0x396   :  { %3397 = vmatpush.bf16.msrb.mxu3 %v4754_v47  ;;  %v5037_v47 = vld [vmem:[#allocation12 + $0x400] sm:$0xf]  ;;  %v4538_v33 = vor.u32 %v5421_v17, %v4535_v18  ;;  %v4569_v18 = vld [vmem:[#allocation12 + $0x50] sm:$0xf] }
 0x397   :  { %v5038_v40 = vor.u32 %v5550_v35, %v5037_v47  ;;  %v4681_v35 = vld [vmem:[#allocation12 + $0x130] sm:$0xf] }
 0x398   :  { %3370 = vmatpush.bf16.msrb.mxu1 %v5002_v11  ;;  %3383 = vmatpush.bf16.msrb.mxu2 %v4558_v39  ;;  %v5445_v11 = vld [vmem:[#allocation12 + $0xd0] sm:$0xf0]  ;;  %v4841_v39 = vld [vmem:[#allocation12 + $0x278] sm:$0xf] }
 0x399   :  { %3409 = vmatpush.bf16.msra.mxu0 %v5006_v61  ;;  %3398 = vmatmul.bf16.vlgmr.msrb.gmra.mxu3 %v6024_v21  ;;  %v4619_v61 = vld [vmem:[#allocation12 + $0xd4] sm:$0xf0]  ;;  %v4618_v45 = vor.u32 %v5445_v11, %v4617_v38  ;;  %v4842_v46 = vor.u32 %v5501_v41, %v4841_v39  ;;  %v4927_v38 = vld [vmem:[#allocation12 + $0x33c] sm:$0xf0]  ;;  %v5575_v11 = vld [vmem:[#allocation12 + $0x4e4] sm:$0xf] }
 0x39a   :  { %3442 = vmatpush.bf16.msra.mxu3 %v5178_v36  ;;  %v4870_v36 = vor.u32 %v5508_v32, %v4869_v29  ;;  %v4622_v48 = vor.u32 %v5442_v30, %v4619_v61  ;;  %v4961_v29 = vld [vmem:[#allocation12 + $0x360] sm:$0xf]  ;;  %v4758_v32 = vor.u32 %v5480_v52, %v4757_v16  ;;  %v5523_v41 = vld [vmem:[#allocation12 + $0x340] sm:$0xf0] }
 0x39b   :  { %v5151_v39 = vld [vmem:[#allocation12 + $0x4fc] sm:$0xf0] }
 0x39c   :  { %3371 = vmatpush.bf16.msrb.mxu1 %v4974_v55  ;;  %3384 = vmatpush.bf16.msrb.mxu2 %v4530_v56  ;;  %v5435_v55 = vld [vmem:[#allocation12 + $0x84] sm:$0xf]  ;;  %v4591_v56 = vld [vmem:[#allocation12 + $0x9c] sm:$0xf0]  ;;  %v5154_v43 = vor.u32 %v5575_v11, %v5151_v39  ;;  %v5011_v11 = vld [vmem:[#allocation12 + $0x3e4] sm:$0xf0] }
 0x39d   :  { %3410 = vmatpush.bf16.msra.mxu0 %v4978_v59  ;;  %v4594_v0 = vor.u32 %v5435_v55, %v4591_v56  ;;  %v4793_v39 = vld [vmem:[#allocation12 + $0x210] sm:$0xf] }
 0x39e   :  { %3443 = vmatpush.bf16.msra.mxu3 %v5150_v50  ;;  %v5438_v50 = vld [vmem:[#allocation12 + $0x98] sm:$0xf0] }
 0x39f   :  { %3372 = vmatmul.bf16.vlgmr.msrb.gmra.mxu1 %v6019_v3  ;;  %3385 = vmatmul.bf16.vlgmr.msrb.gmra.mxu2 %v6022_v20  ;;  %v4590_v59 = vor.u32 %v5438_v50, %v4589_v49  ;;  %v4899_v49 = vld [vmem:[#allocation12 + $0x304] sm:$0xf0]  ;;  %v5568_v50 = vld [vmem:[#allocation12 + $0x4ac] sm:$0xf] }
 0x3a0   :  { %3416 = vmatpush.bf16.msra.mxu1 %v4730_v60  ;;  %3429 = vmatpush.bf16.msra.mxu2 %v4954_v62  ;;  %v4737_v60 = vld [vmem:[#allocation12 + $0x1a0] sm:$0xf]  ;;  %v5474_v62 = vld [vmem:[#allocation12 + $0x1b8] sm:$0xf0] }
 0x3a1   :  { %3455 = vmatpush.bf16.msrb.mxu0 %v4734_v63  ;;  %v4814_v63 = vor.u32 %v5494_v54, %v4813_v51  ;;  %v4738_v9 = vor.u32 %v5474_v62, %v4737_v60  ;;  %v5123_v51 = vld [vmem:[#allocation12 + $0x4c4] sm:$0xf0]  ;;  %v5516_v54 = vld [vmem:[#allocation12 + $0x308] sm:$0xf0]  ;;  %v5505_v60 = vld [vmem:[#allocation12 + $0x2b4] sm:$0xf] }
 0x3a2   :  { %3444 = vmatpush.bf16.msra.mxu3 %v5122_v4  ;;  %3411 = vmatmul.bf16.vlgmr.msra.gmra.mxu0 %v6019_v3  ;;  %v4785_v4 = vld [vmem:[#allocation12 + $0x208] sm:$0xf]  ;;  %v5126_v57 = vor.u32 %v5568_v50, %v5123_v51  ;;  %v5481_v50 = vld [vmem:[#allocation12 + $0x1f0] sm:$0xf0]  ;;  %v5185_v51 = vld [vmem:[#allocation12 + $0x520] sm:$0xf] }
 0x3a3   :  { %v4786_v25 = vor.u32 %v5487_v6, %v4785_v4  ;;  %v5509_v4 = vld [vmem:[#allocation12 + $0x2d0] sm:$0xf0] }
 0x3a4   :  { %3417 = vmatpush.bf16.msra.mxu1 %v4702_v10  ;;  %3430 = vmatpush.bf16.msra.mxu2 %v4926_v42  ;;  %v4562_v10 = vor.u32 %v5431_v2, %v4561_v1  ;;  %v4709_v42 = vld [vmem:[#allocation12 + $0x168] sm:$0xf]  ;;  %v5095_v1 = vld [vmem:[#allocation12 + $0x48c] sm:$0xf0]  ;;  %v4877_v2 = vld [vmem:[#allocation12 + $0x2b8] sm:$0xf] }
 0x3a5   :  { %3456 = vmatpush.bf16.msrb.mxu0 %v4706_v12  ;;  %v5467_v12 = vld [vmem:[#allocation12 + $0x180] sm:$0xf0] }
 0x3a6   :  { %3445 = vmatpush.bf16.msra.mxu3 %v5094_v15  ;;  %v5424_v15 = vld [vmem:[#allocation12 + $0x28] sm:$0xf0] }
 0x3a7   :  { %v4534_v28 = vor.u32 %v5424_v15, %v4533_v13  ;;  %v5554_v13 = vld [vmem:[#allocation12 + $0x43c] sm:$0xf] }
 0x3a8   :  { %3418 = vmatpush.bf16.msra.mxu1 %v4674_v23  ;;  %3431 = vmatpush.bf16.msra.mxu2 %v4898_v24  ;;  %v4710_v23 = vor.u32 %v5467_v12, %v4709_v42  ;;  %v4955_v24 = vld [vmem:[#allocation12 + $0x374] sm:$0xf0]  ;;  %v4878_v42 = vor.u32 %v5509_v4, %v4877_v2  ;;  %v5502_v15 = vld [vmem:[#allocation12 + $0x298] sm:$0xf0]  ;;  %v5565_v2 = vld [vmem:[#allocation12 + $0x490] sm:$0xf0] }
 0x3a9   :  { %3457 = vmatpush.bf16.msrb.mxu0 %v4678_v26  ;;  %v5582_v26 = vld [vmem:[#allocation12 + $0x51c] sm:$0xf]  ;;  %v4958_v34 = vor.u32 %v5526_v19, %v4955_v24  ;;  %v4843_v12 = vld [vmem:[#allocation12 + $0x294] sm:$0xf0]  ;;  %v5432_v19 = vld [vmem:[#allocation12 + $0x68] sm:$0xf0] }
 0x3aa   :  { %3446 = vmatpush.bf16.msra.mxu3 %v5066_v31  ;;  %v5530_v31 = vld [vmem:[#allocation12 + $0x378] sm:$0xf0]  ;;  %v5182_v47 = vor.u32 %v5582_v26, %v5179_v27  ;;  %v4815_v26 = vld [vmem:[#allocation12 + $0x25c] sm:$0xf0]  ;;  %v5547_v27 = vld [vmem:[#allocation12 + $0x404] sm:$0xf] }
 0x3ab   :  { %v5073_v4 = vld [vmem:[#allocation12 + $0x440] sm:$0xf] }
 0x3ac   :  { %3419 = vmatpush.bf16.msra.mxu1 %v4646_v22  ;;  %3432 = vmatpush.bf16.msra.mxu2 %v4870_v36  ;;  %v5460_v22 = vld [vmem:[#allocation12 + $0x148] sm:$0xf0]  ;;  %v5519_v36 = vld [vmem:[#allocation12 + $0x324] sm:$0xf] }
 0x3ad   :  { %3458 = vmatpush.bf16.msrb.mxu0 %v4650_v37  ;;  %v4962_v37 = vor.u32 %v5530_v31, %v4961_v29  ;;  %v4682_v30 = vor.u32 %v5460_v22, %v4681_v35  ;;  %v4930_v61 = vor.u32 %v5519_v36, %v4927_v38  ;;  %v4821_v29 = vld [vmem:[#allocation12 + $0x248] sm:$0xf]  ;;  %v5495_v31 = vld [vmem:[#allocation12 + $0x260] sm:$0xf0]  ;;  %v5425_v35 = vld [vmem:[#allocation12 + $0x30] sm:$0xf0] }
 0x3ae   :  { %3447 = vmatpush.bf16.msra.mxu3 %v5038_v40  ;;  %v4933_v40 = vld [vmem:[#allocation12 + $0x328] sm:$0xf]  ;;  %v5484_v22 = vld [vmem:[#allocation12 + $0x20c] sm:$0xf]  ;;  %v4822_v36 = vor.u32 %v5495_v31, %v4821_v29 }
 0x3af   :  { %v5540_v38 = vld [vmem:[#allocation12 + $0x3cc] sm:$0xf] }
 0x3b0   :  { %3420 = vmatpush.bf16.msra.mxu1 %v4618_v45  ;;  %3433 = vmatpush.bf16.msra.mxu2 %v4842_v46  ;;  %v5453_v45 = vld [vmem:[#allocation12 + $0x110] sm:$0xf0]  ;;  %v5512_v46 = vld [vmem:[#allocation12 + $0x2ec] sm:$0xf] }
 0x3b1   :  { %3459 = vmatpush.bf16.msrb.mxu0 %v4622_v48  ;;  %v4934_v48 = vor.u32 %v5523_v41, %v4933_v40  ;;  %v4654_v55 = vor.u32 %v5453_v45, %v4653_v44  ;;  %v4902_v56 = vor.u32 %v5512_v46, %v4899_v49  ;;  %v5488_v40 = vld [vmem:[#allocation12 + $0x228] sm:$0xf0]  ;;  %v4759_v44 = vld [vmem:[#allocation12 + $0x1ec] sm:$0xf0]  ;;  %v5533_v46 = vld [vmem:[#allocation12 + $0x394] sm:$0xf] }
 0x3b2   :  { %3448 = vmatpush.bf16.msra.mxu3 %v5010_v53  ;;  %v4905_v53 = vld [vmem:[#allocation12 + $0x2f0] sm:$0xf]  ;;  %v4794_v45 = vor.u32 %v5488_v40, %v4793_v39  ;;  %v4765_v49 = vld [vmem:[#allocation12 + $0x1d8] sm:$0xf] }
 0x3b3   :  { %v4906_v62 = vor.u32 %v5516_v54, %v4905_v53  ;;  %v5586_v53 = vld [vmem:[#allocation12 + $0x538] sm:$0xf0] }
 0x3b4   :  { %3421 = vmatpush.bf16.msra.mxu1 %v4590_v59  ;;  %3434 = vmatpush.bf16.msra.mxu2 %v4814_v63  ;;  %v5446_v59 = vld [vmem:[#allocation12 + $0xd8] sm:$0xf0]  ;;  %v4871_v63 = vld [vmem:[#allocation12 + $0x2cc] sm:$0xf0] }
 0x3b5   :  { %3460 = vmatpush.bf16.msrb.mxu0 %v4594_v0  ;;  %v5561_v0 = vld [vmem:[#allocation12 + $0x474] sm:$0xf]  ;;  %v4874_v6 = vor.u32 %v5505_v60, %v4871_v63  ;;  %v5572_v63 = vld [vmem:[#allocation12 + $0x4c8] sm:$0xf0] }
 0x3b6   :  { %3449 = vmatpush.bf16.msra.mxu3 %v4982_v5  ;;  %v4626_v5 = vor.u32 %v5446_v59, %v4625_v58  ;;  %v5098_v7 = vor.u32 %v5561_v0, %v5095_v1  ;;  %v5157_v58 = vld [vmem:[#allocation12 + $0x4e8] sm:$0xf]  ;;  %v5579_v59 = vld [vmem:[#allocation12 + $0x500] sm:$0xf0]  ;;  %v5101_v1 = vld [vmem:[#allocation12 + $0x478] sm:$0xf] }
 0x3b7   :  { %v5158_v60 = vor.u32 %v5579_v59, %v5157_v58 }
 0x3b8   :  { %3422 = vmatpush.bf16.msra.mxu1 %v4562_v10  ;;  %3435 = vmatpush.bf16.msra.mxu2 %v4786_v25  ;;  %v5498_v10 = vld [vmem:[#allocation12 + $0x27c] sm:$0xf]  ;;  %v5067_v25 = vld [vmem:[#allocation12 + $0x454] sm:$0xf0] }
 0x3b9   :  { %3461 = vmatpush.bf16.msrb.mxu0 %v4566_v14  ;;  %3450 = vmatmul.bf16.vlgmr.msra.gmra.mxu3 %v6019_v3  ;;  %v4849_v14 = vld [vmem:[#allocation12 + $0x280] sm:$0xf]  ;;  %v4846_v52 = vor.u32 %v5498_v10, %v4843_v12  ;;  %v5070_v17 = vor.u32 %v5554_v13, %v5067_v25  ;;  %v5017_v10 = vld [vmem:[#allocation12 + $0x3d0] sm:$0xf]  ;;  %v4989_v13 = vld [vmem:[#allocation12 + $0x398] sm:$0xf] }
 0x3ba   :  { %3494 = vmatpush.bf16.msrb.mxu3 %v4738_v9  ;;  %v5439_v9 = vld [vmem:[#allocation12 + $0xa0] sm:$0xf0]  ;;  %v4850_v24 = vor.u32 %v5502_v15, %v4849_v14  ;;  %v6049_v14 = vld [vmem:[%s6091_s12] sm:$0xff] }
 0x3bb   :  { %v4598_v16 = vor.u32 %v5439_v9, %v4597_v8  ;;  %v5551_v8 = vld [vmem:[#allocation12 + $0x420] sm:$0xf0] }
 0x3bc   :  { %3423 = vmatpush.bf16.msra.mxu1 %v4534_v28  ;;  %3436 = vmatpush.bf16.msra.mxu2 %v4758_v32  ;;  %v5039_v28 = vld [vmem:[#allocation12 + $0x41c] sm:$0xf0]  ;;  %v4570_v32 = vor.u32 %v5432_v19, %v4569_v18 }
 0x3bd   :  { %3462 = vmatpush.bf16.msrb.mxu0 %v4538_v33 }
 0x3be   :  { %3495 = vmatpush.bf16.msrb.mxu3 %v4710_v23  ;;  %v5491_v23 = vld [vmem:[#allocation12 + $0x244] sm:$0xf] }
 0x3bf   :  { %3424 = vmatmul.bf16.vlgmr.msra.gmra.mxu1 %v6022_v20  ;;  %3437 = vmatmul.bf16.vlgmr.msra.gmra.mxu2 %v6024_v21  ;;  %v4818_v33 = vor.u32 %v5491_v23, %v4815_v26 }
 0x3c0   :  { %3468 = vmatpush.bf16.msrb.mxu1 %v4958_v34  ;;  %3481 = vmatpush.bf16.msrb.mxu2 %v5182_v47  ;;  %v5042_v34 = vor.u32 %v5547_v27, %v5039_v28  ;;  %v4541_v47 = vld [vmem:[#allocation12 + $0x18] sm:$0xf] }
 0x3c1   :  { %3507 = vmatpush.bf16.msra.mxu0 %v4962_v37  ;;  %v4787_v37 = vld [vmem:[#allocation12 + $0x224] sm:$0xf0]  ;;  %v4542_v41 = vor.u32 %v5425_v35, %v4541_v47 }
 0x3c2   :  { %3463 = vmatmul.bf16.vlgmr.msrb.gmra.mxu0 %v6022_v20  ;;  %3496 = vmatpush.bf16.msrb.mxu3 %v4682_v30  ;;  %v4790_v30 = vor.u32 %v5484_v22, %v4787_v37 }
 0x3c4   :  { %3469 = vmatpush.bf16.msrb.mxu1 %v4930_v61  ;;  %3482 = vmatpush.bf16.msrb.mxu2 %v5154_v43  ;;  %v5014_v61 = vor.u32 %v5540_v38, %v5011_v11  ;;  %v5477_v43 = vld [vmem:[#allocation12 + $0x1d4] sm:$0xf]  ;;  %v2384_v11 = vperm.slane %v6049_v14, 2 }
 0x3c5   :  { %3508 = vmatpush.bf16.msra.mxu0 %v4934_v48  ;;  %v4983_v48 = vld [vmem:[#allocation12 + $0x3ac] sm:$0xf0]  ;;  %v4762_v54 = vor.u32 %v5477_v43, %v4759_v44 }
 0x3c6   :  { %3497 = vmatpush.bf16.msrb.mxu3 %v4654_v55  ;;  %v4986_v55 = vor.u32 %v5533_v46, %v4983_v48 }
 0x3c8   :  { %3470 = vmatpush.bf16.msrb.mxu1 %v4902_v56  ;;  %3483 = vmatpush.bf16.msrb.mxu2 %v5126_v57  ;;  %v4766_v56 = vor.u32 %v5481_v50, %v4765_v49  ;;  %v5186_v57 = vor.u32 %v5586_v53, %v5185_v51 }
 0x3c9   :  { %3509 = vmatpush.bf16.msra.mxu0 %v4906_v62  ;;  %v5129_v62 = vld [vmem:[#allocation12 + $0x4b0] sm:$0xf] }
 0x3ca   :  { %3498 = vmatpush.bf16.msrb.mxu3 %v4626_v5  ;;  %v5130_v0 = vor.u32 %v5572_v63, %v5129_v62  ;;  %v5558_v5 = vld [vmem:[#allocation12 + $0x458] sm:$0xf0] }
 0x3cc   :  { %3471 = vmatpush.bf16.msrb.mxu1 %v4874_v6  ;;  %3484 = vmatpush.bf16.msrb.mxu2 %v5098_v7  ;;  %v5074_v6 = vor.u32 %v5558_v5, %v5073_v4  ;;  %v5045_v7 = vld [vmem:[#allocation12 + $0x408] sm:$0xf] }
 0x3cd   :  { %3510 = vmatpush.bf16.msra.mxu0 %v4878_v42  ;;  %v5046_v9 = vor.u32 %v5551_v8, %v5045_v7  ;;  %v5544_v42 = vld [vmem:[#allocation12 + $0x3e8] sm:$0xf0] }
 0x3ce   :  { %3499 = vmatpush.bf16.msrb.mxu3 %v4598_v16  ;;  %v5018_v12 = vor.u32 %v5544_v42, %v5017_v10 }
 0x3d0   :  { %3472 = vmatpush.bf16.msrb.mxu1 %v4846_v52  ;;  %3485 = vmatpush.bf16.msrb.mxu2 %v5070_v17  ;;  %v2382_v17 = vperm.slane %v6049_v14, 0 }
 0x3d1   :  { %3511 = vmatpush.bf16.msra.mxu0 %v4850_v24 }
 0x3d2   :  { %3500 = vmatpush.bf16.msrb.mxu3 %v4570_v32  ;;  %v2383_v32 = vperm.slane %v6049_v14, 1 }
 0x3d4   :  { %3473 = vmatpush.bf16.msrb.mxu1 %v4818_v33  ;;  %3486 = vmatpush.bf16.msrb.mxu2 %v5042_v34 }
 0x3d5   :  { %3512 = vmatpush.bf16.msra.mxu0 %v4822_v36 }
 0x3d6   :  { %3501 = vmatpush.bf16.msrb.mxu3 %v4542_v41 }
 0x3d8   :  { %3474 = vmatpush.bf16.msrb.mxu1 %v4790_v30  ;;  %3487 = vmatpush.bf16.msrb.mxu2 %v5014_v61 }
 0x3d9   :  { %3513 = vmatpush.bf16.msra.mxu0 %v4794_v45  ;;  %3502 = vmatmul.bf16.vlgmr.msrb.gmra.mxu3 %v6022_v20  ;;  %v5102_v20 = vor.u32 %v5565_v2, %v5101_v1 }
 0x3dc   :  { %3475 = vmatpush.bf16.msrb.mxu1 %v4762_v54  ;;  %3488 = vmatpush.bf16.msrb.mxu2 %v4986_v55 }
 0x3dd   :  { %3514 = vmatpush.bf16.msra.mxu0 %v4766_v56 }
 0x3df   :  { %3476 = vmatmul.bf16.vlgmr.msrb.gmra.mxu1 %v6024_v21  ;;  %3489 = vmatmul.bf16.vlgmr.msrb.gmra.mxu2 %v6019_v3 }
 0x3e0   :  { %3520 = vmatpush.bf16.msra.mxu1 %v5186_v57  ;;  %3515 = vmatmul.bf16.vlgmr.msra.gmra.mxu0 %v6024_v21  ;;  %v5537_v21 = vld [vmem:[#allocation12 + $0x3b0] sm:$0xf0]  ;;  %v2385_v57 = vperm.slane %v6049_v14, 3 }
 0x3e1   :  { %v4990_v25 = vor.u32 %v5537_v21, %v4989_v13 }
 0x3e4   :  { %3521 = vmatpush.bf16.msra.mxu1 %v5158_v60 }
 0x3e8   :  { %3522 = vmatpush.bf16.msra.mxu1 %v5130_v0 }
 0x3ec   :  { %3523 = vmatpush.bf16.msra.mxu1 %v5102_v20 }
 0x3f0   :  { %3524 = vmatpush.bf16.msra.mxu1 %v5074_v6 }
 0x3f4   :  { %3525 = vmatpush.bf16.msra.mxu1 %v5046_v9 }
 0x3f8   :  { %3526 = vmatpush.bf16.msra.mxu1 %v5018_v12 }
 0x3fb   :  { %v3269_v15 = vpop.f32.mrf.mxu1 }
 0x3fc   :  { %3527 = vmatpush.bf16.msra.mxu1 %v4990_v25  ;;  %v3295_v16 = vpop.f32.mrf.mxu3  ;;  %v3308_v52 = vpop.f32.mrf.mxu0  ;;  %v3270_v18 = vadd.f32 %v3269_v15, %v2382_v17  ;;  %v2386_v25 = vperm.slane %v6049_v14, 4 }
 0x3fd   :  { %v3309_v35 = vadd.f32 %v3308_v52, %v2383_v32 }
 0x3ff   :  { %3528 = vmatmul.bf16.vlgmr.msra.gmra.mxu1 %v6019_v3 }
 0x402   :  { %v3282_v19 = vpop.f32.mrf.mxu2 }
 0x403   :  { %v3283_v23 = vadd.f32 %v3282_v19, %v3270_v18  ;;  %v3271_v24 = vpop.f32.mrf.mxu1 }
 0x404   :  { %v3297_v26 = vpop.f32.mrf.mxu3  ;;  %v3310_v27 = vpop.f32.mrf.mxu0 }
 0x405   :  { %v3296_v28 = vadd.f32 %v3295_v16, %v3283_v23 }
 0x407   :  { %v3533_v29 = vsub.f32 0.0, %v3296_v28 }
 0x409   :  { %v3540_v31 = vmul.f32 1.442695, %v3533_v29 }
 0x40a   :  { %v3284_v3 = vpop.f32.mrf.mxu2 }
 0x40b   :  { %5603 = vpow2.f32 %v3540_v31  ;;  %v3321_v33 = vpop.f32.mrf.mxu1  ;;  %v2387_v3 = vperm.slane %v6049_v14, 5 }
 0x40c   :  { %v3347_v34 = vpop.f32.mrf.mxu3  ;;  %v3360_v47 = vpop.f32.mrf.mxu0  ;;  %v3322_v36 = vadd.f32 %v3321_v33, %v3309_v35 }
 0x40d   :  { %v3348_v43 = vadd.f32 %v3347_v34, %v2384_v11 }
 0x40f   :  { %v3361_v48 = vadd.f32 %v3360_v47, %v3348_v43  ;;  %v2388_v43 = vperm.slane %v6049_v14, 6 }
 0x411   :  { %v5604_v22 = vpop.eup %5603 }
 0x412   :  { %v3554_v37 = vadd.f32 1.0, %v5604_v22  ;;  %v3334_v38 = vpop.f32.mrf.mxu2 }
 0x413   :  { %v3335_v39 = vadd.f32 %v3334_v38, %v3322_v36  ;;  %v3323_v40 = vpop.f32.mrf.mxu1 }
 0x414   :  { %5605 = vrcp.f32 %v3554_v37  ;;  %v3349_v41 = vpop.f32.mrf.mxu3  ;;  %v3362_v30 = vpop.f32.mrf.mxu0 }
 0x415   :  { %v3534_v61 = vsub.f32 0.0, %v3335_v39 }
 0x417   :  { %v3542_v44 = vmul.f32 1.442695, %v3534_v61 }
 0x419   :  { %5607 = vpow2.f32 %v3542_v44 }
 0x41a   :  { %v5606_v45 = vpop.eup %5605  ;;  %v3336_v46 = vpop.f32.mrf.mxu2 }
 0x41b   :  { %3568 = vst [vmem:[%s6092_s13] sm:$0xff] %v5606_v45 }
 0x41c   :  { %v3373_v49 = vpop.f32.mrf.mxu1  ;;  %v3399_v50 = vpop.f32.mrf.mxu3 }
 0x41d   :  { %v3374_v51 = vadd.f32 %v3373_v49, %v3361_v48 }
 0x41f   :  { %v3412_v53 = vpop.f32.mrf.mxu0  ;;  %v5608_v54 = vpop.eup %5607  ;;  %v3535_v55 = vsub.f32 0.0, %v3374_v51 }
 0x420   :  { %v3555_v56 = vadd.f32 1.0, %v5608_v54 }
 0x421   :  { %v3544_v58 = vmul.f32 1.442695, %v3535_v55 }
 0x422   :  { %5609 = vrcp.f32 %v3555_v56  ;;  %v3386_v59 = vpop.f32.mrf.mxu2 }
 0x423   :  { %5611 = vpow2.f32 %v3544_v58  ;;  %v3387_v60 = vadd.f32 %v3386_v59, %v2385_v57 }
 0x424   :  { %v3375_v62 = vpop.f32.mrf.mxu1  ;;  %v3401_v63 = vpop.f32.mrf.mxu3 }
 0x425   :  { %v3400_v1 = vadd.f32 %v3399_v50, %v3387_v60 }
 0x427   :  { %v3414_v0 = vpop.f32.mrf.mxu0  ;;  %v3413_v20 = vadd.f32 %v3412_v53, %v3400_v1 }
 0x428   :  { %v5610_v2 = vpop.eup %5609 }
 0x429   :  { %v5612_v4 = vpop.eup %5611  ;;  %3569 = vst [vmem:[%s6092_s13 + $0x8] sm:$0xff] %v5610_v2  ;;  %v3536_v6 = vsub.f32 0.0, %v3413_v20 }
 0x42a   :  { %v3556_v5 = vadd.f32 1.0, %v5612_v4  ;;  %v3388_v7 = vpop.f32.mrf.mxu2 }
 0x42b   :  { %v3546_v8 = vmul.f32 1.442695, %v3536_v6 }
 0x42c   :  { %5613 = vrcp.f32 %v3556_v5 }
 0x42d   :  { %5615 = vpow2.f32 %v3546_v8 }
 0x432   :  { %v5614_v9 = vpop.eup %5613 }
 0x433   :  { %3570 = vst [vmem:[%s6092_s13 + $0x10] sm:$0xff] %v5614_v9  ;;  %v5616_v10 = vpop.eup %5615 }
 0x434   :  { %v3557_v42 = vadd.f32 1.0, %v5616_v10 }
 0x436   :  { %5617 = vrcp.f32 %v3557_v42 }
 0x43c   :  { %v3425_v12 = vpop.f32.mrf.mxu1  ;;  %v3451_v13 = vpop.f32.mrf.mxu3 }
 0x43d   :  { %v5618_v15 = vpop.eup %5617  ;;  %v3426_v16 = vadd.f32 %v3425_v12, %v2386_v25 }
 0x43e   :  { %3571 = vst [vmem:[%s6092_s13 + $0x18] sm:$0xff] %v5618_v15 }
 0x43f   :  { %v3464_v21 = vpop.f32.mrf.mxu0 }
 0x440   :  { %v3465_v35 = vadd.f32 %v3464_v21, %v2387_v3 }
 0x442   :  { %v3438_v52 = vpop.f32.mrf.mxu2 }
 0x443   :  { %v3439_v17 = vadd.f32 %v3438_v52, %v3426_v16 }
 0x444   :  { %v3427_v18 = vpop.f32.mrf.mxu1  ;;  %v3453_v19 = vpop.f32.mrf.mxu3 }
 0x445   :  { %v3452_v24 = vadd.f32 %v3451_v13, %v3439_v17 }
 0x447   :  { %v3466_v23 = vpop.f32.mrf.mxu0  ;;  %v3537_v26 = vsub.f32 0.0, %v3452_v24 }
 0x449   :  { %v3548_v27 = vmul.f32 1.442695, %v3537_v26 }
 0x44a   :  { %v3440_v28 = vpop.f32.mrf.mxu2 }
 0x44b   :  { %5619 = vpow2.f32 %v3548_v27 }
 0x451   :  { %v5620_v29 = vpop.eup %5619 }
 0x452   :  { %v3558_v31 = vadd.f32 1.0, %v5620_v29 }
 0x454   :  { %5621 = vrcp.f32 %v3558_v31 }
 0x45a   :  { %v5622_v33 = vpop.eup %5621 }
 0x45b   :  { %3572 = vst [vmem:[%s6092_s13 + $0x20] sm:$0xff] %v5622_v33 }
 0x45c   :  { %v3477_v32 = vpop.f32.mrf.mxu1  ;;  %v3503_v34 = vpop.f32.mrf.mxu3 }
 0x45d   :  { %v3516_v47 = vpop.f32.mrf.mxu0  ;;  %v3478_v22 = vadd.f32 %v3477_v32, %v3465_v35  ;;  %v3504_v45 = vadd.f32 %v3503_v34, %v2388_v43 }
 0x45f   :  { %v3517_v48 = vadd.f32 %v3516_v47, %v3504_v45 }
 0x462   :  { %v3490_v36 = vpop.f32.mrf.mxu2 }
 0x463   :  { %v3491_v37 = vadd.f32 %v3490_v36, %v3478_v22 }
 0x464   :  { %v3479_v38 = vpop.f32.mrf.mxu1  ;;  %v3505_v39 = vpop.f32.mrf.mxu3 }
 0x465   :  { %v3538_v11 = vsub.f32 0.0, %v3491_v37  ;;  %v3518_v40 = vpop.f32.mrf.mxu0 }
 0x467   :  { %v3550_v41 = vmul.f32 1.442695, %v3538_v11 }
 0x469   :  { %5623 = vpow2.f32 %v3550_v41 }
 0x46a   :  { %v3492_v30 = vpop.f32.mrf.mxu2 }
 0x46f   :  { %v5624_v61 = vpop.eup %5623 }
 0x470   :  { %v3559_v44 = vadd.f32 1.0, %v5624_v61 }
 0x472   :  { %5625 = vrcp.f32 %v3559_v44 }
 0x478   :  { %v5626_v46 = vpop.eup %5625 }
 0x479   :  { %3573 = vst [vmem:[%s6092_s13 + $0x28] sm:$0xff] %v5626_v46 }
 0x47c   :  { %v3529_v49 = vpop.f32.mrf.mxu1 }
 0x47d   :  { %v3530_v50 = vadd.f32 %v3529_v49, %v3517_v48 }
 0x47f   :  { %v3539_v51 = vsub.f32 0.0, %v3530_v50 }
 0x481   :  { %v3552_v53 = vmul.f32 1.442695, %v3539_v51 }
 0x483   :  { %5627 = vpow2.f32 %v3552_v53 }
 0x484   :  { %v3531_v54 = vpop.f32.mrf.mxu1 }
 0x489   :  { %v5628_v55 = vpop.eup %5627 }
 0x48a   :  { %v3560_v56 = vadd.f32 1.0, %v5628_v55 }
 0x48c   :  { %5629 = vrcp.f32 %v3560_v56 }
 0x492   :  { %v5630_v57 = vpop.eup %5629 }
 0x493   :  { %3574 = vst [vmem:[%s6092_s13 + $0x30] sm:$0xff] %v5630_v57 }
 0x494   :  { %3583 = vsyncpa [#allocation3], 1 }
 0x495   :  { %3584 = vsyncpa [#allocation5], 1 }
 0x496   :  { %3585 = vsyncpa [#allocation8], 1 }
 0x497   :  { %3586 = vsyncpa [#allocation11], 1 }

</bundles_post_ra>
